<compile_context>
chip_gen: v7x
topology: tpu7x:2x2x1
jax: 0.10.0
libtpu: 0.0.40
codegen_flags: <defaults>
</compile_context>

<pallas_src>
import functools
import math

import jax
import jax.numpy as jnp
from jax import lax
from jax.experimental import pallas as pl
from jax.experimental.pallas import tpu as pltpu


# --------------------------------------------------------------------------- helpers

def _rup(x, m):
    return ((x + m - 1) // m) * m


def _pad2(a, rows, cols):
    r, c = a.shape
    if r == rows and c == cols:
        return a
    return jnp.pad(a, ((0, rows - r), (0, cols - c)))


@functools.lru_cache(maxsize=1)
def _lane_alignment():
    """Feature-dim alignment: 256 on v6e/v7x (2x256^2 MXU), 128 on v5e / unknown."""
    try:
        info = pltpu.get_tpu_info()
        name = (str(getattr(info, "chip_version", "")) + " " + str(info)).lower()
        if ("v6" in name) or ("v7" in name):
            return 256
    except Exception:
        pass
    return 128


def _choose_tm(M, cap=512):
    mp8 = _rup(M, 8)
    if mp8 <= cap:
        return mp8
    for cand in (512, 384, 256, 128):
        if cand <= cap and mp8 % cand == 0:
            return cand
    return cap


def _choose_tn(N, cap=512):
    np_ = _rup(N, 128)
    if np_ <= cap:
        return np_
    for cand in (512, 384, 256, 128):
        if np_ % cand == 0:
            return cand
    return cap


def _choose_k(K):
    """Full-K block (no padding) when it fits VMEM comfortably; else 1024-wide K tiles."""
    if K <= 2048:
        return K, K
    tk = 1024
    return tk, _rup(K, tk)


def _time_chunk(T):
    """BiRNN timesteps per grid step: largest divisor of T in [8,32]; else pad T."""
    for tt in range(min(T, 32), 7, -1):
        if T % tt == 0:
            return tt, T
    tt = 8
    return tt, _rup(T, tt)


# --------------------------------------------------------------------------- tiled matmul (+x2 fusion, +bias, +Hardtanh)

def _matmul_bias_act_kernel(*refs, act, has_x2):
    if has_x2:
        x_ref, x2_ref, w_ref, b_ref, o_ref, acc_ref = refs
    else:
        x_ref, w_ref, b_ref, o_ref, acc_ref = refs
        x2_ref = None

    @pl.when(pl.program_id(2) == 0)
    def _():
        acc_ref[...] = jnp.zeros_like(acc_ref)

    xv = x_ref[...]
    if x2_ref is not None:                         # fused bidirectional direction-sum
        xv = xv + x2_ref[...]
    acc_ref[...] += jnp.dot(xv.astype(jnp.bfloat16), w_ref[...],
                            preferred_element_type=jnp.float32)

    @pl.when(pl.program_id(2) == pl.num_programs(2) - 1)
    def _():
        y = acc_ref[...] + b_ref[...]
        if act == "hardtanh":                      # nn.Hardtanh(min_val=0, max_val=20)
            y = jnp.clip(y, 0.0, 20.0)
        o_ref[...] = y.astype(o_ref.dtype)


def matmul_bias_act(x, w, b, act=None, x2=None, out_dtype=jnp.float32):
    """(x [+ x2]) @ w + b [clip 0..20].  x/x2: (M, Kx), w: (Kw, N) bf16, b: (1, N).
    If Kx != Kw the shorter operand is zero-padded; zero weight rows make any extra
    x columns irrelevant (no hidden contract on padded activation lanes)."""
    M, Kx = x.shape
    Kw, N = w.shape
    K = max(Kx, Kw)

    tk, Kp = _choose_k(K)
    tm = _choose_tm(M)
    tn = _choose_tn(N)
    Mp, Np_ = _rup(M, tm), _rup(N, tn)

    xp = _pad2(x, Mp, Kp)
    x2p = _pad2(x2, Mp, Kp) if x2 is not None else None
    wp = _pad2(w.astype(jnp.bfloat16), Kp, Np_)
    bp = _pad2(b.astype(jnp.float32), 1, Np_)

    in_specs = [pl.BlockSpec((tm, tk), lambda i, j, k: (i, k))]
    operands = [xp]
    if x2p is not None:
        in_specs.append(pl.BlockSpec((tm, tk), lambda i, j, k: (i, k)))
        operands.append(x2p)
    in_specs += [pl.BlockSpec((tk, tn), lambda i, j, k: (k, j)),
                 pl.BlockSpec((1, tn), lambda i, j, k: (0, j))]
    operands += [wp, bp]

    out = pl.pallas_call(
        functools.partial(_matmul_bias_act_kernel, act=act, has_x2=x2p is not None),
        out_shape=jax.ShapeDtypeStruct((Mp, Np_), out_dtype),
        grid=(Mp // tm, Np_ // tn, Kp // tk),
        in_specs=in_specs,
        out_specs=pl.BlockSpec((tm, tn), lambda i, j, k: (i, j)),
        scratch_shapes=[pltpu.VMEM((tm, tn), jnp.float32)],
        compiler_params=pltpu.CompilerParams(
            dimension_semantics=("parallel", "parallel", "arbitrary")),
    )(*operands)
    if Mp != M or Np_ != N:
        out = out[:M, :N]
    return out


# --------------------------------------------------------------------------- fused bidirectional ReLU-RNN

def _birnn_kernel(pre_f_ref, pre_b_ref, whh_f_ref, whh_b_ref, bhh_f_ref, bhh_b_ref,
                  out_f_ref, out_b_ref, hf_ref, hb_ref, *, tt, t_valid, mask_tail):
    # h_t = relu(pre_t + h_{t-1} @ W_hh^T + b_hh); hidden states persist across chunks.
    @pl.when(pl.program_id(0) == 0)
    def _():
        hf_ref[...] = jnp.zeros_like(hf_ref)
        hb_ref[...] = jnp.zeros_like(hb_ref)

    # hoisted loop invariants (weights + bias broadcasts done once per chunk)
    wf = whh_f_ref[...]
    wb = whh_b_ref[...]
    bshape = hf_ref.shape
    bf = jnp.broadcast_to(bhh_f_ref[...], bshape)
    bb = jnp.broadcast_to(bhh_b_ref[...], bshape)

    c = pl.program_id(0)
    nchunks = pl.num_programs(0)
    base_b = (nchunks - 1 - c) * tt            # global time of local step 0 (backward chunk)

    def step(i, carry):
        # forward direction: local time i
        hf = pre_f_ref[i].astype(jnp.float32) + jnp.dot(
            hf_ref[...].astype(jnp.bfloat16), wf, preferred_element_type=jnp.float32) + bf
        hf = jnp.maximum(hf, 0.0)
        hf_ref[...] = hf
        out_f_ref[i] = hf.astype(out_f_ref.dtype)

        # backward direction: local time tt-1-i (chunk order reversed by the index_map)
        j = tt - 1 - i
        hb = pre_b_ref[j].astype(jnp.float32) + jnp.dot(
            hb_ref[...].astype(jnp.bfloat16), wb, preferred_element_type=jnp.float32) + bb
        hb = jnp.maximum(hb, 0.0)
        if mask_tail:
            # padded timesteps (global t >= T) must not pollute the backward state
            hb = jnp.where(base_b + j < t_valid, hb, jnp.zeros_like(hb))
        hb_ref[...] = hb
        out_b_ref[j] = hb.astype(out_b_ref.dtype)
        return carry

    lax.fori_loop(0, tt, step, 0, unroll=True)


def birnn_layer(x_pair, p, Tp, Nb, Hp, tt, T):
    """x_pair: ((Tp*Nb, Hp) act, optional second act to sum).  Returns (out_f, out_b),
    each (Tp*Nb, Hp) bf16; their sum is fused into the next consumer matmul."""
    x, x2 = x_pair
    # fused forward+backward input projection: [pre_f | pre_b] in one pass over x
    pre = matmul_bias_act(x, p["w_ih"], p["b_ih"], x2=x2, out_dtype=jnp.bfloat16)
    pre = pre.reshape(Tp, Nb, 2 * Hp)

    nchunks = Tp // tt

    out_f, out_b = pl.pallas_call(
        functools.partial(_birnn_kernel, tt=tt, t_valid=T, mask_tail=(Tp != T)),
        out_shape=(jax.ShapeDtypeStruct((Tp, Nb, Hp), jnp.bfloat16),
                   jax.ShapeDtypeStruct((Tp, Nb, Hp), jnp.bfloat16)),
        grid=(nchunks,),
        in_specs=[
            # same `pre` array passed twice: forward half (cols 0:Hp) in time order,
            # backward half (cols Hp:2Hp) with the time reversal folded into index_map
            pl.BlockSpec((tt, Nb, Hp), lambda c: (c, 0, 0)),
            pl.BlockSpec((tt, Nb, Hp), lambda c: (nchunks - 1 - c, 0, 1)),
            pl.BlockSpec((Hp, Hp), lambda c: (0, 0)),
            pl.BlockSpec((Hp, Hp), lambda c: (0, 0)),
            pl.BlockSpec((1, Hp), lambda c: (0, 0)),
            pl.BlockSpec((1, Hp), lambda c: (0, 0)),
        ],
        out_specs=(
            pl.BlockSpec((tt, Nb, Hp), lambda c: (c, 0, 0)),
            pl.BlockSpec((tt, Nb, Hp), lambda c: (nchunks - 1 - c, 0, 0)),
        ),
        scratch_shapes=[pltpu.VMEM((Nb, Hp), jnp.float32),
                        pltpu.VMEM((Nb, Hp), jnp.float32)],
        compiler_params=pltpu.CompilerParams(dimension_semantics=("arbitrary",)),
    )(pre, pre, p["w_hh_f"], p["w_hh_b"], p["b_hh_f"], p["b_hh_b"])

    return out_f.reshape(Tp * Nb, Hp), out_b.reshape(Tp * Nb, Hp)


# --------------------------------------------------------------------------- probabilities (Linear + Log/Softmax)

def _probs_kernel(x_ref, w_ref, b_ref, logp_ref, p_ref, *, n_valid):
    logits = jnp.dot(x_ref[...].astype(jnp.bfloat16), w_ref[...],
                     preferred_element_type=jnp.float32) + b_ref[...]
    col = lax.broadcasted_iota(jnp.int32, logits.shape, 1)
    logits = jnp.where(col < n_valid, logits, -1e30)   # mask lane padding
    m = jnp.max(logits, axis=-1, keepdims=True)
    z = logits - m
    e = jnp.exp(z)
    s = jnp.sum(e, axis=-1, keepdims=True)
    logp_ref[...] = z - jnp.log(s)                     # LogSoftmax(dim=-1)
    p_ref[...] = e / s                                 # Softmax(dim=-1), exact divide


def probs_layer(x, w, b):
    """x: (M, K), w: (K, C) bf16, b: (1, C) f32 -> (logsoftmax, softmax), each (M, C)."""
    M, Kx = x.shape
    Kw, C = w.shape
    K = max(Kx, Kw)
    Cp = _rup(C, 128)
    tm = _choose_tm(M)
    Mp = _rup(M, tm)

    xp = _pad2(x, Mp, K)
    wp = _pad2(w.astype(jnp.bfloat16), K, Cp)
    bp = _pad2(b.astype(jnp.float32), 1, Cp)

    logp, p = pl.pallas_call(
        functools.partial(_probs_kernel, n_valid=C),
        out_shape=(jax.ShapeDtypeStruct((Mp, Cp), jnp.float32),
                   jax.ShapeDtypeStruct((Mp, Cp), jnp.float32)),
        grid=(Mp // tm,),
        in_specs=[
            pl.BlockSpec((tm, K), lambda i: (i, 0)),
            pl.BlockSpec((K, Cp), lambda i: (0, 0)),
            pl.BlockSpec((1, Cp), lambda i: (0, 0)),
        ],
        out_specs=(pl.BlockSpec((tm, Cp), lambda i: (i, 0)),
                   pl.BlockSpec((tm, Cp), lambda i: (i, 0))),
        compiler_params=pltpu.CompilerParams(dimension_semantics=("parallel",)),
    )(xp, wp, bp)
    if Mp != M or Cp != C:
        logp = logp[:M, :C]
        p = p[:M, :C]
    return logp, p


# --------------------------------------------------------------------------- conv glue (im2col + tiled matmul)

def conv2d_same_hardtanh(x, w_flat, b2, kernel, stride):
    """Conv2dSame (TF-'same' padding, dilation=1) + Hardtanh(0, 20).
    x: (N, Cin, F, T); w_flat: (Cin*KH*KW, Cout) bf16; b2: (1, Cout) f32."""
    N, Cin, Hh, Ww = x.shape
    KH, KW = kernel
    SH, SW = stride
    Cout = w_flat.shape[1]
    H2 = math.ceil(Hh / SH)
    W2 = math.ceil(Ww / SW)
    pr = max(0, (H2 - 1) * SH + (KH - 1) + 1 - Hh)
    pc = max(0, (W2 - 1) * SW + (KW - 1) + 1 - Ww)
    xp = jnp.pad(x, ((0, 0), (0, 0), (pr // 2, pr - pr // 2), (pc // 2, pc - pc // 2)))
    Hpad, Wpad = Hh + pr, Ww + pc
    Fo = (Hpad - KH) // SH + 1
    To = (Wpad - KW) // SW + 1

    # im2col (glue): (Cin, KH, KW) ordering matches PyTorch's flattened conv weight.
    # TODO(synk): replace with a direct Pallas conv kernel accumulating over (kh,kw)
    # grid axes so the patches never hit HBM.
    cols = []
    for kh in range(KH):
        for kw in range(KW):
            cols.append(xp[:, :, kh:kh + SH * Fo:SH, kw:kw + SW * To:SW])
    patches = jnp.stack(cols, axis=2)                        # (N, Cin, KH*KW, Fo, To)
    patches = patches.transpose(0, 3, 4, 1, 2).reshape(N * Fo * To, Cin * KH * KW)

    # full-K block inside matmul_bias_act -> no 9->128 K zero-padding of the patches
    y = matmul_bias_act(patches, w_flat, b2, act="hardtanh", out_dtype=jnp.bfloat16)
    return y.reshape(N, Fo, To, Cout).transpose(0, 3, 1, 2)  # (N, Cout, Fo, To)


# --------------------------------------------------------------------------- full forward

def deepspeech_forward(x, params, conv_layers, rec_number, characters):
    """x: (N, F, T) f32 -> (log_softmax (N, T, C), softmax (N, T, C))."""
    N = x.shape[0]
    xc = x[:, None, :, :]                                    # unsqueeze(dim=1)

    # ---- Convolutions (batch_norm=False)
    for i, layer in enumerate(conv_layers):
        w_flat, b2 = params["conv"][i]
        xc = conv2d_same_hardtanh(xc, w_flat, b2, layer["kernel"], layer["stride"])

    _, C, F, T = xc.shape
    H = C * F
    Hp = _rup(H, _lane_alignment())
    Nb = _rup(N, 8)
    tt, Tp = _time_chunk(T)

    # (N, C, F, T) -> (N, C*F, T) -> time-major (T, N, H), padded once to (Tp, Nb, Hp)
    x_tm = jnp.transpose(xc.reshape(N, H, T), (2, 0, 1))
    x_tm = jnp.pad(x_tm, ((0, Tp - T), (0, Nb - N), (0, Hp - H)))

    # ---- Recurrent (bidirectional ReLU RNN, chunk + sum), time-major throughout.
    # Each layer returns the two directions separately; the sum is fused into the
    # next layer's projection matmul (no standalone add / extra HBM pass).
    pair = (x_tm.reshape(Tp * Nb, Hp), None)
    for i in range(rec_number):
        pair = birnn_layer(pair, params["rnn"][i], Tp, Nb, Hp, tt, T)

    # ---- FullyConnected (Linear + Hardtanh), dropout=0
    feat, feat2 = pair
    for (w, b) in params["fc"]:
        feat = matmul_bias_act(feat, w, b, act="hardtanh", x2=feat2,
                               out_dtype=jnp.bfloat16)
        feat2 = None

    # ---- Probabilities (Linear + LogSoftmax / Softmax)
    wpr, bpr = params["probs"]
    logp, p = probs_layer(feat, wpr, bpr)

    # final (T,N,C)->(N,T,C) reorder is over tiny C=29 tensors; left to XLA
    logp = jnp.transpose(logp.reshape(Tp, Nb, characters)[:T, :N], (1, 0, 2))
    p = jnp.transpose(p.reshape(Tp, Nb, characters)[:T, :N], (1, 0, 2))
    return logp, p


# --------------------------------------------------------------------------- params

def init_params(key, conv_layers, frequencies, rec_number, fc_layers_sizes, characters):
    params = {"conv": [], "rnn": [], "fc": []}
    newC, newF = 1, frequencies

    for layer in conv_layers:
        key, k1, k2 = jax.random.split(key, 3)
        Cout = layer["num_chan"]
        KH, KW = layer["kernel"]
        bound = 1.0 / math.sqrt(newC * KH * KW)
        params["conv"].append((
            jax.random.uniform(k1, (Cout, newC, KH, KW), jnp.float32, -bound, bound),
            jax.random.uniform(k2, (Cout,), jnp.float32, -bound, bound)))
        newC = Cout
        newF = math.ceil(float(newF) / float(layer["stride"][0]))

    H = newC * newF
    for _ in range(rec_number):
        key, *ks = jax.random.split(key, 9)
        bound = 1.0 / math.sqrt(H)
        u = lambda k, s: jax.random.uniform(k, s, jnp.float32, -bound, bound)
        params["rnn"].append({
            "w_ih": u(ks[0], (H, H)), "w_hh": u(ks[1], (H, H)),
            "b_ih": u(ks[2], (H,)),   "b_hh": u(ks[3], (H,)),
            "w_ih_r": u(ks[4], (H, H)), "w_hh_r": u(ks[5], (H, H)),
            "b_ih_r": u(ks[6], (H,)),   "b_hh_r": u(ks[7], (H,))})

    sizes = list(zip([H] + fc_layers_sizes, fc_layers_sizes))
    for inner, outer in sizes:
        key, k1, k2 = jax.random.split(key, 3)
        bound = 1.0 / math.sqrt(inner)
        params["fc"].append((
            jax.random.uniform(k1, (outer, inner), jnp.float32, -bound, bound),
            jax.random.uniform(k2, (outer,), jnp.float32, -bound, bound)))

    key, k1, k2 = jax.random.split(key, 3)
    bound = 1.0 / math.sqrt(fc_layers_sizes[-1])
    params["probs"] = (
        jax.random.uniform(k1, (characters, fc_layers_sizes[-1]), jnp.float32, -bound, bound),
        jax.random.uniform(k2, (characters,), jnp.float32, -bound, bound))
    return params, H


def prepare_params(raw, H):
    """Pre-transpose, pad feature dims to Hp, fuse the two direction input projections
    and cast MXU weights to bf16 (HBM side)."""
    Hp = _rup(H, _lane_alignment())
    prep = {"conv": [], "rnn": [], "fc": []}

    for (w, b) in raw["conv"]:
        Cout = w.shape[0]
        prep["conv"].append((w.reshape(Cout, -1).T.astype(jnp.bfloat16),
                             b.reshape(1, -1).astype(jnp.float32)))

    padw = lambda w: jnp.pad(w.T, ((0, Hp - H), (0, Hp - H)))         # (out,in)->(in,out)
    padb = lambda b: jnp.pad(b.reshape(1, -1), ((0, 0), (0, Hp - H)))
    for p in raw["rnn"]:
        w_ih = jnp.concatenate([padw(p["w_ih"]), padw(p["w_ih_r"])], axis=1)
        b_ih = jnp.concatenate([padb(p["b_ih"]), padb(p["b_ih_r"])], axis=1)
        prep["rnn"].append({
            "w_ih": w_ih.astype(jnp.bfloat16),          # (Hp, 2*Hp) fused fwd|bwd
            "b_ih": b_ih.astype(jnp.float32),           # (1, 2*Hp)
            "w_hh_f": padw(p["w_hh"]).astype(jnp.bfloat16),
            "w_hh_b": padw(p["w_hh_r"]).astype(jnp.bfloat16),
            "b_hh_f": padb(p["b_hh"]).astype(jnp.float32),
            "b_hh_b": padb(p["b_hh_r"]).astype(jnp.float32)})

    for (w, b) in raw["fc"]:
        prep["fc"].append((w.T.astype(jnp.bfloat16), b.reshape(1, -1).astype(jnp.float32)))

    w, b = raw["probs"]
    prep["probs"] = (w.T.astype(jnp.bfloat16), b.reshape(1, -1).astype(jnp.float32))
    return prep


# --------------------------------------------------------------------------- main

if __name__ == "__main__":
    key = jax.random.PRNGKey(0)
    key, kparam, kx = jax.random.split(key, 3)

    # small DeepSpeech config
    N, FREQ, TIME = 2, 16, 8
    conv_layers = [{"num_chan": 4, "kernel": (3, 3), "stride": (2, 1)}]
    rec_number = 2
    fc_layers_sizes = [32]
    characters = 29

    raw_params, H = init_params(kparam, conv_layers, FREQ, rec_number,
                                fc_layers_sizes, characters)
    params = prepare_params(raw_params, H)

    x = jax.random.normal(kx, (N, FREQ, TIME), jnp.float32)   # (N, F, T)

    fwd = jax.jit(functools.partial(deepspeech_forward, conv_layers=conv_layers,
                                    rec_number=rec_number, characters=characters))
    logp, p = fwd(x, params)
    jax.block_until_ready((logp, p))

    assert logp.shape == (N, TIME, characters) and p.shape == (N, TIME, characters)
    assert bool(jnp.isfinite(logp).all()) and bool(jnp.isfinite(p).all())
    assert bool(jnp.allclose(jnp.sum(p, axis=-1), 1.0, atol=1e-3))
    # TODO(synk): CTC criterion (nn.CTCLoss) is a training-time loss, not part of forward; omitted.
    print("KERNEL_OK")
</pallas_src>

<mosaic_0001>
module attributes {stable_mosaic.version = 11 : i64} {
  func.func @_matmul_bias_act_kernel(%arg0: i32, %arg1: i32, %arg2: i32, %arg3: memref<128x9xf32, #tpu.memory_space<vmem>>, %arg4: memref<9x128xbf16, #tpu.memory_space<vmem>>, %arg5: memref<1x128xf32, #tpu.memory_space<vmem>>, %arg6: memref<128x128xbf16, #tpu.memory_space<vmem>>, %arg7: memref<128x128xf32, #tpu.memory_space<vmem>>) attributes {dimension_semantics = [#tpu.dimension_semantics<parallel>, #tpu.dimension_semantics<parallel>, #tpu.dimension_semantics<arbitrary>], iteration_bounds = array<i64: 1, 1, 1>, scalar_prefetch = 0 : i64, scratch_operands = 1 : i64, tpu.core_type = #tpu.core_type<tc>, window_params = [{transform_indices = @transform_0, window_bounds = array<i64: 128, 9>}, {transform_indices = @transform_1, window_bounds = array<i64: 9, 128>}, {transform_indices = @transform_2, window_bounds = array<i64: 1, 128>}, {transform_indices = @transform_3, window_bounds = array<i64: 128, 128>}]} {
    %c0_i32 = arith.constant 0 : i32
    %0 = arith.cmpi eq, %arg2, %c0_i32 : i32
    %1 = arith.extui %0 : i1 to i32
    %c0_i32_0 = arith.constant 0 : i32
    %2 = arith.cmpi ne, %1, %c0_i32_0 : i32
    scf.if %2 {
      %cst_10 = arith.constant 0.000000e+00 : f32
      %13 = vector.broadcast %cst_10 : f32 to vector<128x128xf32>
      %c0_11 = arith.constant 0 : index
      %c0_12 = arith.constant 0 : index
      %14 = vector.load %arg7[%c0_11, %c0_12] : memref<128x128xf32, #tpu.memory_space<vmem>>, vector<128x128xf32>
      tpu.vector_store %arg7[%c0_11, %c0_12], %13 {strides = array<i32>} : memref<128x128xf32, #tpu.memory_space<vmem>>, vector<128x128xf32>,
    } else {
    }
    %c0 = arith.constant 0 : index
    %c0_1 = arith.constant 0 : index
    %3 = vector.load %arg3[%c0, %c0_1] : memref<128x9xf32, #tpu.memory_space<vmem>>, vector<128x9xf32>
    %c0_2 = arith.constant 0 : index
    %c0_3 = arith.constant 0 : index
    %4 = vector.load %arg7[%c0_2, %c0_3] : memref<128x128xf32, #tpu.memory_space<vmem>>, vector<128x128xf32>
    %5 = arith.truncf %3 : vector<128x9xf32> to vector<128x9xbf16>
    %c0_4 = arith.constant 0 : index
    %c0_5 = arith.constant 0 : index
    %6 = vector.load %arg4[%c0_4, %c0_5] : memref<9x128xbf16, #tpu.memory_space<vmem>>, vector<9x128xbf16>
    %cst = arith.constant dense<0.000000e+00> : vector<128x128xf32>
    %7 = tpu.matmul %5, %6, %cst {dimension_numbers = #tpu.dot_dimension_numbers<[1], [0], [0], [1], [0, 0, 1, 1], [], []>} : vector<128x9xbf16>, vector<9x128xbf16>, vector<128x128xf32> -> vector<128x128xf32>
    %8 = arith.addf %4, %7 : vector<128x128xf32>
    %c0_6 = arith.constant 0 : index
    %c0_7 = arith.constant 0 : index
    %9 = vector.load %arg7[%c0_6, %c0_7] : memref<128x128xf32, #tpu.memory_space<vmem>>, vector<128x128xf32>
    tpu.vector_store %arg7[%c0_6, %c0_7], %8 {strides = array<i32>} : memref<128x128xf32, #tpu.memory_space<vmem>>, vector<128x128xf32>,
    %c0_i32_8 = arith.constant 0 : i32
    %10 = arith.cmpi eq, %arg2, %c0_i32_8 : i32
    %11 = arith.extui %10 : i1 to i32
    %c0_i32_9 = arith.constant 0 : i32
    %12 = arith.cmpi ne, %11, %c0_i32_9 : i32
    scf.if %12 {
      %c0_10 = arith.constant 0 : index
      %c0_11 = arith.constant 0 : index
      %13 = vector.load %arg7[%c0_10, %c0_11] : memref<128x128xf32, #tpu.memory_space<vmem>>, vector<128x128xf32>
      %c0_12 = arith.constant 0 : index
      %c0_13 = arith.constant 0 : index
      %14 = vector.load %arg5[%c0_12, %c0_13] : memref<1x128xf32, #tpu.memory_space<vmem>>, vector<1x128xf32>
      %15 = vector.broadcast %14 : vector<1x128xf32> to vector<128x128xf32>
      %16 = arith.addf %13, %15 : vector<128x128xf32>
      %cst_14 = arith.constant 0.000000e+00 : f32
      %cst_15 = arith.constant 2.000000e+01 : f32
      %17 = vector.broadcast %cst_14 : f32 to vector<128x128xf32>
      %18 = arith.maximumf %17, %16 : vector<128x128xf32>
      %19 = vector.broadcast %cst_15 : f32 to vector<128x128xf32>
      %20 = arith.minimumf %19, %18 : vector<128x128xf32>
      %21 = arith.truncf %20 : vector<128x128xf32> to vector<128x128xbf16>
      %c0_16 = arith.constant 0 : index
      %c0_17 = arith.constant 0 : index
      %22 = vector.load %arg6[%c0_16, %c0_17] : memref<128x128xbf16, #tpu.memory_space<vmem>>, vector<128x128xbf16>
      tpu.vector_store %arg6[%c0_16, %c0_17], %21 {strides = array<i32>} : memref<128x128xbf16, #tpu.memory_space<vmem>>, vector<128x128xbf16>,
    } else {
    }
    return
  }
  func.func @transform_0(%arg0: i32, %arg1: i32, %arg2: i32) -> (i32, i32) {
    %c0_i32 = arith.constant 0 : i32
    return %arg0, %arg2 : i32, i32
  }
  func.func @transform_1(%arg0: i32, %arg1: i32, %arg2: i32) -> (i32, i32) {
    %c0_i32 = arith.constant 0 : i32
    return %arg2, %arg1 : i32, i32
  }
  func.func @transform_2(%arg0: i32, %arg1: i32, %arg2: i32) -> (i32, i32) {
    %c0_i32 = arith.constant 0 : i32
    %c0_i32_0 = arith.constant 0 : i32
    return %c0_i32, %arg1 : i32, i32
  }
  func.func @transform_3(%arg0: i32, %arg1: i32, %arg2: i32) -> (i32, i32) {
    %c0_i32 = arith.constant 0 : i32
    return %arg0, %arg1 : i32, i32
  }
}

module attributes {stable_mosaic.version = 11 : i64} {
  func.func @_matmul_bias_act_kernel(%arg0: i32, %arg1: i32, %arg2: i32, %arg3: memref<64x128xbf16, #tpu.memory_space<vmem>>, %arg4: memref<128x256xbf16, #tpu.memory_space<vmem>>, %arg5: memref<1x256xf32, #tpu.memory_space<vmem>>, %arg6: memref<64x256xbf16, #tpu.memory_space<vmem>>, %arg7: memref<64x256xf32, #tpu.memory_space<vmem>>) attributes {dimension_semantics = [#tpu.dimension_semantics<parallel>, #tpu.dimension_semantics<parallel>, #tpu.dimension_semantics<arbitrary>], iteration_bounds = array<i64: 1, 1, 1>, scalar_prefetch = 0 : i64, scratch_operands = 1 : i64, tpu.core_type = #tpu.core_type<tc>, window_params = [{transform_indices = @transform_0, window_bounds = array<i64: 64, 128>}, {transform_indices = @transform_1, window_bounds = array<i64: 128, 256>}, {transform_indices = @transform_2, window_bounds = array<i64: 1, 256>}, {transform_indices = @transform_3, window_bounds = array<i64: 64, 256>}]} {
    %c0_i32 = arith.constant 0 : i32
    %0 = arith.cmpi eq, %arg2, %c0_i32 : i32
    %1 = arith.extui %0 : i1 to i32
    %c0_i32_0 = arith.constant 0 : i32
    %2 = arith.cmpi ne, %1, %c0_i32_0 : i32
    scf.if %2 {
      %cst_10 = arith.constant 0.000000e+00 : f32
      %12 = vector.broadcast %cst_10 : f32 to vector<64x256xf32>
      %c0_11 = arith.constant 0 : index
      %c0_12 = arith.constant 0 : index
      %13 = vector.load %arg7[%c0_11, %c0_12] : memref<64x256xf32, #tpu.memory_space<vmem>>, vector<64x256xf32>
      tpu.vector_store %arg7[%c0_11, %c0_12], %12 {strides = array<i32>} : memref<64x256xf32, #tpu.memory_space<vmem>>, vector<64x256xf32>,
    } else {
    }
    %c0 = arith.constant 0 : index
    %c0_1 = arith.constant 0 : index
    %3 = vector.load %arg3[%c0, %c0_1] : memref<64x128xbf16, #tpu.memory_space<vmem>>, vector<64x128xbf16>
    %c0_2 = arith.constant 0 : index
    %c0_3 = arith.constant 0 : index
    %4 = vector.load %arg7[%c0_2, %c0_3] : memref<64x256xf32, #tpu.memory_space<vmem>>, vector<64x256xf32>
    %c0_4 = arith.constant 0 : index
    %c0_5 = arith.constant 0 : index
    %5 = vector.load %arg4[%c0_4, %c0_5] : memref<128x256xbf16, #tpu.memory_space<vmem>>, vector<128x256xbf16>
    %cst = arith.constant dense<0.000000e+00> : vector<64x256xf32>
    %6 = tpu.matmul %3, %5, %cst {dimension_numbers = #tpu.dot_dimension_numbers<[1], [0], [0], [1], [0, 0, 1, 1], [], []>} : vector<64x128xbf16>, vector<128x256xbf16>, vector<64x256xf32> -> vector<64x256xf32>
    %7 = arith.addf %4, %6 : vector<64x256xf32>
    %c0_6 = arith.constant 0 : index
    %c0_7 = arith.constant 0 : index
    %8 = vector.load %arg7[%c0_6, %c0_7] : memref<64x256xf32, #tpu.memory_space<vmem>>, vector<64x256xf32>
    tpu.vector_store %arg7[%c0_6, %c0_7], %7 {strides = array<i32>} : memref<64x256xf32, #tpu.memory_space<vmem>>, vector<64x256xf32>,
    %c0_i32_8 = arith.constant 0 : i32
    %9 = arith.cmpi eq, %arg2, %c0_i32_8 : i32
    %10 = arith.extui %9 : i1 to i32
    %c0_i32_9 = arith.constant 0 : i32
    %11 = arith.cmpi ne, %10, %c0_i32_9 : i32
    scf.if %11 {
      %c0_10 = arith.constant 0 : index
      %c0_11 = arith.constant 0 : index
      %12 = vector.load %arg7[%c0_10, %c0_11] : memref<64x256xf32, #tpu.memory_space<vmem>>, vector<64x256xf32>
      %c0_12 = arith.constant 0 : index
      %c0_13 = arith.constant 0 : index
      %13 = vector.load %arg5[%c0_12, %c0_13] : memref<1x256xf32, #tpu.memory_space<vmem>>, vector<1x256xf32>
      %14 = vector.broadcast %13 : vector<1x256xf32> to vector<64x256xf32>
      %15 = arith.addf %12, %14 : vector<64x256xf32>
      %16 = arith.truncf %15 : vector<64x256xf32> to vector<64x256xbf16>
      %c0_14 = arith.constant 0 : index
      %c0_15 = arith.constant 0 : index
      %17 = vector.load %arg6[%c0_14, %c0_15] : memref<64x256xbf16, #tpu.memory_space<vmem>>, vector<64x256xbf16>
      tpu.vector_store %arg6[%c0_14, %c0_15], %16 {strides = array<i32>} : memref<64x256xbf16, #tpu.memory_space<vmem>>, vector<64x256xbf16>,
    } else {
    }
    return
  }
  func.func @transform_0(%arg0: i32, %arg1: i32, %arg2: i32) -> (i32, i32) {
    %c0_i32 = arith.constant 0 : i32
    return %arg0, %arg2 : i32, i32
  }
  func.func @transform_1(%arg0: i32, %arg1: i32, %arg2: i32) -> (i32, i32) {
    %c0_i32 = arith.constant 0 : i32
    return %arg2, %arg1 : i32, i32
  }
  func.func @transform_2(%arg0: i32, %arg1: i32, %arg2: i32) -> (i32, i32) {
    %c0_i32 = arith.constant 0 : i32
    %c0_i32_0 = arith.constant 0 : i32
    return %c0_i32, %arg1 : i32, i32
  }
  func.func @transform_3(%arg0: i32, %arg1: i32, %arg2: i32) -> (i32, i32) {
    %c0_i32 = arith.constant 0 : i32
    return %arg0, %arg1 : i32, i32
  }
}

module attributes {stable_mosaic.version = 11 : i64} {
  func.func @_matmul_bias_act_kernel(%arg0: i32, %arg1: i32, %arg2: i32, %arg3: memref<64x128xbf16, #tpu.memory_space<vmem>>, %arg4: memref<64x128xbf16, #tpu.memory_space<vmem>>, %arg5: memref<128x256xbf16, #tpu.memory_space<vmem>>, %arg6: memref<1x256xf32, #tpu.memory_space<vmem>>, %arg7: memref<64x256xbf16, #tpu.memory_space<vmem>>, %arg8: memref<64x256xf32, #tpu.memory_space<vmem>>) attributes {dimension_semantics = [#tpu.dimension_semantics<parallel>, #tpu.dimension_semantics<parallel>, #tpu.dimension_semantics<arbitrary>], iteration_bounds = array<i64: 1, 1, 1>, scalar_prefetch = 0 : i64, scratch_operands = 1 : i64, tpu.core_type = #tpu.core_type<tc>, window_params = [{transform_indices = @transform_0, window_bounds = array<i64: 64, 128>}, {transform_indices = @transform_1, window_bounds = array<i64: 64, 128>}, {transform_indices = @transform_2, window_bounds = array<i64: 128, 256>}, {transform_indices = @transform_3, window_bounds = array<i64: 1, 256>}, {transform_indices = @transform_4, window_bounds = array<i64: 64, 256>}]} {
    %c0_i32 = arith.constant 0 : i32
    %0 = arith.cmpi eq, %arg2, %c0_i32 : i32
    %1 = arith.extui %0 : i1 to i32
    %c0_i32_0 = arith.constant 0 : i32
    %2 = arith.cmpi ne, %1, %c0_i32_0 : i32
    scf.if %2 {
      %cst_12 = arith.constant 0.000000e+00 : f32
      %14 = vector.broadcast %cst_12 : f32 to vector<64x256xf32>
      %c0_13 = arith.constant 0 : index
      %c0_14 = arith.constant 0 : index
      %15 = vector.load %arg8[%c0_13, %c0_14] : memref<64x256xf32, #tpu.memory_space<vmem>>, vector<64x256xf32>
      tpu.vector_store %arg8[%c0_13, %c0_14], %14 {strides = array<i32>} : memref<64x256xf32, #tpu.memory_space<vmem>>, vector<64x256xf32>,
    } else {
    }
    %c0 = arith.constant 0 : index
    %c0_1 = arith.constant 0 : index
    %3 = vector.load %arg3[%c0, %c0_1] : memref<64x128xbf16, #tpu.memory_space<vmem>>, vector<64x128xbf16>
    %c0_2 = arith.constant 0 : index
    %c0_3 = arith.constant 0 : index
    %4 = vector.load %arg4[%c0_2, %c0_3] : memref<64x128xbf16, #tpu.memory_space<vmem>>, vector<64x128xbf16>
    %5 = arith.addf %3, %4 : vector<64x128xbf16>
    %c0_4 = arith.constant 0 : index
    %c0_5 = arith.constant 0 : index
    %6 = vector.load %arg8[%c0_4, %c0_5] : memref<64x256xf32, #tpu.memory_space<vmem>>, vector<64x256xf32>
    %c0_6 = arith.constant 0 : index
    %c0_7 = arith.constant 0 : index
    %7 = vector.load %arg5[%c0_6, %c0_7] : memref<128x256xbf16, #tpu.memory_space<vmem>>, vector<128x256xbf16>
    %cst = arith.constant dense<0.000000e+00> : vector<64x256xf32>
    %8 = tpu.matmul %5, %7, %cst {dimension_numbers = #tpu.dot_dimension_numbers<[1], [0], [0], [1], [0, 0, 1, 1], [], []>} : vector<64x128xbf16>, vector<128x256xbf16>, vector<64x256xf32> -> vector<64x256xf32>
    %9 = arith.addf %6, %8 : vector<64x256xf32>
    %c0_8 = arith.constant 0 : index
    %c0_9 = arith.constant 0 : index
    %10 = vector.load %arg8[%c0_8, %c0_9] : memref<64x256xf32, #tpu.memory_space<vmem>>, vector<64x256xf32>
    tpu.vector_store %arg8[%c0_8, %c0_9], %9 {strides = array<i32>} : memref<64x256xf32, #tpu.memory_space<vmem>>, vector<64x256xf32>,
    %c0_i32_10 = arith.constant 0 : i32
    %11 = arith.cmpi eq, %arg2, %c0_i32_10 : i32
    %12 = arith.extui %11 : i1 to i32
    %c0_i32_11 = arith.constant 0 : i32
    %13 = arith.cmpi ne, %12, %c0_i32_11 : i32
    scf.if %13 {
      %c0_12 = arith.constant 0 : index
      %c0_13 = arith.constant 0 : index
      %14 = vector.load %arg8[%c0_12, %c0_13] : memref<64x256xf32, #tpu.memory_space<vmem>>, vector<64x256xf32>
      %c0_14 = arith.constant 0 : index
      %c0_15 = arith.constant 0 : index
      %15 = vector.load %arg6[%c0_14, %c0_15] : memref<1x256xf32, #tpu.memory_space<vmem>>, vector<1x256xf32>
      %16 = vector.broadcast %15 : vector<1x256xf32> to vector<64x256xf32>
      %17 = arith.addf %14, %16 : vector<64x256xf32>
      %18 = arith.truncf %17 : vector<64x256xf32> to vector<64x256xbf16>
      %c0_16 = arith.constant 0 : index
      %c0_17 = arith.constant 0 : index
      %19 = vector.load %arg7[%c0_16, %c0_17] : memref<64x256xbf16, #tpu.memory_space<vmem>>, vector<64x256xbf16>
      tpu.vector_store %arg7[%c0_16, %c0_17], %18 {strides = array<i32>} : memref<64x256xbf16, #tpu.memory_space<vmem>>, vector<64x256xbf16>,
    } else {
    }
    return
  }
  func.func @transform_0(%arg0: i32, %arg1: i32, %arg2: i32) -> (i32, i32) {
    %c0_i32 = arith.constant 0 : i32
    return %arg0, %arg2 : i32, i32
  }
  func.func @transform_1(%arg0: i32, %arg1: i32, %arg2: i32) -> (i32, i32) {
    %c0_i32 = arith.constant 0 : i32
    return %arg0, %arg2 : i32, i32
  }
  func.func @transform_2(%arg0: i32, %arg1: i32, %arg2: i32) -> (i32, i32) {
    %c0_i32 = arith.constant 0 : i32
    return %arg2, %arg1 : i32, i32
  }
  func.func @transform_3(%arg0: i32, %arg1: i32, %arg2: i32) -> (i32, i32) {
    %c0_i32 = arith.constant 0 : i32
    %c0_i32_0 = arith.constant 0 : i32
    return %c0_i32, %arg1 : i32, i32
  }
  func.func @transform_4(%arg0: i32, %arg1: i32, %arg2: i32) -> (i32, i32) {
    %c0_i32 = arith.constant 0 : i32
    return %arg0, %arg1 : i32, i32
  }
}

module attributes {stable_mosaic.version = 11 : i64} {
  func.func @_birnn_kernel(%arg0: i32, %arg1: memref<8x8x128xbf16, #tpu.memory_space<vmem>>, %arg2: memref<8x8x128xbf16, #tpu.memory_space<vmem>>, %arg3: memref<128x128xbf16, #tpu.memory_space<vmem>>, %arg4: memref<128x128xbf16, #tpu.memory_space<vmem>>, %arg5: memref<1x128xf32, #tpu.memory_space<vmem>>, %arg6: memref<1x128xf32, #tpu.memory_space<vmem>>, %arg7: memref<8x8x128xbf16, #tpu.memory_space<vmem>>, %arg8: memref<8x8x128xbf16, #tpu.memory_space<vmem>>, %arg9: memref<8x128xf32, #tpu.memory_space<vmem>>, %arg10: memref<8x128xf32, #tpu.memory_space<vmem>>) attributes {dimension_semantics = [#tpu.dimension_semantics<arbitrary>], iteration_bounds = array<i64: 1>, scalar_prefetch = 0 : i64, scratch_operands = 2 : i64, tpu.core_type = #tpu.core_type<tc>, window_params = [{transform_indices = @transform_0, window_bounds = array<i64: 8, 8, 128>}, {transform_indices = @transform_1, window_bounds = array<i64: 8, 8, 128>}, {pipeline_mode = #tpu.pipeline_mode<synchronous>, transform_indices = @transform_2, window_bounds = array<i64: 128, 128>}, {pipeline_mode = #tpu.pipeline_mode<synchronous>, transform_indices = @transform_3, window_bounds = array<i64: 128, 128>}, {pipeline_mode = #tpu.pipeline_mode<synchronous>, transform_indices = @transform_4, window_bounds = array<i64: 1, 128>}, {pipeline_mode = #tpu.pipeline_mode<synchronous>, transform_indices = @transform_5, window_bounds = array<i64: 1, 128>}, {transform_indices = @transform_6, window_bounds = array<i64: 8, 8, 128>}, {transform_indices = @transform_7, window_bounds = array<i64: 8, 8, 128>}]} {
    %c0_i32 = arith.constant 0 : i32
    %0 = arith.cmpi eq, %arg0, %c0_i32 : i32
    %1 = arith.extui %0 : i1 to i32
    %c0_i32_0 = arith.constant 0 : i32
    %2 = arith.cmpi ne, %1, %c0_i32_0 : i32
    scf.if %2 {
      %cst_176 = arith.constant 0.000000e+00 : f32
      %291 = vector.broadcast %cst_176 : f32 to vector<8x128xf32>
      %c0_177 = arith.constant 0 : index
      %c0_178 = arith.constant 0 : index
      %292 = vector.load %arg9[%c0_177, %c0_178] : memref<8x128xf32, #tpu.memory_space<vmem>>, vector<8x128xf32>
      tpu.vector_store %arg9[%c0_177, %c0_178], %291 {strides = array<i32>} : memref<8x128xf32, #tpu.memory_space<vmem>>, vector<8x128xf32>,
      %cst_179 = arith.constant 0.000000e+00 : f32
      %293 = vector.broadcast %cst_179 : f32 to vector<8x128xf32>
      %c0_180 = arith.constant 0 : index
      %c0_181 = arith.constant 0 : index
      %294 = vector.load %arg10[%c0_180, %c0_181] : memref<8x128xf32, #tpu.memory_space<vmem>>, vector<8x128xf32>
      tpu.vector_store %arg10[%c0_180, %c0_181], %293 {strides = array<i32>} : memref<8x128xf32, #tpu.memory_space<vmem>>, vector<8x128xf32>,
    } else {
    }
    %c0 = arith.constant 0 : index
    %c0_1 = arith.constant 0 : index
    %3 = vector.load %arg3[%c0, %c0_1] : memref<128x128xbf16, #tpu.memory_space<vmem>>, vector<128x128xbf16>
    %c0_2 = arith.constant 0 : index
    %c0_3 = arith.constant 0 : index
    %4 = vector.load %arg4[%c0_2, %c0_3] : memref<128x128xbf16, #tpu.memory_space<vmem>>, vector<128x128xbf16>
    %c0_4 = arith.constant 0 : index
    %c0_5 = arith.constant 0 : index
    %5 = vector.load %arg5[%c0_4, %c0_5] : memref<1x128xf32, #tpu.memory_space<vmem>>, vector<1x128xf32>
    %6 = vector.shape_cast %5 : vector<1x128xf32> to vector<1x128xf32>
    %7 = vector.broadcast %6 : vector<1x128xf32> to vector<8x128xf32>
    %c0_6 = arith.constant 0 : index
    %c0_7 = arith.constant 0 : index
    %8 = vector.load %arg6[%c0_6, %c0_7] : memref<1x128xf32, #tpu.memory_space<vmem>>, vector<1x128xf32>
    %9 = vector.shape_cast %8 : vector<1x128xf32> to vector<1x128xf32>
    %10 = vector.broadcast %9 : vector<1x128xf32> to vector<8x128xf32>
    %c0_i32_8 = arith.constant 0 : i32
    %11 = arith.index_cast %c0_i32_8 : i32 to index
    %c0_9 = arith.constant 0 : index
    %c0_10 = arith.constant 0 : index
    %12 = vector.load %arg1[%11, %c0_9, %c0_10] : memref<8x8x128xbf16, #tpu.memory_space<vmem>>, vector<1x8x128xbf16>
    %13 = vector.shape_cast %12 : vector<1x8x128xbf16> to vector<8x128xbf16>
    %14 = arith.extf %13 : vector<8x128xbf16> to vector<8x128xf32>
    %c0_11 = arith.constant 0 : index
    %c0_12 = arith.constant 0 : index
    %15 = vector.load %arg9[%c0_11, %c0_12] : memref<8x128xf32, #tpu.memory_space<vmem>>, vector<8x128xf32>
    %16 = arith.truncf %15 : vector<8x128xf32> to vector<8x128xbf16>
    %cst = arith.constant dense<0.000000e+00> : vector<8x128xf32>
    %17 = tpu.matmul %16, %3, %cst {dimension_numbers = #tpu.dot_dimension_numbers<[1], [0], [0], [1], [0, 0, 1, 1], [], []>} : vector<8x128xbf16>, vector<128x128xbf16>, vector<8x128xf32> -> vector<8x128xf32>
    %18 = arith.addf %14, %17 : vector<8x128xf32>
    %19 = arith.addf %18, %7 : vector<8x128xf32>
    %cst_13 = arith.constant 0.000000e+00 : f32
    %20 = vector.broadcast %cst_13 : f32 to vector<8x128xf32>
    %21 = arith.maximumf %19, %20 : vector<8x128xf32>
    %c0_14 = arith.constant 0 : index
    %c0_15 = arith.constant 0 : index
    %22 = vector.load %arg9[%c0_14, %c0_15] : memref<8x128xf32, #tpu.memory_space<vmem>>, vector<8x128xf32>
    tpu.vector_store %arg9[%c0_14, %c0_15], %21 {strides = array<i32>} : memref<8x128xf32, #tpu.memory_space<vmem>>, vector<8x128xf32>,
    %23 = arith.truncf %21 : vector<8x128xf32> to vector<8x128xbf16>
    %24 = arith.index_cast %c0_i32_8 : i32 to index
    %c0_16 = arith.constant 0 : index
    %c0_17 = arith.constant 0 : index
    %25 = vector.load %arg7[%24, %c0_16, %c0_17] : memref<8x8x128xbf16, #tpu.memory_space<vmem>>, vector<1x8x128xbf16>
    %26 = vector.shape_cast %25 : vector<1x8x128xbf16> to vector<8x128xbf16>
    %27 = vector.shape_cast %23 : vector<8x128xbf16> to vector<1x8x128xbf16>
    tpu.vector_store %arg7[%24, %c0_16, %c0_17], %27 {strides = array<i32>} : memref<8x8x128xbf16, #tpu.memory_space<vmem>>, vector<1x8x128xbf16>,
    %c7_i32 = arith.constant 7 : i32
    %28 = arith.subi %c7_i32, %c0_i32_8 : i32
    %29 = arith.index_cast %28 : i32 to index
    %c0_18 = arith.constant 0 : index
    %c0_19 = arith.constant 0 : index
    %30 = vector.load %arg2[%29, %c0_18, %c0_19] : memref<8x8x128xbf16, #tpu.memory_space<vmem>>, vector<1x8x128xbf16>
    %31 = vector.shape_cast %30 : vector<1x8x128xbf16> to vector<8x128xbf16>
    %32 = arith.extf %31 : vector<8x128xbf16> to vector<8x128xf32>
    %c0_20 = arith.constant 0 : index
    %c0_21 = arith.constant 0 : index
    %33 = vector.load %arg10[%c0_20, %c0_21] : memref<8x128xf32, #tpu.memory_space<vmem>>, vector<8x128xf32>
    %34 = arith.truncf %33 : vector<8x128xf32> to vector<8x128xbf16>
    %cst_22 = arith.constant dense<0.000000e+00> : vector<8x128xf32>
    %35 = tpu.matmul %34, %4, %cst_22 {dimension_numbers = #tpu.dot_dimension_numbers<[1], [0], [0], [1], [0, 0, 1, 1], [], []>} : vector<8x128xbf16>, vector<128x128xbf16>, vector<8x128xf32> -> vector<8x128xf32>
    %36 = arith.addf %32, %35 : vector<8x128xf32>
    %37 = arith.addf %36, %10 : vector<8x128xf32>
    %cst_23 = arith.constant 0.000000e+00 : f32
    %38 = vector.broadcast %cst_23 : f32 to vector<8x128xf32>
    %39 = arith.maximumf %37, %38 : vector<8x128xf32>
    %c0_24 = arith.constant 0 : index
    %c0_25 = arith.constant 0 : index
    %40 = vector.load %arg10[%c0_24, %c0_25] : memref<8x128xf32, #tpu.memory_space<vmem>>, vector<8x128xf32>
    tpu.vector_store %arg10[%c0_24, %c0_25], %39 {strides = array<i32>} : memref<8x128xf32, #tpu.memory_space<vmem>>, vector<8x128xf32>,
    %41 = arith.truncf %39 : vector<8x128xf32> to vector<8x128xbf16>
    %42 = arith.index_cast %28 : i32 to index
    %c0_26 = arith.constant 0 : index
    %c0_27 = arith.constant 0 : index
    %43 = vector.load %arg8[%42, %c0_26, %c0_27] : memref<8x8x128xbf16, #tpu.memory_space<vmem>>, vector<1x8x128xbf16>
    %44 = vector.shape_cast %43 : vector<1x8x128xbf16> to vector<8x128xbf16>
    %45 = vector.shape_cast %41 : vector<8x128xbf16> to vector<1x8x128xbf16>
    tpu.vector_store %arg8[%42, %c0_26, %c0_27], %45 {strides = array<i32>} : memref<8x8x128xbf16, #tpu.memory_space<vmem>>, vector<1x8x128xbf16>,
    %c1_i32 = arith.constant 1 : i32
    %46 = arith.index_cast %c1_i32 : i32 to index
    %c0_28 = arith.constant 0 : index
    %c0_29 = arith.constant 0 : index
    %47 = vector.load %arg1[%46, %c0_28, %c0_29] : memref<8x8x128xbf16, #tpu.memory_space<vmem>>, vector<1x8x128xbf16>
    %48 = vector.shape_cast %47 : vector<1x8x128xbf16> to vector<8x128xbf16>
    %49 = arith.extf %48 : vector<8x128xbf16> to vector<8x128xf32>
    %c0_30 = arith.constant 0 : index
    %c0_31 = arith.constant 0 : index
    %50 = vector.load %arg9[%c0_30, %c0_31] : memref<8x128xf32, #tpu.memory_space<vmem>>, vector<8x128xf32>
    %51 = arith.truncf %50 : vector<8x128xf32> to vector<8x128xbf16>
    %cst_32 = arith.constant dense<0.000000e+00> : vector<8x128xf32>
    %52 = tpu.matmul %51, %3, %cst_32 {dimension_numbers = #tpu.dot_dimension_numbers<[1], [0], [0], [1], [0, 0, 1, 1], [], []>} : vector<8x128xbf16>, vector<128x128xbf16>, vector<8x128xf32> -> vector<8x128xf32>
    %53 = arith.addf %49, %52 : vector<8x128xf32>
    %54 = arith.addf %53, %7 : vector<8x128xf32>
    %cst_33 = arith.constant 0.000000e+00 : f32
    %55 = vector.broadcast %cst_33 : f32 to vector<8x128xf32>
    %56 = arith.maximumf %54, %55 : vector<8x128xf32>
    %c0_34 = arith.constant 0 : index
    %c0_35 = arith.constant 0 : index
    %57 = vector.load %arg9[%c0_34, %c0_35] : memref<8x128xf32, #tpu.memory_space<vmem>>, vector<8x128xf32>
    tpu.vector_store %arg9[%c0_34, %c0_35], %56 {strides = array<i32>} : memref<8x128xf32, #tpu.memory_space<vmem>>, vector<8x128xf32>,
    %58 = arith.truncf %56 : vector<8x128xf32> to vector<8x128xbf16>
    %59 = arith.index_cast %c1_i32 : i32 to index
    %c0_36 = arith.constant 0 : index
    %c0_37 = arith.constant 0 : index
    %60 = vector.load %arg7[%59, %c0_36, %c0_37] : memref<8x8x128xbf16, #tpu.memory_space<vmem>>, vector<1x8x128xbf16>
    %61 = vector.shape_cast %60 : vector<1x8x128xbf16> to vector<8x128xbf16>
    %62 = vector.shape_cast %58 : vector<8x128xbf16> to vector<1x8x128xbf16>
    tpu.vector_store %arg7[%59, %c0_36, %c0_37], %62 {strides = array<i32>} : memref<8x8x128xbf16, #tpu.memory_space<vmem>>, vector<1x8x128xbf16>,
    %c7_i32_38 = arith.constant 7 : i32
    %63 = arith.subi %c7_i32_38, %c1_i32 : i32
    %64 = arith.index_cast %63 : i32 to index
    %c0_39 = arith.constant 0 : index
    %c0_40 = arith.constant 0 : index
    %65 = vector.load %arg2[%64, %c0_39, %c0_40] : memref<8x8x128xbf16, #tpu.memory_space<vmem>>, vector<1x8x128xbf16>
    %66 = vector.shape_cast %65 : vector<1x8x128xbf16> to vector<8x128xbf16>
    %67 = arith.extf %66 : vector<8x128xbf16> to vector<8x128xf32>
    %c0_41 = arith.constant 0 : index
    %c0_42 = arith.constant 0 : index
    %68 = vector.load %arg10[%c0_41, %c0_42] : memref<8x128xf32, #tpu.memory_space<vmem>>, vector<8x128xf32>
    %69 = arith.truncf %68 : vector<8x128xf32> to vector<8x128xbf16>
    %cst_43 = arith.constant dense<0.000000e+00> : vector<8x128xf32>
    %70 = tpu.matmul %69, %4, %cst_43 {dimension_numbers = #tpu.dot_dimension_numbers<[1], [0], [0], [1], [0, 0, 1, 1], [], []>} : vector<8x128xbf16>, vector<128x128xbf16>, vector<8x128xf32> -> vector<8x128xf32>
    %71 = arith.addf %67, %70 : vector<8x128xf32>
    %72 = arith.addf %71, %10 : vector<8x128xf32>
    %cst_44 = arith.constant 0.000000e+00 : f32
    %73 = vector.broadcast %cst_44 : f32 to vector<8x128xf32>
    %74 = arith.maximumf %72, %73 : vector<8x128xf32>
    %c0_45 = arith.constant 0 : index
    %c0_46 = arith.constant 0 : index
    %75 = vector.load %arg10[%c0_45, %c0_46] : memref<8x128xf32, #tpu.memory_space<vmem>>, vector<8x128xf32>
    tpu.vector_store %arg10[%c0_45, %c0_46], %74 {strides = array<i32>} : memref<8x128xf32, #tpu.memory_space<vmem>>, vector<8x128xf32>,
    %76 = arith.truncf %74 : vector<8x128xf32> to vector<8x128xbf16>
    %77 = arith.index_cast %63 : i32 to index
    %c0_47 = arith.constant 0 : index
    %c0_48 = arith.constant 0 : index
    %78 = vector.load %arg8[%77, %c0_47, %c0_48] : memref<8x8x128xbf16, #tpu.memory_space<vmem>>, vector<1x8x128xbf16>
    %79 = vector.shape_cast %78 : vector<1x8x128xbf16> to vector<8x128xbf16>
    %80 = vector.shape_cast %76 : vector<8x128xbf16> to vector<1x8x128xbf16>
    tpu.vector_store %arg8[%77, %c0_47, %c0_48], %80 {strides = array<i32>} : memref<8x8x128xbf16, #tpu.memory_space<vmem>>, vector<1x8x128xbf16>,
    %c2_i32 = arith.constant 2 : i32
    %81 = arith.index_cast %c2_i32 : i32 to index
    %c0_49 = arith.constant 0 : index
    %c0_50 = arith.constant 0 : index
    %82 = vector.load %arg1[%81, %c0_49, %c0_50] : memref<8x8x128xbf16, #tpu.memory_space<vmem>>, vector<1x8x128xbf16>
    %83 = vector.shape_cast %82 : vector<1x8x128xbf16> to vector<8x128xbf16>
    %84 = arith.extf %83 : vector<8x128xbf16> to vector<8x128xf32>
    %c0_51 = arith.constant 0 : index
    %c0_52 = arith.constant 0 : index
    %85 = vector.load %arg9[%c0_51, %c0_52] : memref<8x128xf32, #tpu.memory_space<vmem>>, vector<8x128xf32>
    %86 = arith.truncf %85 : vector<8x128xf32> to vector<8x128xbf16>
    %cst_53 = arith.constant dense<0.000000e+00> : vector<8x128xf32>
    %87 = tpu.matmul %86, %3, %cst_53 {dimension_numbers = #tpu.dot_dimension_numbers<[1], [0], [0], [1], [0, 0, 1, 1], [], []>} : vector<8x128xbf16>, vector<128x128xbf16>, vector<8x128xf32> -> vector<8x128xf32>
    %88 = arith.addf %84, %87 : vector<8x128xf32>
    %89 = arith.addf %88, %7 : vector<8x128xf32>
    %cst_54 = arith.constant 0.000000e+00 : f32
    %90 = vector.broadcast %cst_54 : f32 to vector<8x128xf32>
    %91 = arith.maximumf %89, %90 : vector<8x128xf32>
    %c0_55 = arith.constant 0 : index
    %c0_56 = arith.constant 0 : index
    %92 = vector.load %arg9[%c0_55, %c0_56] : memref<8x128xf32, #tpu.memory_space<vmem>>, vector<8x128xf32>
    tpu.vector_store %arg9[%c0_55, %c0_56], %91 {strides = array<i32>} : memref<8x128xf32, #tpu.memory_space<vmem>>, vector<8x128xf32>,
    %93 = arith.truncf %91 : vector<8x128xf32> to vector<8x128xbf16>
    %94 = arith.index_cast %c2_i32 : i32 to index
    %c0_57 = arith.constant 0 : index
    %c0_58 = arith.constant 0 : index
    %95 = vector.load %arg7[%94, %c0_57, %c0_58] : memref<8x8x128xbf16, #tpu.memory_space<vmem>>, vector<1x8x128xbf16>
    %96 = vector.shape_cast %95 : vector<1x8x128xbf16> to vector<8x128xbf16>
    %97 = vector.shape_cast %93 : vector<8x128xbf16> to vector<1x8x128xbf16>
    tpu.vector_store %arg7[%94, %c0_57, %c0_58], %97 {strides = array<i32>} : memref<8x8x128xbf16, #tpu.memory_space<vmem>>, vector<1x8x128xbf16>,
    %c7_i32_59 = arith.constant 7 : i32
    %98 = arith.subi %c7_i32_59, %c2_i32 : i32
    %99 = arith.index_cast %98 : i32 to index
    %c0_60 = arith.constant 0 : index
    %c0_61 = arith.constant 0 : index
    %100 = vector.load %arg2[%99, %c0_60, %c0_61] : memref<8x8x128xbf16, #tpu.memory_space<vmem>>, vector<1x8x128xbf16>
    %101 = vector.shape_cast %100 : vector<1x8x128xbf16> to vector<8x128xbf16>
    %102 = arith.extf %101 : vector<8x128xbf16> to vector<8x128xf32>
    %c0_62 = arith.constant 0 : index
    %c0_63 = arith.constant 0 : index
    %103 = vector.load %arg10[%c0_62, %c0_63] : memref<8x128xf32, #tpu.memory_space<vmem>>, vector<8x128xf32>
    %104 = arith.truncf %103 : vector<8x128xf32> to vector<8x128xbf16>
    %cst_64 = arith.constant dense<0.000000e+00> : vector<8x128xf32>
    %105 = tpu.matmul %104, %4, %cst_64 {dimension_numbers = #tpu.dot_dimension_numbers<[1], [0], [0], [1], [0, 0, 1, 1], [], []>} : vector<8x128xbf16>, vector<128x128xbf16>, vector<8x128xf32> -> vector<8x128xf32>
    %106 = arith.addf %102, %105 : vector<8x128xf32>
    %107 = arith.addf %106, %10 : vector<8x128xf32>
    %cst_65 = arith.constant 0.000000e+00 : f32
    %108 = vector.broadcast %cst_65 : f32 to vector<8x128xf32>
    %109 = arith.maximumf %107, %108 : vector<8x128xf32>
    %c0_66 = arith.constant 0 : index
    %c0_67 = arith.constant 0 : index
    %110 = vector.load %arg10[%c0_66, %c0_67] : memref<8x128xf32, #tpu.memory_space<vmem>>, vector<8x128xf32>
    tpu.vector_store %arg10[%c0_66, %c0_67], %109 {strides = array<i32>} : memref<8x128xf32, #tpu.memory_space<vmem>>, vector<8x128xf32>,
    %111 = arith.truncf %109 : vector<8x128xf32> to vector<8x128xbf16>
    %112 = arith.index_cast %98 : i32 to index
    %c0_68 = arith.constant 0 : index
    %c0_69 = arith.constant 0 : index
    %113 = vector.load %arg8[%112, %c0_68, %c0_69] : memref<8x8x128xbf16, #tpu.memory_space<vmem>>, vector<1x8x128xbf16>
    %114 = vector.shape_cast %113 : vector<1x8x128xbf16> to vector<8x128xbf16>
    %115 = vector.shape_cast %111 : vector<8x128xbf16> to vector<1x8x128xbf16>
    tpu.vector_store %arg8[%112, %c0_68, %c0_69], %115 {strides = array<i32>} : memref<8x8x128xbf16, #tpu.memory_space<vmem>>, vector<1x8x128xbf16>,
    %c3_i32 = arith.constant 3 : i32
    %116 = arith.index_cast %c3_i32 : i32 to index
    %c0_70 = arith.constant 0 : index
    %c0_71 = arith.constant 0 : index
    %117 = vector.load %arg1[%116, %c0_70, %c0_71] : memref<8x8x128xbf16, #tpu.memory_space<vmem>>, vector<1x8x128xbf16>
    %118 = vector.shape_cast %117 : vector<1x8x128xbf16> to vector<8x128xbf16>
    %119 = arith.extf %118 : vector<8x128xbf16> to vector<8x128xf32>
    %c0_72 = arith.constant 0 : index
    %c0_73 = arith.constant 0 : index
    %120 = vector.load %arg9[%c0_72, %c0_73] : memref<8x128xf32, #tpu.memory_space<vmem>>, vector<8x128xf32>
    %121 = arith.truncf %120 : vector<8x128xf32> to vector<8x128xbf16>
    %cst_74 = arith.constant dense<0.000000e+00> : vector<8x128xf32>
    %122 = tpu.matmul %121, %3, %cst_74 {dimension_numbers = #tpu.dot_dimension_numbers<[1], [0], [0], [1], [0, 0, 1, 1], [], []>} : vector<8x128xbf16>, vector<128x128xbf16>, vector<8x128xf32> -> vector<8x128xf32>
    %123 = arith.addf %119, %122 : vector<8x128xf32>
    %124 = arith.addf %123, %7 : vector<8x128xf32>
    %cst_75 = arith.constant 0.000000e+00 : f32
    %125 = vector.broadcast %cst_75 : f32 to vector<8x128xf32>
    %126 = arith.maximumf %124, %125 : vector<8x128xf32>
    %c0_76 = arith.constant 0 : index
    %c0_77 = arith.constant 0 : index
    %127 = vector.load %arg9[%c0_76, %c0_77] : memref<8x128xf32, #tpu.memory_space<vmem>>, vector<8x128xf32>
    tpu.vector_store %arg9[%c0_76, %c0_77], %126 {strides = array<i32>} : memref<8x128xf32, #tpu.memory_space<vmem>>, vector<8x128xf32>,
    %128 = arith.truncf %126 : vector<8x128xf32> to vector<8x128xbf16>
    %129 = arith.index_cast %c3_i32 : i32 to index
    %c0_78 = arith.constant 0 : index
    %c0_79 = arith.constant 0 : index
    %130 = vector.load %arg7[%129, %c0_78, %c0_79] : memref<8x8x128xbf16, #tpu.memory_space<vmem>>, vector<1x8x128xbf16>
    %131 = vector.shape_cast %130 : vector<1x8x128xbf16> to vector<8x128xbf16>
    %132 = vector.shape_cast %128 : vector<8x128xbf16> to vector<1x8x128xbf16>
    tpu.vector_store %arg7[%129, %c0_78, %c0_79], %132 {strides = array<i32>} : memref<8x8x128xbf16, #tpu.memory_space<vmem>>, vector<1x8x128xbf16>,
    %c7_i32_80 = arith.constant 7 : i32
    %133 = arith.subi %c7_i32_80, %c3_i32 : i32
    %134 = arith.index_cast %133 : i32 to index
    %c0_81 = arith.constant 0 : index
    %c0_82 = arith.constant 0 : index
    %135 = vector.load %arg2[%134, %c0_81, %c0_82] : memref<8x8x128xbf16, #tpu.memory_space<vmem>>, vector<1x8x128xbf16>
    %136 = vector.shape_cast %135 : vector<1x8x128xbf16> to vector<8x128xbf16>
    %137 = arith.extf %136 : vector<8x128xbf16> to vector<8x128xf32>
    %c0_83 = arith.constant 0 : index
    %c0_84 = arith.constant 0 : index
    %138 = vector.load %arg10[%c0_83, %c0_84] : memref<8x128xf32, #tpu.memory_space<vmem>>, vector<8x128xf32>
    %139 = arith.truncf %138 : vector<8x128xf32> to vector<8x128xbf16>
    %cst_85 = arith.constant dense<0.000000e+00> : vector<8x128xf32>
    %140 = tpu.matmul %139, %4, %cst_85 {dimension_numbers = #tpu.dot_dimension_numbers<[1], [0], [0], [1], [0, 0, 1, 1], [], []>} : vector<8x128xbf16>, vector<128x128xbf16>, vector<8x128xf32> -> vector<8x128xf32>
    %141 = arith.addf %137, %140 : vector<8x128xf32>
    %142 = arith.addf %141, %10 : vector<8x128xf32>
    %cst_86 = arith.constant 0.000000e+00 : f32
    %143 = vector.broadcast %cst_86 : f32 to vector<8x128xf32>
    %144 = arith.maximumf %142, %143 : vector<8x128xf32>
    %c0_87 = arith.constant 0 : index
    %c0_88 = arith.constant 0 : index
    %145 = vector.load %arg10[%c0_87, %c0_88] : memref<8x128xf32, #tpu.memory_space<vmem>>, vector<8x128xf32>
    tpu.vector_store %arg10[%c0_87, %c0_88], %144 {strides = array<i32>} : memref<8x128xf32, #tpu.memory_space<vmem>>, vector<8x128xf32>,
    %146 = arith.truncf %144 : vector<8x128xf32> to vector<8x128xbf16>
    %147 = arith.index_cast %133 : i32 to index
    %c0_89 = arith.constant 0 : index
    %c0_90 = arith.constant 0 : index
    %148 = vector.load %arg8[%147, %c0_89, %c0_90] : memref<8x8x128xbf16, #tpu.memory_space<vmem>>, vector<1x8x128xbf16>
    %149 = vector.shape_cast %148 : vector<1x8x128xbf16> to vector<8x128xbf16>
    %150 = vector.shape_cast %146 : vector<8x128xbf16> to vector<1x8x128xbf16>
    tpu.vector_store %arg8[%147, %c0_89, %c0_90], %150 {strides = array<i32>} : memref<8x8x128xbf16, #tpu.memory_space<vmem>>, vector<1x8x128xbf16>,
    %c4_i32 = arith.constant 4 : i32
    %151 = arith.index_cast %c4_i32 : i32 to index
    %c0_91 = arith.constant 0 : index
    %c0_92 = arith.constant 0 : index
    %152 = vector.load %arg1[%151, %c0_91, %c0_92] : memref<8x8x128xbf16, #tpu.memory_space<vmem>>, vector<1x8x128xbf16>
    %153 = vector.shape_cast %152 : vector<1x8x128xbf16> to vector<8x128xbf16>
    %154 = arith.extf %153 : vector<8x128xbf16> to vector<8x128xf32>
    %c0_93 = arith.constant 0 : index
    %c0_94 = arith.constant 0 : index
    %155 = vector.load %arg9[%c0_93, %c0_94] : memref<8x128xf32, #tpu.memory_space<vmem>>, vector<8x128xf32>
    %156 = arith.truncf %155 : vector<8x128xf32> to vector<8x128xbf16>
    %cst_95 = arith.constant dense<0.000000e+00> : vector<8x128xf32>
    %157 = tpu.matmul %156, %3, %cst_95 {dimension_numbers = #tpu.dot_dimension_numbers<[1], [0], [0], [1], [0, 0, 1, 1], [], []>} : vector<8x128xbf16>, vector<128x128xbf16>, vector<8x128xf32> -> vector<8x128xf32>
    %158 = arith.addf %154, %157 : vector<8x128xf32>
    %159 = arith.addf %158, %7 : vector<8x128xf32>
    %cst_96 = arith.constant 0.000000e+00 : f32
    %160 = vector.broadcast %cst_96 : f32 to vector<8x128xf32>
    %161 = arith.maximumf %159, %160 : vector<8x128xf32>
    %c0_97 = arith.constant 0 : index
    %c0_98 = arith.constant 0 : index
    %162 = vector.load %arg9[%c0_97, %c0_98] : memref<8x128xf32, #tpu.memory_space<vmem>>, vector<8x128xf32>
    tpu.vector_store %arg9[%c0_97, %c0_98], %161 {strides = array<i32>} : memref<8x128xf32, #tpu.memory_space<vmem>>, vector<8x128xf32>,
    %163 = arith.truncf %161 : vector<8x128xf32> to vector<8x128xbf16>
    %164 = arith.index_cast %c4_i32 : i32 to index
    %c0_99 = arith.constant 0 : index
    %c0_100 = arith.constant 0 : index
    %165 = vector.load %arg7[%164, %c0_99, %c0_100] : memref<8x8x128xbf16, #tpu.memory_space<vmem>>, vector<1x8x128xbf16>
    %166 = vector.shape_cast %165 : vector<1x8x128xbf16> to vector<8x128xbf16>
    %167 = vector.shape_cast %163 : vector<8x128xbf16> to vector<1x8x128xbf16>
    tpu.vector_store %arg7[%164, %c0_99, %c0_100], %167 {strides = array<i32>} : memref<8x8x128xbf16, #tpu.memory_space<vmem>>, vector<1x8x128xbf16>,
    %c7_i32_101 = arith.constant 7 : i32
    %168 = arith.subi %c7_i32_101, %c4_i32 : i32
    %169 = arith.index_cast %168 : i32 to index
    %c0_102 = arith.constant 0 : index
    %c0_103 = arith.constant 0 : index
    %170 = vector.load %arg2[%169, %c0_102, %c0_103] : memref<8x8x128xbf16, #tpu.memory_space<vmem>>, vector<1x8x128xbf16>
    %171 = vector.shape_cast %170 : vector<1x8x128xbf16> to vector<8x128xbf16>
    %172 = arith.extf %171 : vector<8x128xbf16> to vector<8x128xf32>
    %c0_104 = arith.constant 0 : index
    %c0_105 = arith.constant 0 : index
    %173 = vector.load %arg10[%c0_104, %c0_105] : memref<8x128xf32, #tpu.memory_space<vmem>>, vector<8x128xf32>
    %174 = arith.truncf %173 : vector<8x128xf32> to vector<8x128xbf16>
    %cst_106 = arith.constant dense<0.000000e+00> : vector<8x128xf32>
    %175 = tpu.matmul %174, %4, %cst_106 {dimension_numbers = #tpu.dot_dimension_numbers<[1], [0], [0], [1], [0, 0, 1, 1], [], []>} : vector<8x128xbf16>, vector<128x128xbf16>, vector<8x128xf32> -> vector<8x128xf32>
    %176 = arith.addf %172, %175 : vector<8x128xf32>
    %177 = arith.addf %176, %10 : vector<8x128xf32>
    %cst_107 = arith.constant 0.000000e+00 : f32
    %178 = vector.broadcast %cst_107 : f32 to vector<8x128xf32>
    %179 = arith.maximumf %177, %178 : vector<8x128xf32>
    %c0_108 = arith.constant 0 : index
    %c0_109 = arith.constant 0 : index
    %180 = vector.load %arg10[%c0_108, %c0_109] : memref<8x128xf32, #tpu.memory_space<vmem>>, vector<8x128xf32>
    tpu.vector_store %arg10[%c0_108, %c0_109], %179 {strides = array<i32>} : memref<8x128xf32, #tpu.memory_space<vmem>>, vector<8x128xf32>,
    %181 = arith.truncf %179 : vector<8x128xf32> to vector<8x128xbf16>
    %182 = arith.index_cast %168 : i32 to index
    %c0_110 = arith.constant 0 : index
    %c0_111 = arith.constant 0 : index
    %183 = vector.load %arg8[%182, %c0_110, %c0_111] : memref<8x8x128xbf16, #tpu.memory_space<vmem>>, vector<1x8x128xbf16>
    %184 = vector.shape_cast %183 : vector<1x8x128xbf16> to vector<8x128xbf16>
    %185 = vector.shape_cast %181 : vector<8x128xbf16> to vector<1x8x128xbf16>
    tpu.vector_store %arg8[%182, %c0_110, %c0_111], %185 {strides = array<i32>} : memref<8x8x128xbf16, #tpu.memory_space<vmem>>, vector<1x8x128xbf16>,
    %c5_i32 = arith.constant 5 : i32
    %186 = arith.index_cast %c5_i32 : i32 to index
    %c0_112 = arith.constant 0 : index
    %c0_113 = arith.constant 0 : index
    %187 = vector.load %arg1[%186, %c0_112, %c0_113] : memref<8x8x128xbf16, #tpu.memory_space<vmem>>, vector<1x8x128xbf16>
    %188 = vector.shape_cast %187 : vector<1x8x128xbf16> to vector<8x128xbf16>
    %189 = arith.extf %188 : vector<8x128xbf16> to vector<8x128xf32>
    %c0_114 = arith.constant 0 : index
    %c0_115 = arith.constant 0 : index
    %190 = vector.load %arg9[%c0_114, %c0_115] : memref<8x128xf32, #tpu.memory_space<vmem>>, vector<8x128xf32>
    %191 = arith.truncf %190 : vector<8x128xf32> to vector<8x128xbf16>
    %cst_116 = arith.constant dense<0.000000e+00> : vector<8x128xf32>
    %192 = tpu.matmul %191, %3, %cst_116 {dimension_numbers = #tpu.dot_dimension_numbers<[1], [0], [0], [1], [0, 0, 1, 1], [], []>} : vector<8x128xbf16>, vector<128x128xbf16>, vector<8x128xf32> -> vector<8x128xf32>
    %193 = arith.addf %189, %192 : vector<8x128xf32>
    %194 = arith.addf %193, %7 : vector<8x128xf32>
    %cst_117 = arith.constant 0.000000e+00 : f32
    %195 = vector.broadcast %cst_117 : f32 to vector<8x128xf32>
    %196 = arith.maximumf %194, %195 : vector<8x128xf32>
    %c0_118 = arith.constant 0 : index
    %c0_119 = arith.constant 0 : index
    %197 = vector.load %arg9[%c0_118, %c0_119] : memref<8x128xf32, #tpu.memory_space<vmem>>, vector<8x128xf32>
    tpu.vector_store %arg9[%c0_118, %c0_119], %196 {strides = array<i32>} : memref<8x128xf32, #tpu.memory_space<vmem>>, vector<8x128xf32>,
    %198 = arith.truncf %196 : vector<8x128xf32> to vector<8x128xbf16>
    %199 = arith.index_cast %c5_i32 : i32 to index
    %c0_120 = arith.constant 0 : index
    %c0_121 = arith.constant 0 : index
    %200 = vector.load %arg7[%199, %c0_120, %c0_121] : memref<8x8x128xbf16, #tpu.memory_space<vmem>>, vector<1x8x128xbf16>
    %201 = vector.shape_cast %200 : vector<1x8x128xbf16> to vector<8x128xbf16>
    %202 = vector.shape_cast %198 : vector<8x128xbf16> to vector<1x8x128xbf16>
    tpu.vector_store %arg7[%199, %c0_120, %c0_121], %202 {strides = array<i32>} : memref<8x8x128xbf16, #tpu.memory_space<vmem>>, vector<1x8x128xbf16>,
    %c7_i32_122 = arith.constant 7 : i32
    %203 = arith.subi %c7_i32_122, %c5_i32 : i32
    %204 = arith.index_cast %203 : i32 to index
    %c0_123 = arith.constant 0 : index
    %c0_124 = arith.constant 0 : index
    %205 = vector.load %arg2[%204, %c0_123, %c0_124] : memref<8x8x128xbf16, #tpu.memory_space<vmem>>, vector<1x8x128xbf16>
    %206 = vector.shape_cast %205 : vector<1x8x128xbf16> to vector<8x128xbf16>
    %207 = arith.extf %206 : vector<8x128xbf16> to vector<8x128xf32>
    %c0_125 = arith.constant 0 : index
    %c0_126 = arith.constant 0 : index
    %208 = vector.load %arg10[%c0_125, %c0_126] : memref<8x128xf32, #tpu.memory_space<vmem>>, vector<8x128xf32>
    %209 = arith.truncf %208 : vector<8x128xf32> to vector<8x128xbf16>
    %cst_127 = arith.constant dense<0.000000e+00> : vector<8x128xf32>
    %210 = tpu.matmul %209, %4, %cst_127 {dimension_numbers = #tpu.dot_dimension_numbers<[1], [0], [0], [1], [0, 0, 1, 1], [], []>} : vector<8x128xbf16>, vector<128x128xbf16>, vector<8x128xf32> -> vector<8x128xf32>
    %211 = arith.addf %207, %210 : vector<8x128xf32>
    %212 = arith.addf %211, %10 : vector<8x128xf32>
    %cst_128 = arith.constant 0.000000e+00 : f32
    %213 = vector.broadcast %cst_128 : f32 to vector<8x128xf32>
    %214 = arith.maximumf %212, %213 : vector<8x128xf32>
    %c0_129 = arith.constant 0 : index
    %c0_130 = arith.constant 0 : index
    %215 = vector.load %arg10[%c0_129, %c0_130] : memref<8x128xf32, #tpu.memory_space<vmem>>, vector<8x128xf32>
    tpu.vector_store %arg10[%c0_129, %c0_130], %214 {strides = array<i32>} : memref<8x128xf32, #tpu.memory_space<vmem>>, vector<8x128xf32>,
    %216 = arith.truncf %214 : vector<8x128xf32> to vector<8x128xbf16>
    %217 = arith.index_cast %203 : i32 to index
    %c0_131 = arith.constant 0 : index
    %c0_132 = arith.constant 0 : index
    %218 = vector.load %arg8[%217, %c0_131, %c0_132] : memref<8x8x128xbf16, #tpu.memory_space<vmem>>, vector<1x8x128xbf16>
    %219 = vector.shape_cast %218 : vector<1x8x128xbf16> to vector<8x128xbf16>
    %220 = vector.shape_cast %216 : vector<8x128xbf16> to vector<1x8x128xbf16>
    tpu.vector_store %arg8[%217, %c0_131, %c0_132], %220 {strides = array<i32>} : memref<8x8x128xbf16, #tpu.memory_space<vmem>>, vector<1x8x128xbf16>,
    %c6_i32 = arith.constant 6 : i32
    %221 = arith.index_cast %c6_i32 : i32 to index
    %c0_133 = arith.constant 0 : index
    %c0_134 = arith.constant 0 : index
    %222 = vector.load %arg1[%221, %c0_133, %c0_134] : memref<8x8x128xbf16, #tpu.memory_space<vmem>>, vector<1x8x128xbf16>
    %223 = vector.shape_cast %222 : vector<1x8x128xbf16> to vector<8x128xbf16>
    %224 = arith.extf %223 : vector<8x128xbf16> to vector<8x128xf32>
    %c0_135 = arith.constant 0 : index
    %c0_136 = arith.constant 0 : index
    %225 = vector.load %arg9[%c0_135, %c0_136] : memref<8x128xf32, #tpu.memory_space<vmem>>, vector<8x128xf32>
    %226 = arith.truncf %225 : vector<8x128xf32> to vector<8x128xbf16>
    %cst_137 = arith.constant dense<0.000000e+00> : vector<8x128xf32>
    %227 = tpu.matmul %226, %3, %cst_137 {dimension_numbers = #tpu.dot_dimension_numbers<[1], [0], [0], [1], [0, 0, 1, 1], [], []>} : vector<8x128xbf16>, vector<128x128xbf16>, vector<8x128xf32> -> vector<8x128xf32>
    %228 = arith.addf %224, %227 : vector<8x128xf32>
    %229 = arith.addf %228, %7 : vector<8x128xf32>
    %cst_138 = arith.constant 0.000000e+00 : f32
    %230 = vector.broadcast %cst_138 : f32 to vector<8x128xf32>
    %231 = arith.maximumf %229, %230 : vector<8x128xf32>
    %c0_139 = arith.constant 0 : index
    %c0_140 = arith.constant 0 : index
    %232 = vector.load %arg9[%c0_139, %c0_140] : memref<8x128xf32, #tpu.memory_space<vmem>>, vector<8x128xf32>
    tpu.vector_store %arg9[%c0_139, %c0_140], %231 {strides = array<i32>} : memref<8x128xf32, #tpu.memory_space<vmem>>, vector<8x128xf32>,
    %233 = arith.truncf %231 : vector<8x128xf32> to vector<8x128xbf16>
    %234 = arith.index_cast %c6_i32 : i32 to index
    %c0_141 = arith.constant 0 : index
    %c0_142 = arith.constant 0 : index
    %235 = vector.load %arg7[%234, %c0_141, %c0_142] : memref<8x8x128xbf16, #tpu.memory_space<vmem>>, vector<1x8x128xbf16>
    %236 = vector.shape_cast %235 : vector<1x8x128xbf16> to vector<8x128xbf16>
    %237 = vector.shape_cast %233 : vector<8x128xbf16> to vector<1x8x128xbf16>
    tpu.vector_store %arg7[%234, %c0_141, %c0_142], %237 {strides = array<i32>} : memref<8x8x128xbf16, #tpu.memory_space<vmem>>, vector<1x8x128xbf16>,
    %c7_i32_143 = arith.constant 7 : i32
    %238 = arith.subi %c7_i32_143, %c6_i32 : i32
    %239 = arith.index_cast %238 : i32 to index
    %c0_144 = arith.constant 0 : index
    %c0_145 = arith.constant 0 : index
    %240 = vector.load %arg2[%239, %c0_144, %c0_145] : memref<8x8x128xbf16, #tpu.memory_space<vmem>>, vector<1x8x128xbf16>
    %241 = vector.shape_cast %240 : vector<1x8x128xbf16> to vector<8x128xbf16>
    %242 = arith.extf %241 : vector<8x128xbf16> to vector<8x128xf32>
    %c0_146 = arith.constant 0 : index
    %c0_147 = arith.constant 0 : index
    %243 = vector.load %arg10[%c0_146, %c0_147] : memref<8x128xf32, #tpu.memory_space<vmem>>, vector<8x128xf32>
    %244 = arith.truncf %243 : vector<8x128xf32> to vector<8x128xbf16>
    %cst_148 = arith.constant dense<0.000000e+00> : vector<8x128xf32>
    %245 = tpu.matmul %244, %4, %cst_148 {dimension_numbers = #tpu.dot_dimension_numbers<[1], [0], [0], [1], [0, 0, 1, 1], [], []>} : vector<8x128xbf16>, vector<128x128xbf16>, vector<8x128xf32> -> vector<8x128xf32>
    %246 = arith.addf %242, %245 : vector<8x128xf32>
    %247 = arith.addf %246, %10 : vector<8x128xf32>
    %cst_149 = arith.constant 0.000000e+00 : f32
    %248 = vector.broadcast %cst_149 : f32 to vector<8x128xf32>
    %249 = arith.maximumf %247, %248 : vector<8x128xf32>
    %c0_150 = arith.constant 0 : index
    %c0_151 = arith.constant 0 : index
    %250 = vector.load %arg10[%c0_150, %c0_151] : memref<8x128xf32, #tpu.memory_space<vmem>>, vector<8x128xf32>
    tpu.vector_store %arg10[%c0_150, %c0_151], %249 {strides = array<i32>} : memref<8x128xf32, #tpu.memory_space<vmem>>, vector<8x128xf32>,
    %251 = arith.truncf %249 : vector<8x128xf32> to vector<8x128xbf16>
    %252 = arith.index_cast %238 : i32 to index
    %c0_152 = arith.constant 0 : index
    %c0_153 = arith.constant 0 : index
    %253 = vector.load %arg8[%252, %c0_152, %c0_153] : memref<8x8x128xbf16, #tpu.memory_space<vmem>>, vector<1x8x128xbf16>
    %254 = vector.shape_cast %253 : vector<1x8x128xbf16> to vector<8x128xbf16>
    %255 = vector.shape_cast %251 : vector<8x128xbf16> to vector<1x8x128xbf16>
    tpu.vector_store %arg8[%252, %c0_152, %c0_153], %255 {strides = array<i32>} : memref<8x8x128xbf16, #tpu.memory_space<vmem>>, vector<1x8x128xbf16>,
    %c7_i32_154 = arith.constant 7 : i32
    %256 = arith.index_cast %c7_i32_154 : i32 to index
    %c0_155 = arith.constant 0 : index
    %c0_156 = arith.constant 0 : index
    %257 = vector.load %arg1[%256, %c0_155, %c0_156] : memref<8x8x128xbf16, #tpu.memory_space<vmem>>, vector<1x8x128xbf16>
    %258 = vector.shape_cast %257 : vector<1x8x128xbf16> to vector<8x128xbf16>
    %259 = arith.extf %258 : vector<8x128xbf16> to vector<8x128xf32>
    %c0_157 = arith.constant 0 : index
    %c0_158 = arith.constant 0 : index
    %260 = vector.load %arg9[%c0_157, %c0_158] : memref<8x128xf32, #tpu.memory_space<vmem>>, vector<8x128xf32>
    %261 = arith.truncf %260 : vector<8x128xf32> to vector<8x128xbf16>
    %cst_159 = arith.constant dense<0.000000e+00> : vector<8x128xf32>
    %262 = tpu.matmul %261, %3, %cst_159 {dimension_numbers = #tpu.dot_dimension_numbers<[1], [0], [0], [1], [0, 0, 1, 1], [], []>} : vector<8x128xbf16>, vector<128x128xbf16>, vector<8x128xf32> -> vector<8x128xf32>
    %263 = arith.addf %259, %262 : vector<8x128xf32>
    %264 = arith.addf %263, %7 : vector<8x128xf32>
    %cst_160 = arith.constant 0.000000e+00 : f32
    %265 = vector.broadcast %cst_160 : f32 to vector<8x128xf32>
    %266 = arith.maximumf %264, %265 : vector<8x128xf32>
    %c0_161 = arith.constant 0 : index
    %c0_162 = arith.constant 0 : index
    %267 = vector.load %arg9[%c0_161, %c0_162] : memref<8x128xf32, #tpu.memory_space<vmem>>, vector<8x128xf32>
    tpu.vector_store %arg9[%c0_161, %c0_162], %266 {strides = array<i32>} : memref<8x128xf32, #tpu.memory_space<vmem>>, vector<8x128xf32>,
    %268 = arith.truncf %266 : vector<8x128xf32> to vector<8x128xbf16>
    %269 = arith.index_cast %c7_i32_154 : i32 to index
    %c0_163 = arith.constant 0 : index
    %c0_164 = arith.constant 0 : index
    %270 = vector.load %arg7[%269, %c0_163, %c0_164] : memref<8x8x128xbf16, #tpu.memory_space<vmem>>, vector<1x8x128xbf16>
    %271 = vector.shape_cast %270 : vector<1x8x128xbf16> to vector<8x128xbf16>
    %272 = vector.shape_cast %268 : vector<8x128xbf16> to vector<1x8x128xbf16>
    tpu.vector_store %arg7[%269, %c0_163, %c0_164], %272 {strides = array<i32>} : memref<8x8x128xbf16, #tpu.memory_space<vmem>>, vector<1x8x128xbf16>,
    %c7_i32_165 = arith.constant 7 : i32
    %273 = arith.subi %c7_i32_165, %c7_i32_154 : i32
    %274 = arith.index_cast %273 : i32 to index
    %c0_166 = arith.constant 0 : index
    %c0_167 = arith.constant 0 : index
    %275 = vector.load %arg2[%274, %c0_166, %c0_167] : memref<8x8x128xbf16, #tpu.memory_space<vmem>>, vector<1x8x128xbf16>
    %276 = vector.shape_cast %275 : vector<1x8x128xbf16> to vector<8x128xbf16>
    %277 = arith.extf %276 : vector<8x128xbf16> to vector<8x128xf32>
    %c0_168 = arith.constant 0 : index
    %c0_169 = arith.constant 0 : index
    %278 = vector.load %arg10[%c0_168, %c0_169] : memref<8x128xf32, #tpu.memory_space<vmem>>, vector<8x128xf32>
    %279 = arith.truncf %278 : vector<8x128xf32> to vector<8x128xbf16>
    %cst_170 = arith.constant dense<0.000000e+00> : vector<8x128xf32>
    %280 = tpu.matmul %279, %4, %cst_170 {dimension_numbers = #tpu.dot_dimension_numbers<[1], [0], [0], [1], [0, 0, 1, 1], [], []>} : vector<8x128xbf16>, vector<128x128xbf16>, vector<8x128xf32> -> vector<8x128xf32>
    %281 = arith.addf %277, %280 : vector<8x128xf32>
    %282 = arith.addf %281, %10 : vector<8x128xf32>
    %cst_171 = arith.constant 0.000000e+00 : f32
    %283 = vector.broadcast %cst_171 : f32 to vector<8x128xf32>
    %284 = arith.maximumf %282, %283 : vector<8x128xf32>
    %c0_172 = arith.constant 0 : index
    %c0_173 = arith.constant 0 : index
    %285 = vector.load %arg10[%c0_172, %c0_173] : memref<8x128xf32, #tpu.memory_space<vmem>>, vector<8x128xf32>
    tpu.vector_store %arg10[%c0_172, %c0_173], %284 {strides = array<i32>} : memref<8x128xf32, #tpu.memory_space<vmem>>, vector<8x128xf32>,
    %286 = arith.truncf %284 : vector<8x128xf32> to vector<8x128xbf16>
    %287 = arith.index_cast %273 : i32 to index
    %c0_174 = arith.constant 0 : index
    %c0_175 = arith.constant 0 : index
    %288 = vector.load %arg8[%287, %c0_174, %c0_175] : memref<8x8x128xbf16, #tpu.memory_space<vmem>>, vector<1x8x128xbf16>
    %289 = vector.shape_cast %288 : vector<1x8x128xbf16> to vector<8x128xbf16>
    %290 = vector.shape_cast %286 : vector<8x128xbf16> to vector<1x8x128xbf16>
    tpu.vector_store %arg8[%287, %c0_174, %c0_175], %290 {strides = array<i32>} : memref<8x8x128xbf16, #tpu.memory_space<vmem>>, vector<1x8x128xbf16>,
    %c8_i32 = arith.constant 8 : i32
    return
  }
  func.func @transform_0(%arg0: i32) -> (i32, i32, i32) {
    %c0_i32 = arith.constant 0 : i32
    %c0_i32_0 = arith.constant 0 : i32
    %c0_i32_1 = arith.constant 0 : i32
    return %arg0, %c0_i32, %c0_i32_0 : i32, i32, i32
  }
  func.func @transform_1(%arg0: i32) -> (i32, i32, i32) {
    %c0_i32 = arith.constant 0 : i32
    %0 = arith.subi %c0_i32, %arg0 : i32
    %c0_i32_0 = arith.constant 0 : i32
    %c1_i32 = arith.constant 1 : i32
    %c0_i32_1 = arith.constant 0 : i32
    return %0, %c0_i32_0, %c1_i32 : i32, i32, i32
  }
  func.func @transform_2(%arg0: i32) -> (i32, i32) {
    %c0_i32 = arith.constant 0 : i32
    %c0_i32_0 = arith.constant 0 : i32
    %c0_i32_1 = arith.constant 0 : i32
    return %c0_i32, %c0_i32_0 : i32, i32
  }
  func.func @transform_3(%arg0: i32) -> (i32, i32) {
    %c0_i32 = arith.constant 0 : i32
    %c0_i32_0 = arith.constant 0 : i32
    %c0_i32_1 = arith.constant 0 : i32
    return %c0_i32, %c0_i32_0 : i32, i32
  }
  func.func @transform_4(%arg0: i32) -> (i32, i32) {
    %c0_i32 = arith.constant 0 : i32
    %c0_i32_0 = arith.constant 0 : i32
    %c0_i32_1 = arith.constant 0 : i32
    return %c0_i32, %c0_i32_0 : i32, i32
  }
  func.func @transform_5(%arg0: i32) -> (i32, i32) {
    %c0_i32 = arith.constant 0 : i32
    %c0_i32_0 = arith.constant 0 : i32
    %c0_i32_1 = arith.constant 0 : i32
    return %c0_i32, %c0_i32_0 : i32, i32
  }
  func.func @transform_6(%arg0: i32) -> (i32, i32, i32) {
    %c0_i32 = arith.constant 0 : i32
    %c0_i32_0 = arith.constant 0 : i32
    %c0_i32_1 = arith.constant 0 : i32
    return %arg0, %c0_i32, %c0_i32_0 : i32, i32, i32
  }
  func.func @transform_7(%arg0: i32) -> (i32, i32, i32) {
    %c0_i32 = arith.constant 0 : i32
    %0 = arith.subi %c0_i32, %arg0 : i32
    %c0_i32_0 = arith.constant 0 : i32
    %c0_i32_1 = arith.constant 0 : i32
    %c0_i32_2 = arith.constant 0 : i32
    return %0, %c0_i32_0, %c0_i32_1 : i32, i32, i32
  }
}

module attributes {stable_mosaic.version = 11 : i64} {
  func.func @_matmul_bias_act_kernel(%arg0: i32, %arg1: i32, %arg2: i32, %arg3: memref<64x128xbf16, #tpu.memory_space<vmem>>, %arg4: memref<64x128xbf16, #tpu.memory_space<vmem>>, %arg5: memref<128x128xbf16, #tpu.memory_space<vmem>>, %arg6: memref<1x128xf32, #tpu.memory_space<vmem>>, %arg7: memref<64x128xbf16, #tpu.memory_space<vmem>>, %arg8: memref<64x128xf32, #tpu.memory_space<vmem>>) attributes {dimension_semantics = [#tpu.dimension_semantics<parallel>, #tpu.dimension_semantics<parallel>, #tpu.dimension_semantics<arbitrary>], iteration_bounds = array<i64: 1, 1, 1>, scalar_prefetch = 0 : i64, scratch_operands = 1 : i64, tpu.core_type = #tpu.core_type<tc>, window_params = [{transform_indices = @transform_0, window_bounds = array<i64: 64, 128>}, {transform_indices = @transform_1, window_bounds = array<i64: 64, 128>}, {transform_indices = @transform_2, window_bounds = array<i64: 128, 128>}, {transform_indices = @transform_3, window_bounds = array<i64: 1, 128>}, {transform_indices = @transform_4, window_bounds = array<i64: 64, 128>}]} {
    %c0_i32 = arith.constant 0 : i32
    %0 = arith.cmpi eq, %arg2, %c0_i32 : i32
    %1 = arith.extui %0 : i1 to i32
    %c0_i32_0 = arith.constant 0 : i32
    %2 = arith.cmpi ne, %1, %c0_i32_0 : i32
    scf.if %2 {
      %cst_12 = arith.constant 0.000000e+00 : f32
      %14 = vector.broadcast %cst_12 : f32 to vector<64x128xf32>
      %c0_13 = arith.constant 0 : index
      %c0_14 = arith.constant 0 : index
      %15 = vector.load %arg8[%c0_13, %c0_14] : memref<64x128xf32, #tpu.memory_space<vmem>>, vector<64x128xf32>
      tpu.vector_store %arg8[%c0_13, %c0_14], %14 {strides = array<i32>} : memref<64x128xf32, #tpu.memory_space<vmem>>, vector<64x128xf32>,
    } else {
    }
    %c0 = arith.constant 0 : index
    %c0_1 = arith.constant 0 : index
    %3 = vector.load %arg3[%c0, %c0_1] : memref<64x128xbf16, #tpu.memory_space<vmem>>, vector<64x128xbf16>
    %c0_2 = arith.constant 0 : index
    %c0_3 = arith.constant 0 : index
    %4 = vector.load %arg4[%c0_2, %c0_3] : memref<64x128xbf16, #tpu.memory_space<vmem>>, vector<64x128xbf16>
    %5 = arith.addf %3, %4 : vector<64x128xbf16>
    %c0_4 = arith.constant 0 : index
    %c0_5 = arith.constant 0 : index
    %6 = vector.load %arg8[%c0_4, %c0_5] : memref<64x128xf32, #tpu.memory_space<vmem>>, vector<64x128xf32>
    %c0_6 = arith.constant 0 : index
    %c0_7 = arith.constant 0 : index
    %7 = vector.load %arg5[%c0_6, %c0_7] : memref<128x128xbf16, #tpu.memory_space<vmem>>, vector<128x128xbf16>
    %cst = arith.constant dense<0.000000e+00> : vector<64x128xf32>
    %8 = tpu.matmul %5, %7, %cst {dimension_numbers = #tpu.dot_dimension_numbers<[1], [0], [0], [1], [0, 0, 1, 1], [], []>} : vector<64x128xbf16>, vector<128x128xbf16>, vector<64x128xf32> -> vector<64x128xf32>
    %9 = arith.addf %6, %8 : vector<64x128xf32>
    %c0_8 = arith.constant 0 : index
    %c0_9 = arith.constant 0 : index
    %10 = vector.load %arg8[%c0_8, %c0_9] : memref<64x128xf32, #tpu.memory_space<vmem>>, vector<64x128xf32>
    tpu.vector_store %arg8[%c0_8, %c0_9], %9 {strides = array<i32>} : memref<64x128xf32, #tpu.memory_space<vmem>>, vector<64x128xf32>,
    %c0_i32_10 = arith.constant 0 : i32
    %11 = arith.cmpi eq, %arg2, %c0_i32_10 : i32
    %12 = arith.extui %11 : i1 to i32
    %c0_i32_11 = arith.constant 0 : i32
    %13 = arith.cmpi ne, %12, %c0_i32_11 : i32
    scf.if %13 {
      %c0_12 = arith.constant 0 : index
      %c0_13 = arith.constant 0 : index
      %14 = vector.load %arg8[%c0_12, %c0_13] : memref<64x128xf32, #tpu.memory_space<vmem>>, vector<64x128xf32>
      %c0_14 = arith.constant 0 : index
      %c0_15 = arith.constant 0 : index
      %15 = vector.load %arg6[%c0_14, %c0_15] : memref<1x128xf32, #tpu.memory_space<vmem>>, vector<1x128xf32>
      %16 = vector.broadcast %15 : vector<1x128xf32> to vector<64x128xf32>
      %17 = arith.addf %14, %16 : vector<64x128xf32>
      %cst_16 = arith.constant 0.000000e+00 : f32
      %cst_17 = arith.constant 2.000000e+01 : f32
      %18 = vector.broadcast %cst_16 : f32 to vector<64x128xf32>
      %19 = arith.maximumf %18, %17 : vector<64x128xf32>
      %20 = vector.broadcast %cst_17 : f32 to vector<64x128xf32>
      %21 = arith.minimumf %20, %19 : vector<64x128xf32>
      %22 = arith.truncf %21 : vector<64x128xf32> to vector<64x128xbf16>
      %c0_18 = arith.constant 0 : index
      %c0_19 = arith.constant 0 : index
      %23 = vector.load %arg7[%c0_18, %c0_19] : memref<64x128xbf16, #tpu.memory_space<vmem>>, vector<64x128xbf16>
      tpu.vector_store %arg7[%c0_18, %c0_19], %22 {strides = array<i32>} : memref<64x128xbf16, #tpu.memory_space<vmem>>, vector<64x128xbf16>,
    } else {
    }
    return
  }
  func.func @transform_0(%arg0: i32, %arg1: i32, %arg2: i32) -> (i32, i32) {
    %c0_i32 = arith.constant 0 : i32
    return %arg0, %arg2 : i32, i32
  }
  func.func @transform_1(%arg0: i32, %arg1: i32, %arg2: i32) -> (i32, i32) {
    %c0_i32 = arith.constant 0 : i32
    return %arg0, %arg2 : i32, i32
  }
  func.func @transform_2(%arg0: i32, %arg1: i32, %arg2: i32) -> (i32, i32) {
    %c0_i32 = arith.constant 0 : i32
    return %arg2, %arg1 : i32, i32
  }
  func.func @transform_3(%arg0: i32, %arg1: i32, %arg2: i32) -> (i32, i32) {
    %c0_i32 = arith.constant 0 : i32
    %c0_i32_0 = arith.constant 0 : i32
    return %c0_i32, %arg1 : i32, i32
  }
  func.func @transform_4(%arg0: i32, %arg1: i32, %arg2: i32) -> (i32, i32) {
    %c0_i32 = arith.constant 0 : i32
    return %arg0, %arg1 : i32, i32
  }
}

module attributes {stable_mosaic.version = 11 : i64} {
  func.func @_probs_kernel(%arg0: i32, %arg1: memref<64x32xbf16, #tpu.memory_space<vmem>>, %arg2: memref<32x128xbf16, #tpu.memory_space<vmem>>, %arg3: memref<1x128xf32, #tpu.memory_space<vmem>>, %arg4: memref<64x128xf32, #tpu.memory_space<vmem>>, %arg5: memref<64x128xf32, #tpu.memory_space<vmem>>) attributes {dimension_semantics = [#tpu.dimension_semantics<parallel>], iteration_bounds = array<i64: 1>, scalar_prefetch = 0 : i64, scratch_operands = 0 : i64, tpu.core_type = #tpu.core_type<tc>, window_params = [{transform_indices = @transform_0, window_bounds = array<i64: 64, 32>}, {pipeline_mode = #tpu.pipeline_mode<synchronous>, transform_indices = @transform_1, window_bounds = array<i64: 32, 128>}, {pipeline_mode = #tpu.pipeline_mode<synchronous>, transform_indices = @transform_2, window_bounds = array<i64: 1, 128>}, {transform_indices = @transform_3, window_bounds = array<i64: 64, 128>}, {transform_indices = @transform_4, window_bounds = array<i64: 64, 128>}]} {
    %c0 = arith.constant 0 : index
    %c0_0 = arith.constant 0 : index
    %0 = vector.load %arg1[%c0, %c0_0] : memref<64x32xbf16, #tpu.memory_space<vmem>>, vector<64x32xbf16>
    %c0_1 = arith.constant 0 : index
    %c0_2 = arith.constant 0 : index
    %1 = vector.load %arg2[%c0_1, %c0_2] : memref<32x128xbf16, #tpu.memory_space<vmem>>, vector<32x128xbf16>
    %cst = arith.constant dense<0.000000e+00> : vector<64x128xf32>
    %2 = tpu.matmul %0, %1, %cst {dimension_numbers = #tpu.dot_dimension_numbers<[1], [0], [0], [1], [0, 0, 1, 1], [], []>} : vector<64x32xbf16>, vector<32x128xbf16>, vector<64x128xf32> -> vector<64x128xf32>
    %c0_3 = arith.constant 0 : index
    %c0_4 = arith.constant 0 : index
    %3 = vector.load %arg3[%c0_3, %c0_4] : memref<1x128xf32, #tpu.memory_space<vmem>>, vector<1x128xf32>
    %4 = vector.broadcast %3 : vector<1x128xf32> to vector<64x128xf32>
    %5 = arith.addf %2, %4 : vector<64x128xf32>
    %6 = tpu.iota {dimensions = array<i32: 1>} : vector<64x128xi32>
    %c29_i32 = arith.constant 29 : i32
    %7 = vector.broadcast %c29_i32 : i32 to vector<64x128xi32>
    %8 = arith.cmpi slt, %6, %7 : vector<64x128xi32>
    %cst_5 = arith.constant -1.000000e+30 : f32
    %9 = vector.broadcast %cst_5 : f32 to vector<64x128xf32>
    %10 = arith.select %8, %5, %9 : vector<64x128xi1>, vector<64x128xf32>
    %cst_6 = arith.constant dense<0xFF800000> : vector<64xf32>
    %11 = vector.multi_reduction <maximumf>, %10, %cst_6 [1] : vector<64x128xf32> to vector<64xf32>
    %12 = vector.shape_cast %11 : vector<64xf32> to vector<64x1xf32>
    %13 = vector.broadcast %12 : vector<64x1xf32> to vector<64x128xf32>
    %14 = arith.subf %10, %13 : vector<64x128xf32>
    %15 = math.exp %14 : vector<64x128xf32>
    %cst_7 = arith.constant dense<0.000000e+00> : vector<64xf32>
    %16 = vector.multi_reduction <add>, %15, %cst_7 [1] : vector<64x128xf32> to vector<64xf32>
    %17 = vector.shape_cast %16 : vector<64xf32> to vector<64x1xf32>
    %18 = math.log %17 : vector<64x1xf32>
    %19 = vector.broadcast %18 : vector<64x1xf32> to vector<64x128xf32>
    %20 = arith.subf %14, %19 : vector<64x128xf32>
    %c0_8 = arith.constant 0 : index
    %c0_9 = arith.constant 0 : index
    %21 = vector.load %arg4[%c0_8, %c0_9] : memref<64x128xf32, #tpu.memory_space<vmem>>, vector<64x128xf32>
    tpu.vector_store %arg4[%c0_8, %c0_9], %20 {strides = array<i32>} : memref<64x128xf32, #tpu.memory_space<vmem>>, vector<64x128xf32>,
    %22 = vector.broadcast %17 : vector<64x1xf32> to vector<64x128xf32>
    %23 = arith.divf %15, %22 : vector<64x128xf32>
    %c0_10 = arith.constant 0 : index
    %c0_11 = arith.constant 0 : index
    %24 = vector.load %arg5[%c0_10, %c0_11] : memref<64x128xf32, #tpu.memory_space<vmem>>, vector<64x128xf32>
    tpu.vector_store %arg5[%c0_10, %c0_11], %23 {strides = array<i32>} : memref<64x128xf32, #tpu.memory_space<vmem>>, vector<64x128xf32>,
    return
  }
  func.func @transform_0(%arg0: i32) -> (i32, i32) {
    %c0_i32 = arith.constant 0 : i32
    %c0_i32_0 = arith.constant 0 : i32
    return %arg0, %c0_i32 : i32, i32
  }
  func.func @transform_1(%arg0: i32) -> (i32, i32) {
    %c0_i32 = arith.constant 0 : i32
    %c0_i32_0 = arith.constant 0 : i32
    %c0_i32_1 = arith.constant 0 : i32
    return %c0_i32, %c0_i32_0 : i32, i32
  }
  func.func @transform_2(%arg0: i32) -> (i32, i32) {
    %c0_i32 = arith.constant 0 : i32
    %c0_i32_0 = arith.constant 0 : i32
    %c0_i32_1 = arith.constant 0 : i32
    return %c0_i32, %c0_i32_0 : i32, i32
  }
  func.func @transform_3(%arg0: i32) -> (i32, i32) {
    %c0_i32 = arith.constant 0 : i32
    %c0_i32_0 = arith.constant 0 : i32
    return %arg0, %c0_i32 : i32, i32
  }
  func.func @transform_4(%arg0: i32) -> (i32, i32) {
    %c0_i32 = arith.constant 0 : i32
    %c0_i32_0 = arith.constant 0 : i32
    return %arg0, %c0_i32 : i32, i32
  }
}

</mosaic_0001>

<bundles_post_ra>
// kernel: deepspeech_forward.10
= control target key start
LH: loop header
LB: loop body
LE: loop exit
PB: predicated region body
PF: predicated region fallthrough
CT: control target
= control target key end

     0   :  { %v487_v1 = vmov 0   ;;  %v324_v45 = vlaneseq  ;;  %s640_s2 = inlined_call_operand.vmem [shape: bf16[128,256], index: 2, kind: input, shape index: {}]   ;;  %s641_s0 = inlined_call_operand.vmem [shape: bf16[64,128], index: 0, kind: input, shape index: {}]   ;;  %s642_s1 = inlined_call_operand.vmem [shape: bf16[64,128], index: 1, kind: input, shape index: {}]   ;;  %s643_s3 = inlined_call_operand.vmem [shape: f32[1,256], index: 3, kind: input, shape index: {}]   ;;  %s644_s4 = inlined_call_operand.vmem [shape: bf16[64,256], index: 4, kind: output, shape index: {}]  }
   0x1   :  { %v463_v0 = vld [vmem:[%s640_s2 + $0x4] ss:$8 sps:$4 sm:$0xff]   ;;  %230 = vmatprep.mubr.bf16.mxu0 %v487_v1  ;;  %250 = vmatprep.mubr.bf16.mxu1 %v487_v1  ;;  %v465_v2 = vld [vmem:[%s640_s2] ss:$8 sps:$4 sm:$0xff]   ;;  %v466_v3 = vld [vmem:[%s640_s2 + $0x14] ss:$8 sps:$4 sm:$0xff]  }
   0x2   :  { %198 = vmatprep.subr.bf16.mxu0 %v463_v0  ;;  %446 = vmatprep.subr.bf16.mxu1 %v463_v0  ;;  %v468_v4 = vld [vmem:[%s640_s2 + $0x10] ss:$8 sps:$4 sm:$0xff]   ;;  %v469_v5 = vld [vmem:[%s640_s2 + $0x24] ss:$8 sps:$4 sm:$0xff]   ;;  %v471_v6 = vld [vmem:[%s640_s2 + $0x20] ss:$8 sps:$4 sm:$0xff]  }
   0x3   :  { %199 = vmatpush1.bf16.msra.mxu0 %v465_v2  ;;  %454 = vmatpush1.bf16.msra.mxu1 %v465_v2  ;;  %v472_v7 = vld [vmem:[%s640_s2 + $0x34] ss:$8 sps:$4 sm:$0xff]   ;;  %v474_v8 = vld [vmem:[%s640_s2 + $0x30] ss:$8 sps:$4 sm:$0xff]   ;;  %v475_v9 = vld [vmem:[%s640_s2 + $0x44] ss:$8 sps:$4 sm:$0xff]  }
   0x4   :  { %200 = vmatprep.subr.bf16.mxu0 %v466_v3  ;;  %447 = vmatprep.subr.bf16.mxu1 %v466_v3  ;;  %v477_v10 = vld [vmem:[%s640_s2 + $0x40] ss:$8 sps:$4 sm:$0xff]   ;;  %v478_v11 = vld [vmem:[%s640_s2 + $0x54] ss:$8 sps:$4 sm:$0xff]   ;;  %v480_v12 = vld [vmem:[%s640_s2 + $0x50] ss:$8 sps:$4 sm:$0xff]  }
   0x5   :  { %v481_v13 = vld [vmem:[%s640_s2 + $0x64] ss:$8 sps:$4 sm:$0xff]   ;;  %v483_v14 = vld [vmem:[%s640_s2 + $0x60] ss:$8 sps:$4 sm:$0xff]   ;;  %v42_v19 = vld [vmem:[%s641_s0 + $0x10] sm:$0xf] }
   0x6   :  { %v38_v15 = vld [vmem:[%s641_s0] sm:$0xf]  ;;  %v39_v16 = vld [vmem:[%s641_s0 + $0x4] sm:$0xf]  ;;  %v43_v20 = vld [vmem:[%s641_s0 + $0x14] sm:$0xf] }
   0x7   :  { %201 = vmatpush1.bf16.msra.mxu0 %v468_v4  ;;  %455 = vmatpush1.bf16.msra.mxu1 %v468_v4  ;;  %v46_v17 = vld [vmem:[%s642_s1] sm:$0xf]  ;;  %v47_v18 = vld [vmem:[%s642_s1 + $0x4] sm:$0xf]  ;;  %v50_v21 = vld [vmem:[%s642_s1 + $0x10] sm:$0xf] }
   0x8   :  { %202 = vmatprep.subr.bf16.mxu0 %v469_v5  ;;  %448 = vmatprep.subr.bf16.mxu1 %v469_v5  ;;  %v51_v22 = vld [vmem:[%s642_s1 + $0x14] sm:$0xf]  ;;  %v54_v24 = vadd.bf16 %v46_v17, %v38_v15  ;;  %v55_v25 = vadd.bf16 %v47_v18, %v39_v16  ;;  %v58_v26 = vadd.bf16 %v50_v21, %v42_v19  ;;  %v486_v28 = vld [vmem:[%s640_s2 + $0x70] ss:$8 sps:$4 sm:$0xff]   ;;  %v40_v29 = vld [vmem:[%s641_s0 + $0x8] sm:$0xf] }
   0x9   :  { %v484_v23 = vld [vmem:[%s640_s2 + $0x74] ss:$8 sps:$4 sm:$0xff]   ;;  %v59_v27 = vadd.bf16 %v51_v22, %v43_v20  ;;  %v41_v30 = vld [vmem:[%s641_s0 + $0xc] sm:$0xf]  ;;  %v48_v33 = vld [vmem:[%s642_s1 + $0x8] sm:$0xf] }
   0xa   :  { %v410_v31 = vcombine.low %v54_v24, %v55_v25  ;;  %v49_v34 = vld [vmem:[%s642_s1 + $0xc] sm:$0xf]  ;;  %v44_v35 = vld [vmem:[%s641_s0 + $0x18] sm:$0xf]  ;;  %v45_v36 = vld [vmem:[%s641_s0 + $0x1c] sm:$0xf]  ;;  %v56_v39 = vadd.bf16 %v48_v33, %v40_v29 }
   0xb   :  { %203 = vmatpush1.bf16.msra.mxu0 %v471_v6  ;;  %456 = vmatpush1.bf16.msra.mxu1 %v471_v6  ;;  %v412_v32 = vcombine.low %v58_v26, %v59_v27  ;;  %v52_v37 = vld [vmem:[%s642_s1 + $0x18] sm:$0xf]  ;;  %v53_v38 = vld [vmem:[%s642_s1 + $0x1c] sm:$0xf]  ;;  %v57_v40 = vadd.bf16 %v49_v34, %v41_v30  ;;  %v325_v46 = vshrl.u32 %v324_v45, 7 }
   0xc   :  { %204 = vmatprep.subr.bf16.mxu0 %v472_v7  ;;  %449 = vmatprep.subr.bf16.mxu1 %v472_v7  ;;  %v60_v41 = vadd.bf16 %v52_v37, %v44_v35  ;;  %v61_v42 = vadd.bf16 %v53_v38, %v45_v36  ;;  %v322_v48 = vld [vmem:[%s643_s3] sm:$0x3] }
   0xd   :  { %v411_v43 = vcombine.low %v56_v39, %v57_v40  ;;  %v326_v47 = vsub.s32 0, %v325_v46  ;;  %v330_v49 = vsub.s32 1, %v325_v46 }
   0xe   :  { %v413_v44 = vcombine.low %v60_v41, %v61_v42 }
   0xf   :  { %205 = vmatpush1.bf16.msra.mxu0 %v474_v8  ;;  %457 = vmatpush1.bf16.msra.mxu1 %v474_v8  ;;  %v327_v50 = vrot.slane %v322_v48, %v326_v47  ;;  %v331_v51 = vrot.slane %v322_v48, %v330_v49 }
  0x10   :  { %206 = vmatprep.subr.bf16.mxu0 %v475_v9  ;;  %450 = vmatprep.subr.bf16.mxu1 %v475_v9 }
  0x13   :  { %207 = vmatpush1.bf16.msra.mxu0 %v477_v10  ;;  %458 = vmatpush1.bf16.msra.mxu1 %v477_v10 }
  0x14   :  { %208 = vmatprep.subr.bf16.mxu0 %v478_v11  ;;  %451 = vmatprep.subr.bf16.mxu1 %v478_v11 }
  0x17   :  { %209 = vmatpush1.bf16.msra.mxu0 %v480_v12  ;;  %459 = vmatpush1.bf16.msra.mxu1 %v480_v12 }
  0x18   :  { %210 = vmatprep.subr.bf16.mxu0 %v481_v13  ;;  %452 = vmatprep.subr.bf16.mxu1 %v481_v13 }
  0x1b   :  { %211 = vmatpush1.bf16.msra.mxu0 %v483_v14  ;;  %460 = vmatpush1.bf16.msra.mxu1 %v483_v14 }
  0x1c   :  { %212 = vmatprep.subr.bf16.mxu0 %v484_v23  ;;  %453 = vmatprep.subr.bf16.mxu1 %v484_v23 }
  0x1f   :  { %213 = vmatpush1.bf16.msra.mxu0 %v486_v28  ;;  %461 = vmatpush1.bf16.msra.mxu1 %v486_v28 }
  0x22   :  { %231 = vmatmul.mubr.bf16.vlgmr.msra.gmra.mrb[0].mxu0 %v410_v31  ;;  %251 = vmatmul.mubr.bf16.vlgmr.msra.gmra.mrb[0].mxu1 %v412_v32 }
  0x23   :  { %240 = vmatprep.mubr.bf16.mxu0 %v487_v1  ;;  %260 = vmatprep.mubr.bf16.mxu1 %v487_v1 }
  0x2a   :  { %241 = vmatmul.mubr.bf16.gmra.mrb[4].mxu0 %v411_v43  ;;  %261 = vmatmul.mubr.bf16.gmra.mrb[4].mxu1 %v413_v44 }
  0xf5   :  { %v232_v52 = vpop.f32.mrb[0].mxu0  ;;  %v252_v53 = vpop.f32.mrb[0].mxu1 }
  0xf6   :  { %v334_v54 = vadd.f32 %v327_v50, %v232_v52  ;;  %v342_v55 = vadd.f32 %v327_v50, %v252_v53  ;;  %v234_v56 = vpop.f32.mrb[1].mxu0  ;;  %v254_v57 = vpop.f32.mrb[1].mxu1 }
  0xf7   :  { %v335_v58 = vadd.f32 %v331_v51, %v234_v56  ;;  %v343_v59 = vadd.f32 %v331_v51, %v254_v57  ;;  %v236_v60 = vpop.f32.mrb[2].mxu0  ;;  %v256_v61 = vpop.f32.mrb[2].mxu1 }
  0xf8   :  { %v336_v62 = vadd.f32 %v327_v50, %v236_v60  ;;  %v344_v63 = vadd.f32 %v327_v50, %v256_v61  ;;  %v238_v0 = vpop.f32.mrb[3].mxu0  ;;  %v258_v1 = vpop.f32.mrb[3].mxu1 }
  0xf9   :  { %v438_v2 = vpack.c.bf16 %v335_v58, %v334_v54  ;;  %v442_v3 = vpack.c.bf16 %v343_v59, %v342_v55  ;;  %v337_v4 = vadd.f32 %v331_v51, %v238_v0  ;;  %v345_v5 = vadd.f32 %v331_v51, %v258_v1 }
  0xfb   :  { %398 = vst [vmem:[%s644_s4] sm:$0xff] %v438_v2  ;;  %402 = vst [vmem:[%s644_s4 + $0x20] sm:$0xff] %v442_v3  ;;  %v439_v6 = vpack.c.bf16 %v337_v4, %v336_v62  ;;  %v443_v7 = vpack.c.bf16 %v345_v5, %v344_v63 }
  0xfd   :  { %399 = vst [vmem:[%s644_s4 + $0x8] sm:$0xff] %v439_v6  ;;  %403 = vst [vmem:[%s644_s4 + $0x28] sm:$0xff] %v443_v7  ;;  %v242_v8 = vpop.f32.mrb[4].mxu0  ;;  %v262_v9 = vpop.f32.mrb[4].mxu1 }
  0xfe   :  { %v338_v10 = vadd.f32 %v327_v50, %v242_v8  ;;  %v346_v11 = vadd.f32 %v327_v50, %v262_v9  ;;  %v244_v12 = vpop.f32.mrb[5].mxu0  ;;  %v264_v13 = vpop.f32.mrb[5].mxu1 }
  0xff   :  { %v339_v14 = vadd.f32 %v331_v51, %v244_v12  ;;  %v347_v15 = vadd.f32 %v331_v51, %v264_v13  ;;  %v246_v16 = vpop.f32.mrb[6].mxu0  ;;  %v266_v17 = vpop.f32.mrb[6].mxu1 }
 0x100   :  { %v340_v18 = vadd.f32 %v327_v50, %v246_v16  ;;  %v348_v19 = vadd.f32 %v327_v50, %v266_v17  ;;  %v248_v20 = vpop.f32.mrb[7].mxu0  ;;  %v268_v21 = vpop.f32.mrb[7].mxu1 }
 0x101   :  { %v440_v22 = vpack.c.bf16 %v339_v14, %v338_v10  ;;  %v444_v23 = vpack.c.bf16 %v347_v15, %v346_v11  ;;  %v341_v24 = vadd.f32 %v331_v51, %v248_v20  ;;  %v349_v25 = vadd.f32 %v331_v51, %v268_v21 }
 0x103   :  { %400 = vst [vmem:[%s644_s4 + $0x10] sm:$0xff] %v440_v22  ;;  %404 = vst [vmem:[%s644_s4 + $0x30] sm:$0xff] %v444_v23  ;;  %v441_v26 = vpack.c.bf16 %v341_v24, %v340_v18  ;;  %v445_v27 = vpack.c.bf16 %v349_v25, %v348_v19 }
 0x105   :  { %401 = vst [vmem:[%s644_s4 + $0x18] sm:$0xff] %v441_v26  ;;  %405 = vst [vmem:[%s644_s4 + $0x38] sm:$0xff] %v445_v27 }

// kernel: deepspeech_forward.8
= control target key start
LH: loop header
LB: loop body
LE: loop exit
PB: predicated region body
PF: predicated region fallthrough
CT: control target
= control target key end

     0   :  { %v472_v1 = vmov 0   ;;  %v305_v21 = vlaneseq  ;;  %s580_s1 = inlined_call_operand.vmem [shape: bf16[128,256], index: 1, kind: input, shape index: {}]   ;;  %s581_s0 = inlined_call_operand.vmem [shape: bf16[64,128], index: 0, kind: input, shape index: {}]   ;;  %s582_s2 = inlined_call_operand.vmem [shape: f32[1,256], index: 2, kind: input, shape index: {}]   ;;  %s583_s3 = inlined_call_operand.vmem [shape: bf16[64,256], index: 3, kind: output, shape index: {}]  }
   0x1   :  { %v444_v0 = vld [vmem:[%s580_s1 + $0x4] ss:$8 sps:$4 sm:$0xff]   ;;  %211 = vmatprep.mubr.bf16.mxu0 %v472_v1  ;;  %231 = vmatprep.mubr.bf16.mxu1 %v472_v1  ;;  %v446_v2 = vld [vmem:[%s580_s1] ss:$8 sps:$4 sm:$0xff]   ;;  %v447_v3 = vld [vmem:[%s580_s1 + $0x14] ss:$8 sps:$4 sm:$0xff]  }
   0x2   :  { %179 = vmatprep.subr.bf16.mxu0 %v444_v0  ;;  %427 = vmatprep.subr.bf16.mxu1 %v444_v0  ;;  %v449_v4 = vld [vmem:[%s580_s1 + $0x10] ss:$8 sps:$4 sm:$0xff]   ;;  %v450_v5 = vld [vmem:[%s580_s1 + $0x24] ss:$8 sps:$4 sm:$0xff]   ;;  %v452_v6 = vld [vmem:[%s580_s1 + $0x20] ss:$8 sps:$4 sm:$0xff]  }
   0x3   :  { %180 = vmatpush1.bf16.msra.mxu0 %v446_v2  ;;  %435 = vmatpush1.bf16.msra.mxu1 %v446_v2  ;;  %v453_v7 = vld [vmem:[%s580_s1 + $0x34] ss:$8 sps:$4 sm:$0xff]   ;;  %v455_v8 = vld [vmem:[%s580_s1 + $0x30] ss:$8 sps:$4 sm:$0xff]   ;;  %v456_v9 = vld [vmem:[%s580_s1 + $0x44] ss:$8 sps:$4 sm:$0xff]  }
   0x4   :  { %181 = vmatprep.subr.bf16.mxu0 %v447_v3  ;;  %428 = vmatprep.subr.bf16.mxu1 %v447_v3  ;;  %v458_v10 = vld [vmem:[%s580_s1 + $0x40] ss:$8 sps:$4 sm:$0xff]   ;;  %v459_v11 = vld [vmem:[%s580_s1 + $0x54] ss:$8 sps:$4 sm:$0xff]   ;;  %v461_v12 = vld [vmem:[%s580_s1 + $0x50] ss:$8 sps:$4 sm:$0xff]  }
   0x5   :  { %v462_v13 = vld [vmem:[%s580_s1 + $0x64] ss:$8 sps:$4 sm:$0xff]   ;;  %v464_v14 = vld [vmem:[%s580_s1 + $0x60] ss:$8 sps:$4 sm:$0xff]   ;;  %v465_v15 = vld [vmem:[%s580_s1 + $0x74] ss:$8 sps:$4 sm:$0xff]  }
   0x6   :  { %v467_v16 = vld [vmem:[%s580_s1 + $0x70] ss:$8 sps:$4 sm:$0xff]   ;;  %v468_v17 = vld [vmem:[%s581_s0] sm:$0xff]   ;;  %v470_v19 = vld [vmem:[%s581_s0 + $0x8] sm:$0xff]   ;;  %v306_v22 = vshrl.u32 %v305_v21, 7 }
   0x7   :  { %182 = vmatpush1.bf16.msra.mxu0 %v449_v4  ;;  %436 = vmatpush1.bf16.msra.mxu1 %v449_v4  ;;  %v469_v18 = vld [vmem:[%s581_s0 + $0x10] sm:$0xff]   ;;  %v471_v20 = vld [vmem:[%s581_s0 + $0x18] sm:$0xff]   ;;  %v303_v24 = vld [vmem:[%s582_s2] sm:$0x3] }
   0x8   :  { %183 = vmatprep.subr.bf16.mxu0 %v450_v5  ;;  %429 = vmatprep.subr.bf16.mxu1 %v450_v5  ;;  %v307_v23 = vsub.s32 0, %v306_v22  ;;  %v311_v25 = vsub.s32 1, %v306_v22 }
   0xa   :  { %v308_v26 = vrot.slane %v303_v24, %v307_v23  ;;  %v312_v27 = vrot.slane %v303_v24, %v311_v25 }
   0xb   :  { %184 = vmatpush1.bf16.msra.mxu0 %v452_v6  ;;  %437 = vmatpush1.bf16.msra.mxu1 %v452_v6 }
   0xc   :  { %185 = vmatprep.subr.bf16.mxu0 %v453_v7  ;;  %430 = vmatprep.subr.bf16.mxu1 %v453_v7 }
   0xf   :  { %186 = vmatpush1.bf16.msra.mxu0 %v455_v8  ;;  %438 = vmatpush1.bf16.msra.mxu1 %v455_v8 }
  0x10   :  { %187 = vmatprep.subr.bf16.mxu0 %v456_v9  ;;  %431 = vmatprep.subr.bf16.mxu1 %v456_v9 }
  0x13   :  { %188 = vmatpush1.bf16.msra.mxu0 %v458_v10  ;;  %439 = vmatpush1.bf16.msra.mxu1 %v458_v10 }
  0x14   :  { %189 = vmatprep.subr.bf16.mxu0 %v459_v11  ;;  %432 = vmatprep.subr.bf16.mxu1 %v459_v11 }
  0x17   :  { %190 = vmatpush1.bf16.msra.mxu0 %v461_v12  ;;  %440 = vmatpush1.bf16.msra.mxu1 %v461_v12 }
  0x18   :  { %191 = vmatprep.subr.bf16.mxu0 %v462_v13  ;;  %433 = vmatprep.subr.bf16.mxu1 %v462_v13 }
  0x1b   :  { %192 = vmatpush1.bf16.msra.mxu0 %v464_v14  ;;  %441 = vmatpush1.bf16.msra.mxu1 %v464_v14 }
  0x1c   :  { %193 = vmatprep.subr.bf16.mxu0 %v465_v15  ;;  %434 = vmatprep.subr.bf16.mxu1 %v465_v15 }
  0x1f   :  { %194 = vmatpush1.bf16.msra.mxu0 %v467_v16  ;;  %442 = vmatpush1.bf16.msra.mxu1 %v467_v16 }
  0x22   :  { %212 = vmatmul.mubr.bf16.vlgmr.msra.gmra.mrb[0].mxu0 %v468_v17  ;;  %232 = vmatmul.mubr.bf16.vlgmr.msra.gmra.mrb[0].mxu1 %v469_v18 }
  0x23   :  { %221 = vmatprep.mubr.bf16.mxu0 %v472_v1  ;;  %241 = vmatprep.mubr.bf16.mxu1 %v472_v1 }
  0x2a   :  { %222 = vmatmul.mubr.bf16.gmra.mrb[4].mxu0 %v470_v19  ;;  %242 = vmatmul.mubr.bf16.gmra.mrb[4].mxu1 %v471_v20 }
  0xf5   :  { %v213_v28 = vpop.f32.mrb[0].mxu0  ;;  %v233_v29 = vpop.f32.mrb[0].mxu1 }
  0xf6   :  { %v315_v30 = vadd.f32 %v308_v26, %v213_v28  ;;  %v323_v31 = vadd.f32 %v308_v26, %v233_v29  ;;  %v215_v32 = vpop.f32.mrb[1].mxu0  ;;  %v235_v33 = vpop.f32.mrb[1].mxu1 }
  0xf7   :  { %v316_v34 = vadd.f32 %v312_v27, %v215_v32  ;;  %v324_v35 = vadd.f32 %v312_v27, %v235_v33  ;;  %v217_v36 = vpop.f32.mrb[2].mxu0  ;;  %v237_v37 = vpop.f32.mrb[2].mxu1 }
  0xf8   :  { %v317_v38 = vadd.f32 %v308_v26, %v217_v36  ;;  %v325_v39 = vadd.f32 %v308_v26, %v237_v37  ;;  %v219_v40 = vpop.f32.mrb[3].mxu0  ;;  %v239_v41 = vpop.f32.mrb[3].mxu1 }
  0xf9   :  { %v419_v42 = vpack.c.bf16 %v316_v34, %v315_v30  ;;  %v423_v43 = vpack.c.bf16 %v324_v35, %v323_v31  ;;  %v318_v44 = vadd.f32 %v312_v27, %v219_v40  ;;  %v326_v45 = vadd.f32 %v312_v27, %v239_v41 }
  0xfb   :  { %379 = vst [vmem:[%s583_s3] sm:$0xff] %v419_v42  ;;  %383 = vst [vmem:[%s583_s3 + $0x20] sm:$0xff] %v423_v43  ;;  %v420_v46 = vpack.c.bf16 %v318_v44, %v317_v38  ;;  %v424_v47 = vpack.c.bf16 %v326_v45, %v325_v39 }
  0xfd   :  { %380 = vst [vmem:[%s583_s3 + $0x8] sm:$0xff] %v420_v46  ;;  %384 = vst [vmem:[%s583_s3 + $0x28] sm:$0xff] %v424_v47  ;;  %v223_v48 = vpop.f32.mrb[4].mxu0  ;;  %v243_v49 = vpop.f32.mrb[4].mxu1 }
  0xfe   :  { %v319_v50 = vadd.f32 %v308_v26, %v223_v48  ;;  %v327_v51 = vadd.f32 %v308_v26, %v243_v49  ;;  %v225_v52 = vpop.f32.mrb[5].mxu0  ;;  %v245_v53 = vpop.f32.mrb[5].mxu1 }
  0xff   :  { %v320_v54 = vadd.f32 %v312_v27, %v225_v52  ;;  %v328_v55 = vadd.f32 %v312_v27, %v245_v53  ;;  %v227_v56 = vpop.f32.mrb[6].mxu0  ;;  %v247_v57 = vpop.f32.mrb[6].mxu1 }
 0x100   :  { %v321_v58 = vadd.f32 %v308_v26, %v227_v56  ;;  %v329_v59 = vadd.f32 %v308_v26, %v247_v57  ;;  %v229_v60 = vpop.f32.mrb[7].mxu0  ;;  %v249_v61 = vpop.f32.mrb[7].mxu1 }
 0x101   :  { %v421_v62 = vpack.c.bf16 %v320_v54, %v319_v50  ;;  %v425_v63 = vpack.c.bf16 %v328_v55, %v327_v51  ;;  %v322_v0 = vadd.f32 %v312_v27, %v229_v60  ;;  %v330_v1 = vadd.f32 %v312_v27, %v249_v61 }
 0x103   :  { %381 = vst [vmem:[%s583_s3 + $0x10] sm:$0xff] %v421_v62  ;;  %385 = vst [vmem:[%s583_s3 + $0x30] sm:$0xff] %v425_v63  ;;  %v422_v2 = vpack.c.bf16 %v322_v0, %v321_v58  ;;  %v426_v3 = vpack.c.bf16 %v330_v1, %v329_v59 }
 0x105   :  { %382 = vst [vmem:[%s583_s3 + $0x18] sm:$0xff] %v422_v2  ;;  %386 = vst [vmem:[%s583_s3 + $0x38] sm:$0xff] %v426_v3 }

// kernel: deepspeech_forward.7
= control target key start
LH: loop header
LB: loop body
LE: loop exit
PB: predicated region body
PF: predicated region fallthrough
CT: control target
= control target key end

     0   :  { %vm107_vm0 = vcmask 1043456   ;;  %vm108_vm1 = vcmask 1044480   ;;  %v521_v1 = vmov 65535   ;;  %vm82_vm2 = vcmask 72704   ;;  %s628_s1 = inlined_call_operand.vmem [shape: bf16[9,128], index: 1, kind: input, shape index: {}]   ;;  %s629_s0 = inlined_call_operand.vmem [shape: f32[128,9], index: 0, kind: input, shape index: {}]   ;;  %s630_s2 = inlined_call_operand.vmem [shape: f32[1,128], index: 2, kind: input, shape index: {}]   ;;  %s631_s3 = inlined_call_operand.vmem [shape: bf16[128,128], index: 3, kind: output, shape index: {}]  }
   0x1   :  { %v520_v0 = vld [vmem:[%s628_s1] sm:$0x1f]   ;;  %v109_v2 = vsel %vm107_vm0, 4294967295, %v521_v1  ;;  %v36_v4 = vld [vmem:[%s629_s0 + $0x8] sm:$0xff]  ;;  %v37_v9 = vld [vmem:[%s629_s0 + $0x10] sm:$0xff] }
   0x2   :  { %v35_v3 = vld [vmem:[%s629_s0] sm:$0xff]  ;;  %v110_v6 = vsel %vm108_vm1, %v109_v2, 0  ;;  %v44_v8 = vld [vmem:[%s629_s0 + $0x48] sm:$0xff]  ;;  %v38_v10 = vld [vmem:[%s629_s0 + $0x18] sm:$0xff] }
   0x3   :  { %v43_v5 = vld [vmem:[%s629_s0 + $0x40] sm:$0xff]  ;;  %v67_v7 = vpack.c.bf16 %v36_v4, %v35_v3  ;;  %v112_v11 = vand.u32 %v520_v0, %v110_v6  ;;  %v45_v13 = vld [vmem:[%s629_s0 + $0x50] sm:$0xff]  ;;  %v46_v14 = vld [vmem:[%s629_s0 + $0x58] sm:$0xff]  ;;  %v68_v19 = vpack.c.bf16 %v38_v10, %v37_v9 }
   0x4   :  { %v71_v12 = vpack.c.bf16 %v44_v8, %v43_v5  ;;  %v39_v15 = vld [vmem:[%s629_s0 + $0x20] sm:$0xff]  ;;  %v40_v16 = vld [vmem:[%s629_s0 + $0x28] sm:$0xff]  ;;  %v72_v20 = vpack.c.bf16 %v46_v14, %v45_v13  ;;  %v41_v23 = vld [vmem:[%s629_s0 + $0x30] sm:$0xff] }
   0x5   :  { %501 = vmatprep.mubr.msk.bf16.mxu0 %vm82_vm2, %v67_v7  ;;  %v47_v17 = vld [vmem:[%s629_s0 + $0x60] sm:$0xff]  ;;  %v48_v18 = vld [vmem:[%s629_s0 + $0x68] sm:$0xff]  ;;  %499 = vmatprep.subr.bf16.mxu0 %v112_v11  ;;  %v69_v21 = vpack.c.bf16 %v40_v16, %v39_v15  ;;  %v42_v24 = vld [vmem:[%s629_s0 + $0x38] sm:$0xff] }
   0x6   :  { %517 = vmatprep.subr.bf16.mxu1 %v112_v11  ;;  %500 = vmatpush3.bf16.msra.mxu0 %v112_v11  ;;  %v73_v22 = vpack.c.bf16 %v48_v18, %v47_v17  ;;  %v49_v25 = vld [vmem:[%s629_s0 + $0x70] sm:$0xff]  ;;  %v50_v26 = vld [vmem:[%s629_s0 + $0x78] sm:$0xff]  ;;  %v70_v27 = vpack.c.bf16 %v42_v24, %v41_v23  ;;  %v410_v29 = vld [vmem:[%s630_s2] ss:$0 sm:$0xff] }
   0x7   :  { %518 = vmatpush3.bf16.msra.mxu1 %v112_v11  ;;  %509 = vmatprep.mubr.msk.bf16.mxu1 %vm82_vm2, %v71_v12  ;;  %v74_v28 = vpack.c.bf16 %v50_v26, %v49_v25 }
   0x9   :  { %502 = vmatmul.mubr.msk.bf16.vlgmr.msra.gmra.mrb[0].mxu0 %vm82_vm2, %v68_v19 }
   0xa   :  { %510 = vmatmul.mubr.msk.bf16.vlgmr.msra.gmra.mrb[0].mxu1 %vm82_vm2, %v72_v20  ;;  %505 = vmatprep.mubr.msk.bf16.mxu0 %vm82_vm2, %v69_v21 }
   0xb   :  { %513 = vmatprep.mubr.msk.bf16.mxu1 %vm82_vm2, %v73_v22 }
  0x11   :  { %506 = vmatmul.mubr.msk.bf16.gmra.mrb[4].mxu0 %vm82_vm2, %v70_v27 }
  0x12   :  { %514 = vmatmul.mubr.msk.bf16.gmra.mrb[4].mxu1 %vm82_vm2, %v74_v28 }
  0xdc   :  { %v503_v30 = vpop.f32.mrb[0].mxu0 }
  0xdd   :  { %v511_v31 = vpop.f32.mrb[0].mxu1  ;;  %v271_v32 = vadd.f32 %v503_v30, %v410_v29  ;;  %v148_v34 = vpop.f32.mrb[1].mxu0 }
  0xde   :  { %v279_v33 = vadd.f32 %v511_v31, %v410_v29  ;;  %v180_v35 = vpop.f32.mrb[1].mxu1  ;;  %v269_v36 = vadd.f32 %v410_v29, %v148_v34  ;;  %v504_v38 = vpop.f32.mrb[2].mxu0 }
  0xdf   :  { %v277_v37 = vadd.f32 %v410_v29, %v180_v35  ;;  %v512_v39 = vpop.f32.mrb[2].mxu1  ;;  %v287_v40 = vmax.f32 %v271_v32, 0.0  ;;  %v272_v42 = vadd.f32 %v504_v38, %v410_v29  ;;  %v151_v44 = vpop.f32.mrb[3].mxu0 }
  0xe0   :  { %v295_v41 = vmax.f32 %v279_v33, 0.0  ;;  %v280_v43 = vadd.f32 %v512_v39, %v410_v29  ;;  %v183_v45 = vpop.f32.mrb[3].mxu1  ;;  %v285_v46 = vmax.f32 %v269_v36, 0.0  ;;  %v270_v48 = vadd.f32 %v410_v29, %v151_v44 }
  0xe1   :  { %v293_v47 = vmax.f32 %v277_v37, 0.0  ;;  %v278_v49 = vadd.f32 %v410_v29, %v183_v45  ;;  %v288_v50 = vmax.f32 %v272_v42, 0.0  ;;  %v303_v54 = vmin.f32 %v287_v40, 20.0 }
  0xe2   :  { %v296_v51 = vmax.f32 %v280_v43, 0.0  ;;  %v286_v52 = vmax.f32 %v270_v48, 0.0  ;;  %v311_v55 = vmin.f32 %v295_v41, 20.0  ;;  %v301_v58 = vmin.f32 %v285_v46, 20.0 }
  0xe3   :  { %v294_v53 = vmax.f32 %v278_v49, 0.0  ;;  %v304_v56 = vmin.f32 %v288_v50, 20.0  ;;  %v309_v59 = vmin.f32 %v293_v47, 20.0 }
  0xe4   :  { %v312_v57 = vmin.f32 %v296_v51, 20.0  ;;  %v302_v60 = vmin.f32 %v286_v52, 20.0  ;;  %v507_v62 = vpop.f32.mrb[4].mxu0 }
  0xe5   :  { %v310_v61 = vmin.f32 %v294_v53, 20.0  ;;  %v515_v63 = vpop.f32.mrb[4].mxu1  ;;  %v451_v0 = vpack.c.bf16 %v304_v56, %v303_v54  ;;  %v275_v2 = vadd.f32 %v507_v62, %v410_v29  ;;  %v164_v4 = vpop.f32.mrb[5].mxu0 }
  0xe6   :  { %v471_v1 = vpack.c.bf16 %v312_v57, %v311_v55  ;;  %v283_v3 = vadd.f32 %v515_v63, %v410_v29  ;;  %v196_v5 = vpop.f32.mrb[5].mxu1  ;;  %v446_v6 = vpack.c.bf16 %v302_v60, %v301_v58  ;;  %v273_v8 = vadd.f32 %v410_v29, %v164_v4  ;;  %v508_v10 = vpop.f32.mrb[6].mxu0 }
  0xe7   :  { %v466_v7 = vpack.c.bf16 %v310_v61, %v309_v59  ;;  %v281_v9 = vadd.f32 %v410_v29, %v196_v5  ;;  %v516_v11 = vpop.f32.mrb[6].mxu1  ;;  %483 = vst [vmem:[%s631_s3 + $0x8] sm:$0xff] %v451_v0   ;;  %v291_v12 = vmax.f32 %v275_v2, 0.0  ;;  %v276_v14 = vadd.f32 %v508_v10, %v410_v29  ;;  %v167_v16 = vpop.f32.mrb[7].mxu0 }
  0xe8   :  { %487 = vst [vmem:[%s631_s3 + $0x28] sm:$0xff] %v471_v1   ;;  %v299_v13 = vmax.f32 %v283_v3, 0.0  ;;  %v284_v15 = vadd.f32 %v516_v11, %v410_v29  ;;  %v199_v17 = vpop.f32.mrb[7].mxu1  ;;  %447 = vst [vmem:[%s631_s3] sm:$0xff] %v446_v6   ;;  %v289_v18 = vmax.f32 %v273_v8, 0.0  ;;  %v274_v20 = vadd.f32 %v410_v29, %v167_v16 }
  0xe9   :  { %486 = vst [vmem:[%s631_s3 + $0x20] sm:$0xff] %v466_v7   ;;  %v297_v19 = vmax.f32 %v281_v9, 0.0  ;;  %v282_v21 = vadd.f32 %v410_v29, %v199_v17  ;;  %v292_v22 = vmax.f32 %v276_v14, 0.0  ;;  %v307_v26 = vmin.f32 %v291_v12, 20.0 }
  0xea   :  { %v300_v23 = vmax.f32 %v284_v15, 0.0  ;;  %v290_v24 = vmax.f32 %v274_v20, 0.0  ;;  %v315_v27 = vmin.f32 %v299_v13, 20.0  ;;  %v305_v31 = vmin.f32 %v289_v18, 20.0 }
  0xeb   :  { %v298_v25 = vmax.f32 %v282_v21, 0.0  ;;  %v308_v28 = vmin.f32 %v292_v22, 20.0  ;;  %v313_v32 = vmin.f32 %v297_v19, 20.0 }
  0xec   :  { %v316_v30 = vmin.f32 %v300_v23, 20.0  ;;  %v306_v33 = vmin.f32 %v290_v24, 20.0 }
  0xed   :  { %v314_v34 = vmin.f32 %v298_v25, 20.0  ;;  %v461_v35 = vpack.c.bf16 %v308_v28, %v307_v26 }
  0xee   :  { %v481_v36 = vpack.c.bf16 %v316_v30, %v315_v27  ;;  %v456_v37 = vpack.c.bf16 %v306_v33, %v305_v31 }
  0xef   :  { %v476_v38 = vpack.c.bf16 %v314_v34, %v313_v32  ;;  %485 = vst [vmem:[%s631_s3 + $0x18] sm:$0xff] %v461_v35  }
  0xf0   :  { %489 = vst [vmem:[%s631_s3 + $0x38] sm:$0xff] %v481_v36   ;;  %484 = vst [vmem:[%s631_s3 + $0x10] sm:$0xff] %v456_v37  }
  0xf1   :  { %488 = vst [vmem:[%s631_s3 + $0x30] sm:$0xff] %v476_v38  }

// kernel: deepspeech_forward.9
= control target key start
LH: loop header
LB: loop body
LE: loop exit
PB: predicated region body
PF: predicated region fallthrough
CT: control target
= control target key end

     0   :  { %v1727_v1 = vmov 0.0   ;;  %vm1728_vm0 = vmmov 0   ;;  %v1729_v18 = vmov 0.0|0.0   ;;  %s2260_s0 = inlined_call_operand.vmem [shape: bf16[8,8,256], index: 0, kind: input, shape index: {}, may-alias: {0,1}]   ;;  %s2261_s1 = inlined_call_operand.vmem [shape: bf16[8,8,256], index: 1, kind: input, shape index: {}, may-alias: {0,1}]   ;;  %s2262_s2 = inlined_call_operand.vmem [shape: bf16[128,128], index: 2, kind: input, shape index: {}]   ;;  %s2263_s3 = inlined_call_operand.vmem [shape: bf16[128,128], index: 3, kind: input, shape index: {}]   ;;  %s2264_s4 = inlined_call_operand.vmem [shape: f32[1,128], index: 4, kind: input, shape index: {}]   ;;  %s2265_s5 = inlined_call_operand.vmem [shape: f32[1,128], index: 5, kind: input, shape index: {}]   ;;  %s2266_s6 = inlined_call_operand.vmem [shape: bf16[8,8,128], index: 6, kind: output, shape index: {0}]   ;;  %s2267_s7 = inlined_call_operand.vmem [shape: bf16[8,8,128], index: 7, kind: output, shape index: {1}]  }
   0x1   :  { %v1773_v0 = vld [vmem:[%s2262_s2] sm:$0xff]   ;;  %1388 = vmatprep.subr.bf16.mxu0 %v1727_v1  ;;  %1408 = vmatprep.subr.bf16.mxu1 %v1727_v1  ;;  %v1786_v3 = vld [vmem:[%s2262_s2 + $0x8] sm:$0xff]   ;;  %v1804_v5 = vld [vmem:[%s2262_s2 + $0x10] sm:$0xff]  }
   0x2   :  { %v1780_v2 = vld [vmem:[%s2263_s3] sm:$0xff]   ;;  %1389 = vmatpush3.bf16.msra.mxu0 %v1773_v0  ;;  %1404 = vmatprep.mubr.msk.bf16.mxu0 %vm1728_vm0, %v1727_v1  ;;  %v1795_v4 = vld [vmem:[%s2263_s3 + $0x8] sm:$0xff]   ;;  %v1811_v6 = vld [vmem:[%s2263_s3 + $0x10] sm:$0xff]  }
   0x3   :  { %1409 = vmatpush3.bf16.msra.mxu1 %v1780_v2  ;;  %1390 = vmatprep.subr.bf16.mxu0 %v1727_v1  ;;  %v1818_v7 = vld [vmem:[%s2262_s2 + $0x18] sm:$0xff]   ;;  %v1832_v9 = vld [vmem:[%s2262_s2 + $0x20] sm:$0xff]   ;;  %v1849_v12 = vld [vmem:[%s2262_s2 + $0x28] sm:$0xff]  }
   0x4   :  { %1410 = vmatprep.subr.bf16.mxu1 %v1727_v1  ;;  %1424 = vmatprep.mubr.msk.bf16.mxu1 %vm1728_vm0, %v1727_v1  ;;  %v1825_v8 = vld [vmem:[%s2263_s3 + $0x18] sm:$0xff]   ;;  %v1839_v10 = vld [vmem:[%s2263_s3 + $0x20] sm:$0xff]   ;;  %v1856_v13 = vld [vmem:[%s2263_s3 + $0x28] sm:$0xff]  }
   0x5   :  { %v30_v11 = vld [vmem:[%s2260_s0] sm:$0xf]  ;;  %v1863_v14 = vld [vmem:[%s2262_s2 + $0x30] sm:$0xff]   ;;  %v1877_v16 = vld [vmem:[%s2262_s2 + $0x38] sm:$0xff]  }
   0x6   :  { %1391 = vmatpush3.bf16.msra.mxu0 %v1786_v3  ;;  %31 = vst [vmem:[#allocation4] sm:$0xf] %v30_v11  ;;  %v1870_v15 = vld [vmem:[%s2263_s3 + $0x30] sm:$0xff]   ;;  %v1884_v17 = vld [vmem:[%s2263_s3 + $0x38] sm:$0xff]   ;;  %v32_v20 = vld [vmem:[%s2260_s0 + $0x8] sm:$0xf] }
   0x7   :  { %1411 = vmatpush3.bf16.msra.mxu1 %v1795_v4  ;;  %1392 = vmatprep.subr.bf16.mxu0 %v1727_v1  ;;  %v1211_v19 = vld [vmem:[%s2261_s1 + $0x3c] sm:$0xf]  ;;  %33 = vst [vmem:[#allocation4 + $0x4] sm:$0xf] %v32_v20  ;;  %v1936_v25 = vld [vmem:[%s2264_s4] ss:$0 sm:$0xff] }
   0x8   :  { %1412 = vmatprep.subr.bf16.mxu1 %v1727_v1  ;;  %120 = vst [vmem:[#allocation5 + $0x1c] sm:$0xf] %v1211_v19  ;;  %v1941_v28 = vld [vmem:[%s2265_s5] ss:$0 sm:$0xff]  ;;  %v1210_v43 = vld [vmem:[%s2261_s1 + $0x34] sm:$0xf] }
   0x9   :  { %118 = vst [vmem:[#allocation5 + $0x18] sm:$0xf] %v1210_v43  ;;  %v34_v44 = vld [vmem:[%s2260_s0 + $0x10] sm:$0xf]  ;;  %v36_v19 = vld [vmem:[%s2260_s0 + $0x18] sm:$0xf] }
   0xa   :  { %1393 = vmatpush3.bf16.msra.mxu0 %v1804_v5  ;;  %35 = vst [vmem:[#allocation4 + $0x8] sm:$0xf] %v34_v44  ;;  %37 = vst [vmem:[#allocation4 + $0xc] sm:$0xf] %v36_v19  ;;  %v38_v43 = vld [vmem:[%s2260_s0 + $0x20] sm:$0xf] }
   0xb   :  { %1413 = vmatpush3.bf16.msra.mxu1 %v1811_v6  ;;  %1394 = vmatprep.subr.bf16.mxu0 %v1727_v1  ;;  %39 = vst [vmem:[#allocation4 + $0x10] sm:$0xf] %v38_v43 }
   0xc   :  { %1414 = vmatprep.subr.bf16.mxu1 %v1727_v1 }
   0xd   :  { %v238_v21 = vld [vmem:[#allocation4] sm:$0xf] }
   0xe   :  { %1395 = vmatpush3.bf16.msra.mxu0 %v1818_v7  ;;  %v239_v23 = vunpack.c.l.bf16 %v238_v21  ;;  %v437_v45 = vld [vmem:[#allocation4 + $0x4] sm:$0xf] }
   0xf   :  { %1415 = vmatpush3.bf16.msra.mxu1 %v1825_v8  ;;  %1396 = vmatprep.subr.bf16.mxu0 %v1727_v1  ;;  %v337_v22 = vld [vmem:[#allocation5 + $0x1c] sm:$0xf]  ;;  %v438_v47 = vunpack.c.l.bf16 %v437_v45 }
  0x10   :  { %1416 = vmatprep.subr.bf16.mxu1 %v1727_v1  ;;  %v338_v24 = vunpack.c.l.bf16 %v337_v22  ;;  %v489_v46 = vld [vmem:[#allocation5 + $0x18] sm:$0xf] }
  0x11   :  { %v490_v48 = vunpack.c.l.bf16 %v489_v46  ;;  %v541_v20 = vld [vmem:[#allocation4 + $0x8] sm:$0xf]  ;;  %v645_v44 = vld [vmem:[#allocation4 + $0xc] sm:$0xf] }
  0x12   :  { %1397 = vmatpush3.bf16.msra.mxu0 %v1832_v9  ;;  %v542_v22 = vunpack.c.l.bf16 %v541_v20  ;;  %v646_v46 = vunpack.c.l.bf16 %v645_v44  ;;  %v749_v19 = vld [vmem:[#allocation4 + $0x10] sm:$0xf] }
  0x13   :  { %1417 = vmatpush3.bf16.msra.mxu1 %v1839_v10  ;;  %1398 = vmatprep.subr.bf16.mxu0 %v1727_v1 }
  0x14   :  { %1418 = vmatprep.subr.bf16.mxu1 %v1727_v1 }
  0x16   :  { %1399 = vmatpush3.bf16.msra.mxu0 %v1849_v12 }
  0x17   :  { %1419 = vmatpush3.bf16.msra.mxu1 %v1856_v13  ;;  %1400 = vmatprep.subr.bf16.mxu0 %v1727_v1 }
  0x18   :  { %1420 = vmatprep.subr.bf16.mxu1 %v1727_v1 }
  0x1a   :  { %1401 = vmatpush3.bf16.msra.mxu0 %v1863_v14 }
  0x1b   :  { %1421 = vmatpush3.bf16.msra.mxu1 %v1870_v15  ;;  %1402 = vmatprep.subr.bf16.mxu0 %v1727_v1 }
  0x1c   :  { %1422 = vmatprep.subr.bf16.mxu1 %v1727_v1 }
  0x1e   :  { %1403 = vmatpush3.bf16.msra.mxu0 %v1877_v16 }
  0x1f   :  { %1423 = vmatpush3.bf16.msra.mxu1 %v1884_v17  ;;  %1428 = vmatprep.subr.bf16.mxu0 %v1727_v1 }
  0x20   :  { %1448 = vmatprep.subr.bf16.mxu1 %v1727_v1 }
  0x21   :  { %1405 = vmatmul.mubr.bf16.vlgmr.msra.gmra.mrb[0].mxu0 %v1729_v18 }
  0x22   :  { %1425 = vmatmul.mubr.bf16.vlgmr.msra.gmra.mrb[0].mxu1 %v1729_v18  ;;  %1429 = vmatpush3.bf16.msra.mxu0 %v1773_v0  ;;  %v1209_v18 = vld [vmem:[%s2261_s1 + $0x2c] sm:$0xf] }
  0x23   :  { %1449 = vmatpush3.bf16.msra.mxu1 %v1780_v2  ;;  %1430 = vmatprep.subr.bf16.mxu0 %v1727_v1  ;;  %116 = vst [vmem:[#allocation5 + $0x14] sm:$0xf] %v1209_v18  ;;  %v40_v18 = vld [vmem:[%s2260_s0 + $0x28] sm:$0xf] }
  0x24   :  { %1450 = vmatprep.subr.bf16.mxu1 %v1727_v1  ;;  %1444 = vmatprep.mubr.msk.bf16.mxu0 %vm1728_vm0, %v1727_v1  ;;  %41 = vst [vmem:[#allocation4 + $0x14] sm:$0xf] %v40_v18 }
  0x25   :  { %1464 = vmatprep.mubr.msk.bf16.mxu1 %vm1728_vm0, %v1727_v1 }
  0x26   :  { %1431 = vmatpush3.bf16.msra.mxu0 %v1786_v3 }
  0x27   :  { %1451 = vmatpush3.bf16.msra.mxu1 %v1795_v4  ;;  %1432 = vmatprep.subr.bf16.mxu0 %v1727_v1 }
  0x28   :  { %1452 = vmatprep.subr.bf16.mxu1 %v1727_v1 }
  0x2a   :  { %1433 = vmatpush3.bf16.msra.mxu0 %v1804_v5  ;;  %v593_v21 = vld [vmem:[#allocation5 + $0x14] sm:$0xf] }
  0x2b   :  { %1453 = vmatpush3.bf16.msra.mxu1 %v1811_v6  ;;  %1434 = vmatprep.subr.bf16.mxu0 %v1727_v1  ;;  %v853_v43 = vld [vmem:[#allocation4 + $0x14] sm:$0xf] }
  0x2c   :  { %1454 = vmatprep.subr.bf16.mxu1 %v1727_v1 }
  0x2e   :  { %1435 = vmatpush3.bf16.msra.mxu0 %v1818_v7 }
  0x2f   :  { %1455 = vmatpush3.bf16.msra.mxu1 %v1825_v8  ;;  %1436 = vmatprep.subr.bf16.mxu0 %v1727_v1 }
  0x30   :  { %1456 = vmatprep.subr.bf16.mxu1 %v1727_v1 }
  0x32   :  { %1437 = vmatpush3.bf16.msra.mxu0 %v1832_v9 }
  0x33   :  { %1457 = vmatpush3.bf16.msra.mxu1 %v1839_v10  ;;  %1438 = vmatprep.subr.bf16.mxu0 %v1727_v1 }
  0x34   :  { %1458 = vmatprep.subr.bf16.mxu1 %v1727_v1 }
  0x36   :  { %1439 = vmatpush3.bf16.msra.mxu0 %v1849_v12 }
  0x37   :  { %1459 = vmatpush3.bf16.msra.mxu1 %v1856_v13  ;;  %1440 = vmatprep.subr.bf16.mxu0 %v1727_v1 }
  0x38   :  { %1460 = vmatprep.subr.bf16.mxu1 %v1727_v1 }
  0x3a   :  { %1441 = vmatpush3.bf16.msra.mxu0 %v1863_v14 }
  0x3b   :  { %1461 = vmatpush3.bf16.msra.mxu1 %v1870_v15  ;;  %1442 = vmatprep.subr.bf16.mxu0 %v1727_v1 }
  0x3c   :  { %1462 = vmatprep.subr.bf16.mxu1 %v1727_v1 }
  0x3e   :  { %1443 = vmatpush3.bf16.msra.mxu0 %v1877_v16 }
  0x3f   :  { %1463 = vmatpush3.bf16.msra.mxu1 %v1884_v17  ;;  %1468 = vmatprep.subr.bf16.mxu0 %v1727_v1 }
  0x40   :  { %1488 = vmatprep.subr.bf16.mxu1 %v1727_v1 }
  0xf4   :  { %v324_v26 = vpop.f32.mrb[0].mxu0 }
  0xf5   :  { %v330_v27 = vadd.f32 %v324_v26, %v239_v23  ;;  %v423_v29 = vpop.f32.mrb[0].mxu1  ;;  %v1406_v30 = vpop.f32.mrb[1].mxu0  ;;  %v594_v23 = vunpack.c.l.bf16 %v593_v21  ;;  %v750_v21 = vunpack.c.l.bf16 %v749_v19 }
  0xf6   :  { %v429_v31 = vadd.f32 %v423_v29, %v338_v24  ;;  %v1426_v32 = vpop.f32.mrb[1].mxu1  ;;  %v327_v33 = vpop.f32.mrb[2].mxu0 }
  0xf7   :  { %v331_v34 = vadd.f32 %v1936_v25, %v330_v27  ;;  %v426_v35 = vpop.f32.mrb[2].mxu1  ;;  %v1407_v36 = vpop.f32.mrb[3].mxu0 }
  0xf8   :  { %v430_v37 = vadd.f32 %v1941_v28, %v429_v31  ;;  %v1427_v38 = vpop.f32.mrb[3].mxu1 }
  0xf9   :  { %v332_v39 = vmax.f32 %v331_v34, 0.0 }
  0xfa   :  { %v431_v40 = vmax.f32 %v430_v37, 0.0 }
  0xfb   :  { %v334_v41 = vpack.c.bf16 %v332_v39, %v332_v39 }
  0xfc   :  { %v433_v42 = vpack.c.bf16 %v431_v40, %v431_v40 }
  0xfd   :  { %335 = vst [vmem:[%s2266_s6] sm:$0xf] %v334_v41  ;;  %1445 = vmatmul.mubr.bf16.vlgmr.msra.gmra.mrb[4].mxu0 %v334_v41 }
  0xfe   :  { %1230 = vst [vmem:[%s2267_s7 + $0x1c] sm:$0xf] %v433_v42  ;;  %1465 = vmatmul.mubr.bf16.vlgmr.msra.gmra.mrb[4].mxu1 %v433_v42  ;;  %1469 = vmatpush3.bf16.msra.mxu0 %v1773_v0  ;;  %v1208_v42 = vld [vmem:[%s2261_s1 + $0x24] sm:$0xf] }
  0xff   :  { %1489 = vmatpush3.bf16.msra.mxu1 %v1780_v2  ;;  %1470 = vmatprep.subr.bf16.mxu0 %v1727_v1  ;;  %114 = vst [vmem:[#allocation5 + $0x10] sm:$0xf] %v1208_v42  ;;  %v42_v42 = vld [vmem:[%s2260_s0 + $0x30] sm:$0xf] }
 0x100   :  { %1490 = vmatprep.subr.bf16.mxu1 %v1727_v1  ;;  %1484 = vmatprep.mubr.msk.bf16.mxu0 %vm1728_vm0, %v1727_v1  ;;  %43 = vst [vmem:[#allocation4 + $0x18] sm:$0xf] %v42_v42 }
 0x101   :  { %1504 = vmatprep.mubr.msk.bf16.mxu1 %vm1728_vm0, %v1727_v1 }
 0x102   :  { %1471 = vmatpush3.bf16.msra.mxu0 %v1786_v3 }
 0x103   :  { %1491 = vmatpush3.bf16.msra.mxu1 %v1795_v4  ;;  %1472 = vmatprep.subr.bf16.mxu0 %v1727_v1 }
 0x104   :  { %1492 = vmatprep.subr.bf16.mxu1 %v1727_v1 }
 0x106   :  { %1473 = vmatpush3.bf16.msra.mxu0 %v1804_v5  ;;  %v697_v45 = vld [vmem:[#allocation5 + $0x10] sm:$0xf] }
 0x107   :  { %1493 = vmatpush3.bf16.msra.mxu1 %v1811_v6  ;;  %1474 = vmatprep.subr.bf16.mxu0 %v1727_v1 }
 0x108   :  { %1494 = vmatprep.subr.bf16.mxu1 %v1727_v1 }
 0x10a   :  { %1475 = vmatpush3.bf16.msra.mxu0 %v1818_v7 }
 0x10b   :  { %1495 = vmatpush3.bf16.msra.mxu1 %v1825_v8  ;;  %1476 = vmatprep.subr.bf16.mxu0 %v1727_v1 }
 0x10c   :  { %1496 = vmatprep.subr.bf16.mxu1 %v1727_v1 }
 0x10e   :  { %1477 = vmatpush3.bf16.msra.mxu0 %v1832_v9 }
 0x10f   :  { %1497 = vmatpush3.bf16.msra.mxu1 %v1839_v10  ;;  %1478 = vmatprep.subr.bf16.mxu0 %v1727_v1 }
 0x110   :  { %1498 = vmatprep.subr.bf16.mxu1 %v1727_v1 }
 0x112   :  { %1479 = vmatpush3.bf16.msra.mxu0 %v1849_v12 }
 0x113   :  { %1499 = vmatpush3.bf16.msra.mxu1 %v1856_v13  ;;  %1480 = vmatprep.subr.bf16.mxu0 %v1727_v1 }
 0x114   :  { %1500 = vmatprep.subr.bf16.mxu1 %v1727_v1 }
 0x116   :  { %1481 = vmatpush3.bf16.msra.mxu0 %v1863_v14 }
 0x117   :  { %1501 = vmatpush3.bf16.msra.mxu1 %v1870_v15  ;;  %1482 = vmatprep.subr.bf16.mxu0 %v1727_v1 }
 0x118   :  { %1502 = vmatprep.subr.bf16.mxu1 %v1727_v1 }
 0x11a   :  { %1483 = vmatpush3.bf16.msra.mxu0 %v1877_v16 }
 0x11b   :  { %1503 = vmatpush3.bf16.msra.mxu1 %v1884_v17  ;;  %1508 = vmatprep.subr.bf16.mxu0 %v1727_v1 }
 0x11c   :  { %1528 = vmatprep.subr.bf16.mxu1 %v1727_v1 }
 0x1d0   :  { %v475_v49 = vpop.f32.mrb[4].mxu0 }
 0x1d1   :  { %v481_v50 = vadd.f32 %v475_v49, %v438_v47  ;;  %v527_v51 = vpop.f32.mrb[4].mxu1  ;;  %v1446_v52 = vpop.f32.mrb[5].mxu0  ;;  %v698_v47 = vunpack.c.l.bf16 %v697_v45  ;;  %v854_v45 = vunpack.c.l.bf16 %v853_v43 }
 0x1d2   :  { %v533_v53 = vadd.f32 %v527_v51, %v490_v48  ;;  %v1466_v54 = vpop.f32.mrb[5].mxu1  ;;  %v478_v55 = vpop.f32.mrb[6].mxu0 }
 0x1d3   :  { %v482_v56 = vadd.f32 %v1936_v25, %v481_v50  ;;  %v530_v57 = vpop.f32.mrb[6].mxu1  ;;  %v1447_v58 = vpop.f32.mrb[7].mxu0 }
 0x1d4   :  { %v534_v59 = vadd.f32 %v1941_v28, %v533_v53  ;;  %v1467_v60 = vpop.f32.mrb[7].mxu1 }
 0x1d5   :  { %v483_v61 = vmax.f32 %v482_v56, 0.0 }
 0x1d6   :  { %v535_v62 = vmax.f32 %v534_v59, 0.0 }
 0x1d7   :  { %v485_v63 = vpack.c.bf16 %v483_v61, %v483_v61 }
 0x1d8   :  { %v537_v11 = vpack.c.bf16 %v535_v62, %v535_v62 }
 0x1d9   :  { %1231 = vst [vmem:[%s2266_s6 + $0x4] sm:$0xf] %v485_v63  ;;  %1485 = vmatmul.mubr.bf16.vlgmr.msra.gmra.mrb[8].mxu0 %v485_v63 }
 0x1da   :  { %1232 = vst [vmem:[%s2267_s7 + $0x18] sm:$0xf] %v537_v11  ;;  %1505 = vmatmul.mubr.bf16.vlgmr.msra.gmra.mrb[8].mxu1 %v537_v11  ;;  %1509 = vmatpush3.bf16.msra.mxu0 %v1773_v0  ;;  %v1207_v11 = vld [vmem:[%s2261_s1 + $0x1c] sm:$0xf] }
 0x1db   :  { %1529 = vmatpush3.bf16.msra.mxu1 %v1780_v2  ;;  %1510 = vmatprep.subr.bf16.mxu0 %v1727_v1  ;;  %112 = vst [vmem:[#allocation5 + $0xc] sm:$0xf] %v1207_v11 }
 0x1dc   :  { %1530 = vmatprep.subr.bf16.mxu1 %v1727_v1  ;;  %1524 = vmatprep.mubr.msk.bf16.mxu0 %vm1728_vm0, %v1727_v1 }
 0x1dd   :  { %1544 = vmatprep.mubr.msk.bf16.mxu1 %vm1728_vm0, %v1727_v1 }
 0x1de   :  { %1511 = vmatpush3.bf16.msra.mxu0 %v1786_v3 }
 0x1df   :  { %1531 = vmatpush3.bf16.msra.mxu1 %v1795_v4  ;;  %1512 = vmatprep.subr.bf16.mxu0 %v1727_v1 }
 0x1e0   :  { %1532 = vmatprep.subr.bf16.mxu1 %v1727_v1 }
 0x1e2   :  { %1513 = vmatpush3.bf16.msra.mxu0 %v1804_v5  ;;  %v801_v20 = vld [vmem:[#allocation5 + $0xc] sm:$0xf] }
 0x1e3   :  { %1533 = vmatpush3.bf16.msra.mxu1 %v1811_v6  ;;  %1514 = vmatprep.subr.bf16.mxu0 %v1727_v1 }
 0x1e4   :  { %1534 = vmatprep.subr.bf16.mxu1 %v1727_v1 }
 0x1e6   :  { %1515 = vmatpush3.bf16.msra.mxu0 %v1818_v7 }
 0x1e7   :  { %1535 = vmatpush3.bf16.msra.mxu1 %v1825_v8  ;;  %1516 = vmatprep.subr.bf16.mxu0 %v1727_v1 }
 0x1e8   :  { %1536 = vmatprep.subr.bf16.mxu1 %v1727_v1 }
 0x1ea   :  { %1517 = vmatpush3.bf16.msra.mxu0 %v1832_v9 }
 0x1eb   :  { %1537 = vmatpush3.bf16.msra.mxu1 %v1839_v10  ;;  %1518 = vmatprep.subr.bf16.mxu0 %v1727_v1 }
 0x1ec   :  { %1538 = vmatprep.subr.bf16.mxu1 %v1727_v1 }
 0x1ee   :  { %1519 = vmatpush3.bf16.msra.mxu0 %v1849_v12 }
 0x1ef   :  { %1539 = vmatpush3.bf16.msra.mxu1 %v1856_v13  ;;  %1520 = vmatprep.subr.bf16.mxu0 %v1727_v1 }
 0x1f0   :  { %1540 = vmatprep.subr.bf16.mxu1 %v1727_v1 }
 0x1f2   :  { %1521 = vmatpush3.bf16.msra.mxu0 %v1863_v14 }
 0x1f3   :  { %1541 = vmatpush3.bf16.msra.mxu1 %v1870_v15  ;;  %1522 = vmatprep.subr.bf16.mxu0 %v1727_v1 }
 0x1f4   :  { %1542 = vmatprep.subr.bf16.mxu1 %v1727_v1 }
 0x1f6   :  { %1523 = vmatpush3.bf16.msra.mxu0 %v1877_v16 }
 0x1f7   :  { %1543 = vmatpush3.bf16.msra.mxu1 %v1884_v17  ;;  %1548 = vmatprep.subr.bf16.mxu0 %v1727_v1 }
 0x1f8   :  { %1568 = vmatprep.subr.bf16.mxu1 %v1727_v1 }
 0x2ac   :  { %v579_v24 = vpop.f32.mrb[8].mxu0 }
 0x2ad   :  { %v585_v26 = vadd.f32 %v579_v24, %v542_v22  ;;  %v631_v27 = vpop.f32.mrb[8].mxu1  ;;  %v1486_v29 = vpop.f32.mrb[9].mxu0  ;;  %v802_v22 = vunpack.c.l.bf16 %v801_v20 }
 0x2ae   :  { %v637_v30 = vadd.f32 %v631_v27, %v594_v23  ;;  %v1506_v31 = vpop.f32.mrb[9].mxu1  ;;  %v582_v32 = vpop.f32.mrb[10].mxu0 }
 0x2af   :  { %v586_v33 = vadd.f32 %v1936_v25, %v585_v26  ;;  %v634_v34 = vpop.f32.mrb[10].mxu1  ;;  %v1487_v35 = vpop.f32.mrb[11].mxu0 }
 0x2b0   :  { %v638_v36 = vadd.f32 %v1941_v28, %v637_v30  ;;  %v1507_v37 = vpop.f32.mrb[11].mxu1 }
 0x2b1   :  { %v587_v38 = vmax.f32 %v586_v33, 0.0 }
 0x2b2   :  { %v639_v39 = vmax.f32 %v638_v36, 0.0 }
 0x2b3   :  { %v589_v40 = vpack.c.bf16 %v587_v38, %v587_v38 }
 0x2b4   :  { %v641_v41 = vpack.c.bf16 %v639_v39, %v639_v39 }
 0x2b5   :  { %1233 = vst [vmem:[%s2266_s6 + $0x8] sm:$0xf] %v589_v40  ;;  %1525 = vmatmul.mubr.bf16.vlgmr.msra.gmra.mrb[12].mxu0 %v589_v40 }
 0x2b6   :  { %1234 = vst [vmem:[%s2267_s7 + $0x14] sm:$0xf] %v641_v41  ;;  %1545 = vmatmul.mubr.bf16.vlgmr.msra.gmra.mrb[12].mxu1 %v641_v41  ;;  %1549 = vmatpush3.bf16.msra.mxu0 %v1773_v0  ;;  %v1206_v41 = vld [vmem:[%s2261_s1 + $0x14] sm:$0xf] }
 0x2b7   :  { %1569 = vmatpush3.bf16.msra.mxu1 %v1780_v2  ;;  %1550 = vmatprep.subr.bf16.mxu0 %v1727_v1  ;;  %110 = vst [vmem:[#allocation5 + $0x8] sm:$0xf] %v1206_v41 }
 0x2b8   :  { %1570 = vmatprep.subr.bf16.mxu1 %v1727_v1  ;;  %1564 = vmatprep.mubr.msk.bf16.mxu0 %vm1728_vm0, %v1727_v1 }
 0x2b9   :  { %1584 = vmatprep.mubr.msk.bf16.mxu1 %vm1728_vm0, %v1727_v1 }
 0x2ba   :  { %1551 = vmatpush3.bf16.msra.mxu0 %v1786_v3 }
 0x2bb   :  { %1571 = vmatpush3.bf16.msra.mxu1 %v1795_v4  ;;  %1552 = vmatprep.subr.bf16.mxu0 %v1727_v1 }
 0x2bc   :  { %1572 = vmatprep.subr.bf16.mxu1 %v1727_v1 }
 0x2be   :  { %1553 = vmatpush3.bf16.msra.mxu0 %v1804_v5  ;;  %v905_v44 = vld [vmem:[#allocation5 + $0x8] sm:$0xf] }
 0x2bf   :  { %1573 = vmatpush3.bf16.msra.mxu1 %v1811_v6  ;;  %1554 = vmatprep.subr.bf16.mxu0 %v1727_v1 }
 0x2c0   :  { %1574 = vmatprep.subr.bf16.mxu1 %v1727_v1 }
 0x2c2   :  { %1555 = vmatpush3.bf16.msra.mxu0 %v1818_v7 }
 0x2c3   :  { %1575 = vmatpush3.bf16.msra.mxu1 %v1825_v8  ;;  %1556 = vmatprep.subr.bf16.mxu0 %v1727_v1 }
 0x2c4   :  { %1576 = vmatprep.subr.bf16.mxu1 %v1727_v1 }
 0x2c6   :  { %1557 = vmatpush3.bf16.msra.mxu0 %v1832_v9 }
 0x2c7   :  { %1577 = vmatpush3.bf16.msra.mxu1 %v1839_v10  ;;  %1558 = vmatprep.subr.bf16.mxu0 %v1727_v1 }
 0x2c8   :  { %1578 = vmatprep.subr.bf16.mxu1 %v1727_v1 }
 0x2ca   :  { %1559 = vmatpush3.bf16.msra.mxu0 %v1849_v12 }
 0x2cb   :  { %1579 = vmatpush3.bf16.msra.mxu1 %v1856_v13  ;;  %1560 = vmatprep.subr.bf16.mxu0 %v1727_v1 }
 0x2cc   :  { %1580 = vmatprep.subr.bf16.mxu1 %v1727_v1 }
 0x2ce   :  { %1561 = vmatpush3.bf16.msra.mxu0 %v1863_v14 }
 0x2cf   :  { %1581 = vmatpush3.bf16.msra.mxu1 %v1870_v15  ;;  %1562 = vmatprep.subr.bf16.mxu0 %v1727_v1 }
 0x2d0   :  { %1582 = vmatprep.subr.bf16.mxu1 %v1727_v1 }
 0x2d2   :  { %1563 = vmatpush3.bf16.msra.mxu0 %v1877_v16 }
 0x2d3   :  { %1583 = vmatpush3.bf16.msra.mxu1 %v1884_v17  ;;  %1588 = vmatprep.subr.bf16.mxu0 %v1727_v1 }
 0x2d4   :  { %1608 = vmatprep.subr.bf16.mxu1 %v1727_v1 }
 0x388   :  { %v683_v48 = vpop.f32.mrb[12].mxu0 }
 0x389   :  { %v689_v49 = vadd.f32 %v683_v48, %v646_v46  ;;  %v735_v50 = vpop.f32.mrb[12].mxu1  ;;  %v1526_v51 = vpop.f32.mrb[13].mxu0  ;;  %v906_v46 = vunpack.c.l.bf16 %v905_v44 }
 0x38a   :  { %v741_v52 = vadd.f32 %v735_v50, %v698_v47  ;;  %v1546_v53 = vpop.f32.mrb[13].mxu1  ;;  %v686_v54 = vpop.f32.mrb[14].mxu0 }
 0x38b   :  { %v690_v55 = vadd.f32 %v1936_v25, %v689_v49  ;;  %v738_v56 = vpop.f32.mrb[14].mxu1  ;;  %v1527_v57 = vpop.f32.mrb[15].mxu0 }
 0x38c   :  { %v742_v58 = vadd.f32 %v1941_v28, %v741_v52  ;;  %v1547_v59 = vpop.f32.mrb[15].mxu1 }
 0x38d   :  { %v691_v60 = vmax.f32 %v690_v55, 0.0 }
 0x38e   :  { %v743_v61 = vmax.f32 %v742_v58, 0.0 }
 0x38f   :  { %v693_v62 = vpack.c.bf16 %v691_v60, %v691_v60 }
 0x390   :  { %v745_v63 = vpack.c.bf16 %v743_v61, %v743_v61 }
 0x391   :  { %1235 = vst [vmem:[%s2266_s6 + $0xc] sm:$0xf] %v693_v62  ;;  %1565 = vmatmul.mubr.bf16.vlgmr.msra.gmra.mrb[16].mxu0 %v693_v62 }
 0x392   :  { %1236 = vst [vmem:[%s2267_s7 + $0x10] sm:$0xf] %v745_v63  ;;  %1585 = vmatmul.mubr.bf16.vlgmr.msra.gmra.mrb[16].mxu1 %v745_v63  ;;  %1589 = vmatpush3.bf16.msra.mxu0 %v1773_v0 }
 0x393   :  { %1609 = vmatpush3.bf16.msra.mxu1 %v1780_v2  ;;  %1590 = vmatprep.subr.bf16.mxu0 %v1727_v1 }
 0x394   :  { %1610 = vmatprep.subr.bf16.mxu1 %v1727_v1  ;;  %1604 = vmatprep.mubr.msk.bf16.mxu0 %vm1728_vm0, %v1727_v1 }
 0x395   :  { %1624 = vmatprep.mubr.msk.bf16.mxu1 %vm1728_vm0, %v1727_v1 }
 0x396   :  { %1591 = vmatpush3.bf16.msra.mxu0 %v1786_v3 }
 0x397   :  { %1611 = vmatpush3.bf16.msra.mxu1 %v1795_v4  ;;  %1592 = vmatprep.subr.bf16.mxu0 %v1727_v1 }
 0x398   :  { %1612 = vmatprep.subr.bf16.mxu1 %v1727_v1 }
 0x39a   :  { %1593 = vmatpush3.bf16.msra.mxu0 %v1804_v5 }
 0x39b   :  { %1613 = vmatpush3.bf16.msra.mxu1 %v1811_v6  ;;  %1594 = vmatprep.subr.bf16.mxu0 %v1727_v1 }
 0x39c   :  { %1614 = vmatprep.subr.bf16.mxu1 %v1727_v1 }
 0x39e   :  { %1595 = vmatpush3.bf16.msra.mxu0 %v1818_v7 }
 0x39f   :  { %1615 = vmatpush3.bf16.msra.mxu1 %v1825_v8  ;;  %1596 = vmatprep.subr.bf16.mxu0 %v1727_v1 }
 0x3a0   :  { %1616 = vmatprep.subr.bf16.mxu1 %v1727_v1 }
 0x3a2   :  { %1597 = vmatpush3.bf16.msra.mxu0 %v1832_v9 }
 0x3a3   :  { %1617 = vmatpush3.bf16.msra.mxu1 %v1839_v10  ;;  %1598 = vmatprep.subr.bf16.mxu0 %v1727_v1 }
 0x3a4   :  { %1618 = vmatprep.subr.bf16.mxu1 %v1727_v1 }
 0x3a6   :  { %1599 = vmatpush3.bf16.msra.mxu0 %v1849_v12 }
 0x3a7   :  { %1619 = vmatpush3.bf16.msra.mxu1 %v1856_v13  ;;  %1600 = vmatprep.subr.bf16.mxu0 %v1727_v1 }
 0x3a8   :  { %1620 = vmatprep.subr.bf16.mxu1 %v1727_v1 }
 0x3aa   :  { %1601 = vmatpush3.bf16.msra.mxu0 %v1863_v14 }
 0x3ab   :  { %1621 = vmatpush3.bf16.msra.mxu1 %v1870_v15  ;;  %1602 = vmatprep.subr.bf16.mxu0 %v1727_v1 }
 0x3ac   :  { %1622 = vmatprep.subr.bf16.mxu1 %v1727_v1 }
 0x3ae   :  { %1603 = vmatpush3.bf16.msra.mxu0 %v1877_v16 }
 0x3af   :  { %1623 = vmatpush3.bf16.msra.mxu1 %v1884_v17  ;;  %1628 = vmatprep.subr.bf16.mxu0 %v1727_v1 }
 0x3b0   :  { %1648 = vmatprep.subr.bf16.mxu1 %v1727_v1 }
 0x464   :  { %v787_v23 = vpop.f32.mrb[16].mxu0 }
 0x465   :  { %v793_v24 = vadd.f32 %v787_v23, %v750_v21  ;;  %v839_v26 = vpop.f32.mrb[16].mxu1  ;;  %v1566_v27 = vpop.f32.mrb[17].mxu0  ;;  %v1204_v21 = vld [vmem:[%s2261_s1 + $0x4] sm:$0xf] }
 0x466   :  { %v845_v29 = vadd.f32 %v839_v26, %v802_v22  ;;  %v1586_v30 = vpop.f32.mrb[17].mxu1  ;;  %v790_v31 = vpop.f32.mrb[18].mxu0  ;;  %106 = vst [vmem:[#allocation5] sm:$0xf] %v1204_v21 }
 0x467   :  { %v794_v32 = vadd.f32 %v1936_v25, %v793_v24  ;;  %v842_v33 = vpop.f32.mrb[18].mxu1  ;;  %v1567_v34 = vpop.f32.mrb[19].mxu0 }
 0x468   :  { %v846_v35 = vadd.f32 %v1941_v28, %v845_v29  ;;  %v1587_v36 = vpop.f32.mrb[19].mxu1 }
 0x469   :  { %v795_v37 = vmax.f32 %v794_v32, 0.0 }
 0x46a   :  { %v847_v38 = vmax.f32 %v846_v35, 0.0 }
 0x46b   :  { %v797_v39 = vpack.c.bf16 %v795_v37, %v795_v37 }
 0x46c   :  { %v849_v40 = vpack.c.bf16 %v847_v38, %v847_v38 }
 0x46d   :  { %1237 = vst [vmem:[%s2266_s6 + $0x10] sm:$0xf] %v797_v39  ;;  %1605 = vmatmul.mubr.bf16.vlgmr.msra.gmra.mrb[20].mxu0 %v797_v39  ;;  %v1112_v23 = vld [vmem:[#allocation5] sm:$0xf] }
 0x46e   :  { %1238 = vst [vmem:[%s2267_s7 + $0xc] sm:$0xf] %v849_v40  ;;  %1625 = vmatmul.mubr.bf16.vlgmr.msra.gmra.mrb[20].mxu1 %v849_v40  ;;  %1629 = vmatpush3.bf16.msra.mxu0 %v1773_v0  ;;  %v1113_v26 = vunpack.c.l.bf16 %v1112_v23 }
 0x46f   :  { %1649 = vmatpush3.bf16.msra.mxu1 %v1780_v2  ;;  %1630 = vmatprep.subr.bf16.mxu0 %v1727_v1 }
 0x470   :  { %1650 = vmatprep.subr.bf16.mxu1 %v1727_v1  ;;  %1644 = vmatprep.mubr.msk.bf16.mxu0 %vm1728_vm0, %v1727_v1 }
 0x471   :  { %1664 = vmatprep.mubr.msk.bf16.mxu1 %vm1728_vm0, %v1727_v1 }
 0x472   :  { %1631 = vmatpush3.bf16.msra.mxu0 %v1786_v3 }
 0x473   :  { %1651 = vmatpush3.bf16.msra.mxu1 %v1795_v4  ;;  %1632 = vmatprep.subr.bf16.mxu0 %v1727_v1 }
 0x474   :  { %1652 = vmatprep.subr.bf16.mxu1 %v1727_v1 }
 0x476   :  { %1633 = vmatpush3.bf16.msra.mxu0 %v1804_v5 }
 0x477   :  { %1653 = vmatpush3.bf16.msra.mxu1 %v1811_v6  ;;  %1634 = vmatprep.subr.bf16.mxu0 %v1727_v1 }
 0x478   :  { %1654 = vmatprep.subr.bf16.mxu1 %v1727_v1 }
 0x47a   :  { %1635 = vmatpush3.bf16.msra.mxu0 %v1818_v7 }
 0x47b   :  { %1655 = vmatpush3.bf16.msra.mxu1 %v1825_v8  ;;  %1636 = vmatprep.subr.bf16.mxu0 %v1727_v1 }
 0x47c   :  { %1656 = vmatprep.subr.bf16.mxu1 %v1727_v1 }
 0x47e   :  { %1637 = vmatpush3.bf16.msra.mxu0 %v1832_v9 }
 0x47f   :  { %1657 = vmatpush3.bf16.msra.mxu1 %v1839_v10  ;;  %1638 = vmatprep.subr.bf16.mxu0 %v1727_v1 }
 0x480   :  { %1658 = vmatprep.subr.bf16.mxu1 %v1727_v1 }
 0x482   :  { %1639 = vmatpush3.bf16.msra.mxu0 %v1849_v12 }
 0x483   :  { %1659 = vmatpush3.bf16.msra.mxu1 %v1856_v13  ;;  %1640 = vmatprep.subr.bf16.mxu0 %v1727_v1 }
 0x484   :  { %1660 = vmatprep.subr.bf16.mxu1 %v1727_v1 }
 0x486   :  { %1641 = vmatpush3.bf16.msra.mxu0 %v1863_v14 }
 0x487   :  { %1661 = vmatpush3.bf16.msra.mxu1 %v1870_v15  ;;  %1642 = vmatprep.subr.bf16.mxu0 %v1727_v1 }
 0x488   :  { %1662 = vmatprep.subr.bf16.mxu1 %v1727_v1 }
 0x48a   :  { %1643 = vmatpush3.bf16.msra.mxu0 %v1877_v16 }
 0x48b   :  { %1663 = vmatpush3.bf16.msra.mxu1 %v1884_v17  ;;  %1668 = vmatprep.subr.bf16.mxu0 %v1727_v1 }
 0x48c   :  { %1688 = vmatprep.subr.bf16.mxu1 %v1727_v1 }
 0x540   :  { %v891_v47 = vpop.f32.mrb[20].mxu0 }
 0x541   :  { %v897_v48 = vadd.f32 %v891_v47, %v854_v45  ;;  %v943_v49 = vpop.f32.mrb[20].mxu1  ;;  %v1606_v50 = vpop.f32.mrb[21].mxu0 }
 0x542   :  { %v949_v51 = vadd.f32 %v943_v49, %v906_v46  ;;  %v1626_v52 = vpop.f32.mrb[21].mxu1  ;;  %v894_v53 = vpop.f32.mrb[22].mxu0 }
 0x543   :  { %v898_v54 = vadd.f32 %v1936_v25, %v897_v48  ;;  %v946_v55 = vpop.f32.mrb[22].mxu1  ;;  %v1607_v56 = vpop.f32.mrb[23].mxu0 }
 0x544   :  { %v950_v57 = vadd.f32 %v1941_v28, %v949_v51  ;;  %v1627_v58 = vpop.f32.mrb[23].mxu1 }
 0x545   :  { %v899_v59 = vmax.f32 %v898_v54, 0.0 }
 0x546   :  { %v951_v60 = vmax.f32 %v950_v57, 0.0 }
 0x547   :  { %v901_v61 = vpack.c.bf16 %v899_v59, %v899_v59 }
 0x548   :  { %v953_v62 = vpack.c.bf16 %v951_v60, %v951_v60 }
 0x549   :  { %1239 = vst [vmem:[%s2266_s6 + $0x14] sm:$0xf] %v901_v61  ;;  %1645 = vmatmul.mubr.bf16.vlgmr.msra.gmra.mrb[24].mxu0 %v901_v61 }
 0x54a   :  { %1240 = vst [vmem:[%s2267_s7 + $0x8] sm:$0xf] %v953_v62  ;;  %1665 = vmatmul.mubr.bf16.vlgmr.msra.gmra.mrb[24].mxu1 %v953_v62  ;;  %1669 = vmatpush3.bf16.msra.mxu0 %v1773_v0  ;;  %v1205_v0 = vld [vmem:[%s2261_s1 + $0xc] sm:$0xf] }
 0x54b   :  { %1689 = vmatpush3.bf16.msra.mxu1 %v1780_v2  ;;  %1670 = vmatprep.subr.bf16.mxu0 %v1727_v1  ;;  %108 = vst [vmem:[#allocation5 + $0x4] sm:$0xf] %v1205_v0  ;;  %v44_v2 = vld [vmem:[%s2260_s0 + $0x38] sm:$0xf] }
 0x54c   :  { %1690 = vmatprep.subr.bf16.mxu1 %v1727_v1  ;;  %1684 = vmatprep.mubr.msk.bf16.mxu0 %vm1728_vm0, %v1727_v1  ;;  %45 = vst [vmem:[#allocation4 + $0x1c] sm:$0xf] %v44_v2 }
 0x54d   :  { %1704 = vmatprep.mubr.msk.bf16.mxu1 %vm1728_vm0, %v1727_v1 }
 0x54e   :  { %1671 = vmatpush3.bf16.msra.mxu0 %v1786_v3  ;;  %v957_v3 = vld [vmem:[#allocation4 + $0x18] sm:$0xf] }
 0x54f   :  { %1691 = vmatpush3.bf16.msra.mxu1 %v1795_v4  ;;  %1672 = vmatprep.subr.bf16.mxu0 %v1727_v1 }
 0x550   :  { %1692 = vmatprep.subr.bf16.mxu1 %v1727_v1 }
 0x552   :  { %1673 = vmatpush3.bf16.msra.mxu0 %v1804_v5  ;;  %v1009_v4 = vld [vmem:[#allocation5 + $0x4] sm:$0xf]  ;;  %v958_v5 = vunpack.c.l.bf16 %v957_v3 }
 0x553   :  { %1693 = vmatpush3.bf16.msra.mxu1 %v1811_v6  ;;  %1674 = vmatprep.subr.bf16.mxu0 %v1727_v1  ;;  %v1010_v6 = vunpack.c.l.bf16 %v1009_v4  ;;  %v1061_v22 = vld [vmem:[#allocation4 + $0x1c] sm:$0xf] }
 0x554   :  { %1694 = vmatprep.subr.bf16.mxu1 %v1727_v1  ;;  %v1062_v24 = vunpack.c.l.bf16 %v1061_v22 }
 0x556   :  { %1675 = vmatpush3.bf16.msra.mxu0 %v1818_v7 }
 0x557   :  { %1695 = vmatpush3.bf16.msra.mxu1 %v1825_v8  ;;  %1676 = vmatprep.subr.bf16.mxu0 %v1727_v1 }
 0x558   :  { %1696 = vmatprep.subr.bf16.mxu1 %v1727_v1 }
 0x55a   :  { %1677 = vmatpush3.bf16.msra.mxu0 %v1832_v9 }
 0x55b   :  { %1697 = vmatpush3.bf16.msra.mxu1 %v1839_v10  ;;  %1678 = vmatprep.subr.bf16.mxu0 %v1727_v1 }
 0x55c   :  { %1698 = vmatprep.subr.bf16.mxu1 %v1727_v1 }
 0x55e   :  { %1679 = vmatpush3.bf16.msra.mxu0 %v1849_v12 }
 0x55f   :  { %1699 = vmatpush3.bf16.msra.mxu1 %v1856_v13  ;;  %1680 = vmatprep.subr.bf16.mxu0 %v1727_v1 }
 0x560   :  { %1700 = vmatprep.subr.bf16.mxu1 %v1727_v1 }
 0x562   :  { %1681 = vmatpush3.bf16.msra.mxu0 %v1863_v14 }
 0x563   :  { %1701 = vmatpush3.bf16.msra.mxu1 %v1870_v15  ;;  %1682 = vmatprep.subr.bf16.mxu0 %v1727_v1 }
 0x564   :  { %1702 = vmatprep.subr.bf16.mxu1 %v1727_v1 }
 0x566   :  { %1683 = vmatpush3.bf16.msra.mxu0 %v1877_v16 }
 0x567   :  { %1703 = vmatpush3.bf16.msra.mxu1 %v1884_v17 }
 0x61c   :  { %v995_v7 = vpop.f32.mrb[24].mxu0 }
 0x61d   :  { %v1001_v1 = vadd.f32 %v995_v7, %v958_v5  ;;  %v1047_v8 = vpop.f32.mrb[24].mxu1  ;;  %v1646_v9 = vpop.f32.mrb[25].mxu0 }
 0x61e   :  { %v1053_v10 = vadd.f32 %v1047_v8, %v1010_v6  ;;  %v1666_v12 = vpop.f32.mrb[25].mxu1  ;;  %v998_v13 = vpop.f32.mrb[26].mxu0 }
 0x61f   :  { %v1002_v14 = vadd.f32 %v1936_v25, %v1001_v1  ;;  %v1050_v15 = vpop.f32.mrb[26].mxu1  ;;  %v1647_v16 = vpop.f32.mrb[27].mxu0 }
 0x620   :  { %v1054_v17 = vadd.f32 %v1941_v28, %v1053_v10  ;;  %v1667_v63 = vpop.f32.mrb[27].mxu1 }
 0x621   :  { %v1003_v11 = vmax.f32 %v1002_v14, 0.0 }
 0x622   :  { %v1055_v18 = vmax.f32 %v1054_v17, 0.0 }
 0x623   :  { %v1005_v19 = vpack.c.bf16 %v1003_v11, %v1003_v11 }
 0x624   :  { %v1057_v20 = vpack.c.bf16 %v1055_v18, %v1055_v18 }
 0x625   :  { %1241 = vst [vmem:[%s2266_s6 + $0x18] sm:$0xf] %v1005_v19  ;;  %1685 = vmatmul.mubr.bf16.vlgmr.msra.gmra.mrb[28].mxu0 %v1005_v19 }
 0x626   :  { %1242 = vst [vmem:[%s2267_s7 + $0x4] sm:$0xf] %v1057_v20  ;;  %1705 = vmatmul.mubr.bf16.vlgmr.msra.gmra.mrb[28].mxu1 %v1057_v20 }
 0x6f8   :  { %v1099_v27 = vpop.f32.mrb[28].mxu0 }
 0x6f9   :  { %v1105_v29 = vadd.f32 %v1099_v27, %v1062_v24  ;;  %v1150_v30 = vpop.f32.mrb[28].mxu1  ;;  %v1686_v31 = vpop.f32.mrb[29].mxu0 }
 0x6fa   :  { %v1156_v32 = vadd.f32 %v1150_v30, %v1113_v26  ;;  %v1706_v33 = vpop.f32.mrb[29].mxu1  ;;  %v1102_v34 = vpop.f32.mrb[30].mxu0 }
 0x6fb   :  { %v1106_v35 = vadd.f32 %v1936_v25, %v1105_v29  ;;  %v1153_v36 = vpop.f32.mrb[30].mxu1  ;;  %v1687_v37 = vpop.f32.mrb[31].mxu0 }
 0x6fc   :  { %v1157_v38 = vadd.f32 %v1941_v28, %v1156_v32  ;;  %v1707_v39 = vpop.f32.mrb[31].mxu1 }
 0x6fd   :  { %v1107_v40 = vmax.f32 %v1106_v35, 0.0 }
 0x6fe   :  { %v1158_v41 = vmax.f32 %v1157_v38, 0.0 }
 0x6ff   :  { %v1109_v42 = vpack.c.bf16 %v1107_v40, %v1107_v40 }
 0x700   :  { %v1160_v43 = vpack.c.bf16 %v1158_v41, %v1158_v41 }
 0x701   :  { %1243 = vst [vmem:[%s2266_s6 + $0x1c] sm:$0xf] %v1109_v42 }
 0x702   :  { %1161 = vst [vmem:[%s2267_s7] sm:$0xf] %v1160_v43 }

// kernel: deepspeech_forward.12
= control target key start
LH: loop header
LB: loop body
LE: loop exit
PB: predicated region body
PF: predicated region fallthrough
CT: control target
= control target key end

     0   :  { %s541_s2 = inlined_call_operand.vmem [shape: bf16[128,128], index: 2, kind: input, shape index: {}]   ;;  %s542_s0 = inlined_call_operand.vmem [shape: bf16[64,128], index: 0, kind: input, shape index: {}]   ;;  %s543_s1 = inlined_call_operand.vmem [shape: bf16[64,128], index: 1, kind: input, shape index: {}]   ;;  %s544_s3 = inlined_call_operand.vmem [shape: f32[1,128], index: 3, kind: input, shape index: {}]   ;;  %s545_s4 = inlined_call_operand.vmem [shape: bf16[64,128], index: 4, kind: output, shape index: {}]  }
   0x1   :  { %v421_v0 = vld [vmem:[%s541_s2] sm:$0xff]   ;;  %v422_v1 = vld [vmem:[%s541_s2 + $0x8] sm:$0xff]   ;;  %v423_v2 = vld [vmem:[%s541_s2 + $0x10] sm:$0xff]  }
   0x2   :  { %381 = vmatprep.subr.bf16.mxu0 %v421_v0  ;;  %405 = vmatprep.subr.bf16.mxu1 %v421_v0  ;;  %v424_v3 = vld [vmem:[%s541_s2 + $0x18] sm:$0xff]   ;;  %v30_v4 = vld [vmem:[%s542_s0] sm:$0xf]  ;;  %v31_v5 = vld [vmem:[%s542_s0 + $0x4] sm:$0xf] }
   0x3   :  { %382 = vmatpush3.bf16.msra.mxu0 %v421_v0  ;;  %413 = vmatpush3.bf16.msra.mxu1 %v421_v0  ;;  %v38_v6 = vld [vmem:[%s543_s1] sm:$0xf]  ;;  %v39_v7 = vld [vmem:[%s543_s1 + $0x4] sm:$0xf]  ;;  %v34_v9 = vld [vmem:[%s542_s0 + $0x10] sm:$0xf] }
   0x4   :  { %383 = vmatprep.subr.bf16.mxu0 %v422_v1  ;;  %406 = vmatprep.subr.bf16.mxu1 %v422_v1  ;;  %v46_v8 = vadd.bf16 %v38_v6, %v30_v4  ;;  %v35_v10 = vld [vmem:[%s542_s0 + $0x14] sm:$0xf]  ;;  %v47_v11 = vadd.bf16 %v39_v7, %v31_v5  ;;  %v42_v12 = vld [vmem:[%s543_s1 + $0x10] sm:$0xf]  ;;  %v425_v16 = vld [vmem:[%s541_s2 + $0x20] sm:$0xff]  }
   0x5   :  { %v43_v13 = vld [vmem:[%s543_s1 + $0x14] sm:$0xf]  ;;  %v50_v14 = vadd.bf16 %v42_v12, %v34_v9  ;;  %v426_v19 = vld [vmem:[%s541_s2 + $0x28] sm:$0xff]   ;;  %v36_v25 = vld [vmem:[%s542_s0 + $0x18] sm:$0xf] }
   0x6   :  { %v51_v15 = vadd.bf16 %v43_v13, %v35_v10  ;;  %v317_v17 = vcombine.low %v46_v8, %v47_v11  ;;  %v427_v20 = vld [vmem:[%s541_s2 + $0x30] sm:$0xff]   ;;  %v32_v21 = vld [vmem:[%s542_s0 + $0x8] sm:$0xf]  ;;  %v33_v22 = vld [vmem:[%s542_s0 + $0xc] sm:$0xf] }
   0x7   :  { %384 = vmatpush3.bf16.msra.mxu0 %v422_v1  ;;  %414 = vmatpush3.bf16.msra.mxu1 %v422_v1  ;;  %v40_v23 = vld [vmem:[%s543_s1 + $0x8] sm:$0xf]  ;;  %v41_v24 = vld [vmem:[%s543_s1 + $0xc] sm:$0xf]  ;;  %v37_v26 = vld [vmem:[%s542_s0 + $0x1c] sm:$0xf] }
   0x8   :  { %385 = vmatprep.subr.bf16.mxu0 %v423_v2  ;;  %407 = vmatprep.subr.bf16.mxu1 %v423_v2  ;;  %v319_v18 = vcombine.low %v50_v14, %v51_v15  ;;  %v44_v27 = vld [vmem:[%s543_s1 + $0x18] sm:$0xf]  ;;  %v45_v28 = vld [vmem:[%s543_s1 + $0x1c] sm:$0xf]  ;;  %v48_v30 = vadd.bf16 %v40_v23, %v32_v21  ;;  %v49_v31 = vadd.bf16 %v41_v24, %v33_v22  ;;  %v329_v36 = vld [vmem:[%s544_s3] ss:$0 sm:$0xff] }
   0x9   :  { %397 = vmatprep.mubr.bf16.mxu0 %v317_v17  ;;  %v428_v29 = vld [vmem:[%s541_s2 + $0x38] sm:$0xff]   ;;  %v52_v32 = vadd.bf16 %v44_v27, %v36_v25  ;;  %v53_v33 = vadd.bf16 %v45_v28, %v37_v26 }
   0xa   :  { %401 = vmatprep.mubr.bf16.mxu1 %v319_v18  ;;  %v318_v34 = vcombine.low %v48_v30, %v49_v31 }
   0xb   :  { %386 = vmatpush3.bf16.msra.mxu0 %v423_v2  ;;  %415 = vmatpush3.bf16.msra.mxu1 %v423_v2  ;;  %v320_v35 = vcombine.low %v52_v32, %v53_v33 }
   0xc   :  { %387 = vmatprep.subr.bf16.mxu0 %v424_v3  ;;  %408 = vmatprep.subr.bf16.mxu1 %v424_v3 }
   0xf   :  { %388 = vmatpush3.bf16.msra.mxu0 %v424_v3  ;;  %416 = vmatpush3.bf16.msra.mxu1 %v424_v3 }
  0x10   :  { %389 = vmatprep.subr.bf16.mxu0 %v425_v16  ;;  %409 = vmatprep.subr.bf16.mxu1 %v425_v16 }
  0x13   :  { %390 = vmatpush3.bf16.msra.mxu0 %v425_v16  ;;  %417 = vmatpush3.bf16.msra.mxu1 %v425_v16 }
  0x14   :  { %391 = vmatprep.subr.bf16.mxu0 %v426_v19  ;;  %410 = vmatprep.subr.bf16.mxu1 %v426_v19 }
  0x17   :  { %392 = vmatpush3.bf16.msra.mxu0 %v426_v19  ;;  %418 = vmatpush3.bf16.msra.mxu1 %v426_v19 }
  0x18   :  { %393 = vmatprep.subr.bf16.mxu0 %v427_v20  ;;  %411 = vmatprep.subr.bf16.mxu1 %v427_v20 }
  0x1b   :  { %394 = vmatpush3.bf16.msra.mxu0 %v427_v20  ;;  %419 = vmatpush3.bf16.msra.mxu1 %v427_v20 }
  0x1c   :  { %395 = vmatprep.subr.bf16.mxu0 %v428_v29  ;;  %412 = vmatprep.subr.bf16.mxu1 %v428_v29 }
  0x1f   :  { %396 = vmatpush3.bf16.msra.mxu0 %v428_v29  ;;  %420 = vmatpush3.bf16.msra.mxu1 %v428_v29 }
  0x22   :  { %398 = vmatmul.mubr.bf16.vlgmr.msra.gmra.mrb[0].mxu0 %v318_v34  ;;  %402 = vmatmul.mubr.bf16.vlgmr.msra.gmra.mrb[0].mxu1 %v320_v35 }
  0xf5   :  { %v399_v37 = vpop.f32.mrb[0].mxu0  ;;  %v403_v38 = vpop.f32.mrb[0].mxu1 }
  0xf6   :  { %v251_v39 = vadd.f32 %v399_v37, %v329_v36  ;;  %v255_v40 = vadd.f32 %v403_v38, %v329_v36  ;;  %v184_v41 = vpop.f32.mrb[1].mxu0  ;;  %v200_v42 = vpop.f32.mrb[1].mxu1 }
  0xf7   :  { %v249_v43 = vadd.f32 %v329_v36, %v184_v41  ;;  %v253_v44 = vadd.f32 %v329_v36, %v200_v42  ;;  %v400_v45 = vpop.f32.mrb[2].mxu0  ;;  %v404_v46 = vpop.f32.mrb[2].mxu1 }
  0xf8   :  { %v259_v47 = vmax.f32 %v251_v39, 0.0  ;;  %v263_v48 = vmax.f32 %v255_v40, 0.0  ;;  %v252_v49 = vadd.f32 %v400_v45, %v329_v36  ;;  %v256_v50 = vadd.f32 %v404_v46, %v329_v36  ;;  %v187_v51 = vpop.f32.mrb[3].mxu0  ;;  %v203_v52 = vpop.f32.mrb[3].mxu1 }
  0xf9   :  { %v257_v53 = vmax.f32 %v249_v43, 0.0  ;;  %v261_v54 = vmax.f32 %v253_v44, 0.0  ;;  %v250_v55 = vadd.f32 %v329_v36, %v187_v51  ;;  %v254_v56 = vadd.f32 %v329_v36, %v203_v52 }
  0xfa   :  { %v260_v57 = vmax.f32 %v252_v49, 0.0  ;;  %v264_v58 = vmax.f32 %v256_v50, 0.0  ;;  %v267_v61 = vmin.f32 %v259_v47, 20.0  ;;  %v271_v62 = vmin.f32 %v263_v48, 20.0 }
  0xfb   :  { %v258_v59 = vmax.f32 %v250_v55, 0.0  ;;  %v262_v60 = vmax.f32 %v254_v56, 0.0  ;;  %v265_v1 = vmin.f32 %v257_v53, 20.0  ;;  %v269_v2 = vmin.f32 %v261_v54, 20.0 }
  0xfc   :  { %v268_v63 = vmin.f32 %v260_v57, 20.0  ;;  %v272_v0 = vmin.f32 %v264_v58, 20.0 }
  0xfd   :  { %v266_v3 = vmin.f32 %v258_v59, 20.0  ;;  %v270_v4 = vmin.f32 %v262_v60, 20.0 }
  0xfe   :  { %v354_v5 = vpack.c.bf16 %v268_v63, %v267_v61  ;;  %v364_v6 = vpack.c.bf16 %v272_v0, %v271_v62 }
  0xff   :  { %v349_v7 = vpack.c.bf16 %v266_v3, %v265_v1  ;;  %v359_v8 = vpack.c.bf16 %v270_v4, %v269_v2 }
 0x100   :  { %366 = vst [vmem:[%s545_s4 + $0x8] sm:$0xff] %v354_v5   ;;  %368 = vst [vmem:[%s545_s4 + $0x18] sm:$0xff] %v364_v6  }
 0x101   :  { %350 = vst [vmem:[%s545_s4] sm:$0xff] %v349_v7   ;;  %367 = vst [vmem:[%s545_s4 + $0x10] sm:$0xff] %v359_v8  }

// kernel: deepspeech_forward.13
= control target key start
LH: loop header
LB: loop body
LE: loop exit
PB: predicated region body
PF: predicated region fallthrough
CT: control target
= control target key end

     0   :  { %vm68_vm0 = vcmask 261120   ;;  %v146_v6 = vlaneseq  ;;  %s514_s1 = inlined_call_operand.vmem [shape: bf16[32,128], index: 1, kind: input, shape index: {}]   ;;  %s515_s0 = inlined_call_operand.vmem [shape: bf16[64,32], index: 0, kind: input, shape index: {}]   ;;  %s516_s2 = inlined_call_operand.vmem [shape: f32[1,128], index: 2, kind: input, shape index: {}]   ;;  %s517_s4 = inlined_call_operand.vmem [shape: f32[64,128], index: 4, kind: output, shape index: {1}]   ;;  %s518_s3 = inlined_call_operand.vmem [shape: f32[64,128], index: 3, kind: output, shape index: {0}]  }
   0x1   :  { %v310_v0 = vld [vmem:[%s514_s1] sm:$0xff]   ;;  %v311_v1 = vld [vmem:[%s514_s1 + $0x8] sm:$0xff]   ;;  %v314_v3 = vld [vmem:[%s515_s0 + $0x10] sm:$0xff]  }
   0x2   :  { %294 = vmatprep.subr.bf16.mxu0 %v310_v0  ;;  %306 = vmatprep.subr.bf16.mxu1 %v310_v0  ;;  %v312_v2 = vld [vmem:[%s515_s0] sm:$0xff]   ;;  %v313_v4 = vld [vmem:[%s515_s0 + $0x8] sm:$0xff]   ;;  %v315_v5 = vld [vmem:[%s515_s0 + $0x18] sm:$0xff]   ;;  %v147_v7 = vand.u32 127, %v146_v6 }
   0x3   :  { %295 = vmatpush3.bf16.msra.mxu0 %v310_v0  ;;  %308 = vmatpush3.bf16.msra.mxu1 %v310_v0  ;;  %v277_v8 = vld [vmem:[%s516_s2] ss:$0 sm:$0xff] }
   0x4   :  { %296 = vmatprep.subr.bf16.mxu0 %v311_v1  ;;  %307 = vmatprep.subr.bf16.mxu1 %v311_v1  ;;  %vm148_vm1 = vcmp.lt.s32.totalorder %v147_v7, 29 }
   0x5   :  { %298 = vmatprep.mubr.msk.bf16.mxu0 %vm68_vm0, %v312_v2  ;;  %302 = vmatprep.mubr.msk.bf16.mxu1 %vm68_vm0, %v314_v3 }
   0x7   :  { %297 = vmatpush3.bf16.msra.mxu0 %v311_v1  ;;  %309 = vmatpush3.bf16.msra.mxu1 %v311_v1 }
   0xa   :  { %299 = vmatmul.mubr.msk.bf16.vlgmr.msra.gmra.mrb[0].mxu0 %vm68_vm0, %v313_v4  ;;  %303 = vmatmul.mubr.msk.bf16.vlgmr.msra.gmra.mrb[0].mxu1 %vm68_vm0, %v315_v5 }
  0xdd   :  { %v300_v9 = vpop.f32.mrb[0].mxu0  ;;  %v304_v10 = vpop.f32.mrb[0].mxu1 }
  0xde   :  { %v124_v11 = vadd.f32 %v300_v9, %v277_v8  ;;  %v115_v12 = vpop.f32.mrb[1].mxu0  ;;  %v131_v13 = vpop.f32.mrb[1].mxu1  ;;  %v140_v29 = vadd.f32 %v304_v10, %v277_v8 }
  0xdf   :  { %v116_v14 = vadd.f32 %v277_v8, %v115_v12  ;;  %v301_v15 = vpop.f32.mrb[2].mxu0  ;;  %v132_v16 = vadd.f32 %v277_v8, %v131_v13  ;;  %v305_v17 = vpop.f32.mrb[2].mxu1 }
  0xe0   :  { %v127_v18 = vadd.f32 %v301_v15, %v277_v8  ;;  %v118_v19 = vpop.f32.mrb[3].mxu0  ;;  %v134_v20 = vpop.f32.mrb[3].mxu1  ;;  %v151_v21 = vsel %vm148_vm1, %v124_v11, -1e+30  ;;  %v143_v27 = vadd.f32 %v305_v17, %v277_v8  ;;  %v155_v32 = vsel %vm148_vm1, %v140_v29, -1e+30 }
  0xe1   :  { %161 = vmax.xlane.f32.xlu1 %v151_v21  ;;  %v149_v22 = vsel %vm148_vm1, %v116_v14, -1e+30  ;;  %v153_v23 = vsel %vm148_vm1, %v132_v16, -1e+30  ;;  %v135_v24 = vadd.f32 %v277_v8, %v134_v20  ;;  %v119_v26 = vadd.f32 %v277_v8, %v118_v19 }
  0xe2   :  { %157 = vmax.xlane.f32.xlu0 %v149_v22  ;;  %v152_v25 = vsel %vm148_vm1, %v127_v18, -1e+30  ;;  %v156_v31 = vsel %vm148_vm1, %v143_v27, -1e+30 }
  0xe3   :  { %v154_v28 = vsel %vm148_vm1, %v135_v24, -1e+30  ;;  %v150_v30 = vsel %vm148_vm1, %v119_v26, -1e+30 }
  0xe5   :  { %163 = vmax.xlane.f32.xlu1 %v152_v25 }
  0xe6   :  { %165 = vmax.xlane.f32.xlu0 %v153_v23 }
  0xe9   :  { %167 = vmax.xlane.f32.xlu1 %v154_v28 }
  0xea   :  { %159 = vmax.xlane.f32.xlu0 %v150_v30 }
  0xed   :  { %171 = vmax.xlane.f32.xlu1 %v156_v31 }
  0xee   :  { %169 = vmax.xlane.f32.xlu0 %v155_v32 }
 0x16e   :  { %v162_v33 = vpop.xlane.xlu1 %161 }
 0x16f   :  { %v418_v34 = vsub.f32 %v151_v21, %v162_v33  ;;  %v158_v35 = vpop.xlane.xlu0 %157 }
 0x170   :  { %v420_v36 = vsub.f32 %v149_v22, %v158_v35 }
 0x171   :  { %v185_v37 = vmul.f32 1.442695, %v418_v34 }
 0x172   :  { %v181_v38 = vmul.f32 1.442695, %v420_v36  ;;  %v164_v39 = vpop.xlane.xlu1 %163 }
 0x173   :  { %316 = vpow2.f32 %v185_v37  ;;  %v424_v40 = vsub.f32 %v152_v25, %v164_v39  ;;  %v166_v41 = vpop.xlane.xlu0 %165 }
 0x174   :  { %v426_v42 = vsub.f32 %v153_v23, %v166_v41  ;;  %318 = vpow2.f32 %v181_v38 }
 0x175   :  { %v187_v43 = vmul.f32 1.442695, %v424_v40 }
 0x176   :  { %v168_v44 = vpop.xlane.xlu1 %167  ;;  %v189_v45 = vmul.f32 1.442695, %v426_v42 }
 0x177   :  { %320 = vpow2.f32 %v187_v43  ;;  %v430_v46 = vsub.f32 %v154_v28, %v168_v44  ;;  %v160_v47 = vpop.xlane.xlu0 %159 }
 0x178   :  { %v432_v48 = vsub.f32 %v150_v30, %v160_v47  ;;  %322 = vpow2.f32 %v189_v45 }
 0x179   :  { %v191_v51 = vmul.f32 1.442695, %v430_v46 }
 0x17a   :  { %v183_v49 = vmul.f32 1.442695, %v432_v48  ;;  %v172_v50 = vpop.xlane.xlu1 %171 }
 0x17b   :  { %v170_v52 = vpop.xlane.xlu0 %169  ;;  %v436_v53 = vsub.f32 %v156_v31, %v172_v50 }
 0x17c   :  { %324 = vpow2.f32 %v183_v49  ;;  %v438_v54 = vsub.f32 %v155_v32, %v170_v52 }
 0x17d   :  { %v317_v55 = vpop.eup %316  ;;  %326 = vpow2.f32 %v191_v51  ;;  %v195_v58 = vmul.f32 1.442695, %v436_v53 }
 0x17e   :  { %v193_v56 = vmul.f32 1.442695, %v438_v54  ;;  %201 = vadd.xlane.f32.xlu0 %v317_v55  ;;  %v319_v57 = vpop.eup %318 }
 0x180   :  { %328 = vpow2.f32 %v193_v56 }
 0x181   :  { %v321_v59 = vpop.eup %320  ;;  %330 = vpow2.f32 %v195_v58 }
 0x182   :  { %203 = vadd.xlane.f32.xlu1 %v321_v59  ;;  %197 = vadd.xlane.f32.xlu0 %v319_v57  ;;  %v323_v60 = vpop.eup %322 }
 0x186   :  { %v442_v61 = vpop.eup %324  ;;  %205 = vadd.xlane.f32.xlu0 %v323_v60 }
 0x187   :  { %199 = vadd.xlane.f32.xlu1 %v442_v61  ;;  %v445_v62 = vpop.eup %326 }
 0x18a   :  { %v447_v63 = vpop.eup %328 }
 0x18b   :  { %207 = vadd.xlane.f32.xlu1 %v445_v62  ;;  %209 = vadd.xlane.f32.xlu0 %v447_v63  ;;  %v451_v0 = vpop.eup %330 }
 0x18f   :  { %211 = vadd.xlane.f32.xlu1 %v451_v0 }
 0x20b   :  { %v202_v1 = vpop.xlane.xlu0 %201 }
 0x20c   :  { %332 = vlog2.f32 %v202_v1 }
 0x20d   :  { %334 = vrcp.f32 %v202_v1 }
 0x20f   :  { %v204_v2 = vpop.xlane.xlu1 %203  ;;  %v198_v3 = vpop.xlane.xlu0 %197 }
 0x210   :  { %336 = vlog2.f32 %v204_v2 }
 0x211   :  { %338 = vrcp.f32 %v204_v2 }
 0x212   :  { %340 = vlog2.f32 %v198_v3 }
 0x213   :  { %342 = vrcp.f32 %v198_v3  ;;  %v206_v4 = vpop.xlane.xlu0 %205 }
 0x214   :  { %344 = vlog2.f32 %v206_v4  ;;  %v200_v5 = vpop.xlane.xlu1 %199 }
 0x215   :  { %346 = vrcp.f32 %v206_v4 }
 0x216   :  { %v333_v6 = vpop.eup %332  ;;  %348 = vlog2.f32 %v200_v5 }
 0x217   :  { %v335_v7 = vpop.eup %334  ;;  %v218_v8 = vmul.f32 0.6931472, %v333_v6  ;;  %350 = vrcp.f32 %v200_v5 }
 0x218   :  { %v250_v9 = vmul.f32 %v335_v7, %v317_v55  ;;  %v208_v10 = vpop.xlane.xlu1 %207  ;;  %v210_v11 = vpop.xlane.xlu0 %209 }
 0x219   :  { %v231_v12 = vsub.f32 %v418_v34, %v218_v8  ;;  %352 = vlog2.f32 %v208_v10 }
 0x21a   :  { %v337_v13 = vpop.eup %336  ;;  %263 = vst [vmem:[%s517_s4 + $0x10] sm:$0xff] %v250_v9  ;;  %354 = vrcp.f32 %v208_v10 }
 0x21b   :  { %v339_v14 = vpop.eup %338  ;;  %239 = vst [vmem:[%s518_s3 + $0x10] sm:$0xff] %v231_v12  ;;  %v220_v15 = vmul.f32 0.6931472, %v337_v13  ;;  %356 = vlog2.f32 %v210_v11 }
 0x21c   :  { %v341_v16 = vpop.eup %340  ;;  %v252_v17 = vmul.f32 %v339_v14, %v321_v59  ;;  %358 = vrcp.f32 %v210_v11  ;;  %v212_v18 = vpop.xlane.xlu1 %211 }
 0x21d   :  { %v343_v19 = vpop.eup %342  ;;  %v232_v20 = vsub.f32 %v424_v40, %v220_v15  ;;  %v214_v21 = vmul.f32 0.6931472, %v341_v16  ;;  %360 = vlog2.f32 %v212_v18 }
 0x21e   :  { %v345_v22 = vpop.eup %344  ;;  %264 = vst [vmem:[%s517_s4 + $0x18] sm:$0xff] %v252_v17  ;;  %v246_v23 = vmul.f32 %v343_v19, %v319_v57  ;;  %362 = vrcp.f32 %v212_v18 }
 0x21f   :  { %v347_v24 = vpop.eup %346  ;;  %240 = vst [vmem:[%s518_s3 + $0x18] sm:$0xff] %v232_v20  ;;  %v229_v25 = vsub.f32 %v420_v36, %v214_v21  ;;  %v222_v26 = vmul.f32 0.6931472, %v345_v22 }
 0x220   :  { %v349_v27 = vpop.eup %348  ;;  %261 = vst [vmem:[%s517_s4] sm:$0xff] %v246_v23  ;;  %v254_v28 = vmul.f32 %v347_v24, %v323_v60 }
 0x221   :  { %v351_v29 = vpop.eup %350  ;;  %237 = vst [vmem:[%s518_s3] sm:$0xff] %v229_v25  ;;  %v233_v30 = vsub.f32 %v426_v42, %v222_v26  ;;  %v216_v31 = vmul.f32 0.6931472, %v349_v27 }
 0x222   :  { %265 = vst [vmem:[%s517_s4 + $0x20] sm:$0xff] %v254_v28  ;;  %v248_v32 = vmul.f32 %v351_v29, %v442_v61 }
 0x223   :  { %v353_v33 = vpop.eup %352  ;;  %241 = vst [vmem:[%s518_s3 + $0x20] sm:$0xff] %v233_v30  ;;  %v230_v34 = vsub.f32 %v432_v48, %v216_v31 }
 0x224   :  { %v355_v35 = vpop.eup %354  ;;  %262 = vst [vmem:[%s517_s4 + $0x8] sm:$0xff] %v248_v32  ;;  %v224_v36 = vmul.f32 0.6931472, %v353_v33 }
 0x225   :  { %v357_v37 = vpop.eup %356  ;;  %238 = vst [vmem:[%s518_s3 + $0x8] sm:$0xff] %v230_v34  ;;  %v256_v38 = vmul.f32 %v355_v35, %v445_v62 }
 0x226   :  { %v359_v39 = vpop.eup %358  ;;  %v234_v40 = vsub.f32 %v430_v46, %v224_v36  ;;  %v226_v41 = vmul.f32 0.6931472, %v357_v37 }
 0x227   :  { %v361_v42 = vpop.eup %360  ;;  %266 = vst [vmem:[%s517_s4 + $0x28] sm:$0xff] %v256_v38  ;;  %v258_v43 = vmul.f32 %v359_v39, %v447_v63 }
 0x228   :  { %v363_v44 = vpop.eup %362  ;;  %242 = vst [vmem:[%s518_s3 + $0x28] sm:$0xff] %v234_v40  ;;  %v235_v45 = vsub.f32 %v438_v54, %v226_v41  ;;  %v228_v47 = vmul.f32 0.6931472, %v361_v42 }
 0x229   :  { %267 = vst [vmem:[%s517_s4 + $0x30] sm:$0xff] %v258_v43  ;;  %v260_v46 = vmul.f32 %v363_v44, %v451_v0 }
 0x22a   :  { %243 = vst [vmem:[%s518_s3 + $0x30] sm:$0xff] %v235_v45  ;;  %v236_v48 = vsub.f32 %v436_v53, %v228_v47 }
 0x22b   :  { %268 = vst [vmem:[%s517_s4 + $0x38] sm:$0xff] %v260_v46 }
 0x22c   :  { %244 = vst [vmem:[%s518_s3 + $0x38] sm:$0xff] %v236_v48 }

</bundles_post_ra>
